<compile_context>
chip_gen: v5e
topology: v5e:2x2
jax: 0.10.0
libtpu: 0.0.40
codegen_flags: <defaults>
</compile_context>

<pallas_src>
import random

import jax
import jax.numpy as jnp
from jax import lax
from jax.experimental import pallas as pl
from jax.experimental.pallas import tpu as pltpu


# ------------------------------ fused kernel --------------------------------

def _seq2seq_kernel(tf_ref, trg_ref, patches_ref,
                    conv_w_ref, conv_b_ref, init_w_ref, init_b_ref, emb_ref,
                    Uw_ref, Ub_ref, AwT_ref, Ab_ref,
                    HW_ref, Hb_ref, EW_ref, WW_ref, IWb_ref, Fo_ref,
                    out_ref):
    f32 = jnp.float32
    B, T, V = out_ref.shape
    _, L, Cp = patches_ref.shape
    E = conv_w_ref.shape[1]
    D = init_w_ref.shape[1]
    A = Uw_ref.shape[1]
    D3 = 3 * D

    def sig(t):                      # sigmoid via tanh identity (EUP, no divide)
        return 0.5 * (jnp.tanh(0.5 * t) + 1.0)

    # Hoisted broadcasts (not re-emitted per unrolled step).
    iota_bv = jax.lax.broadcasted_iota(jnp.int32, (B, V), 1)
    trg_all = trg_ref[...]                                            # (B, T) int32

    # ---------------- encoder (runs once) -------------------------------------
    patches = patches_ref[...].reshape(B * L, Cp)
    feats = (jnp.dot(patches, conv_w_ref[...], preferred_element_type=f32)
             + conv_b_ref[...])                                       # (B*L, E)
    enc = feats.reshape(B, L, E)                                      # encoder_outputs
    mean_enc = jnp.mean(enc, axis=1)                                  # (B, E)
    h = (jnp.dot(mean_enc, init_w_ref[...], preferred_element_type=f32)
         + init_b_ref[...])                                           # (B, D)
    # U(encoder_outputs) is constant over timesteps -> compute once.
    u_hs = (jnp.dot(feats, Uw_ref[...], preferred_element_type=f32)
            + Ub_ref[...]).reshape(B, L, A)                           # (B, L, A)

    # Output slab: zero-fill covers the t = 0 row; one HBM writeback at the end.
    out_ref[...] = jnp.zeros((B, T, V), f32)

    # initial decoder input: one-hot of trg[:, 0] (vectorised compare)
    onehot = (trg_all[:, 0][:, None] == iota_bv).astype(f32)          # (B, V)

    # ---------------- decode loop (unrolled; T is static) ---------------------
    for t in range(1, T):
        # embedding lookup as one-hot matmul (dropout == identity, see TODO)
        emb = jnp.dot(onehot, emb_ref[...], preferred_element_type=f32)   # (B, M)

        # shared-LHS fused matmul: h @ [Ww | Wh] -> (B, A+3D), lane-dense
        hh = jnp.dot(h, HW_ref[...], preferred_element_type=f32) + Hb_ref[...]
        w_ah = hh[:, :A]                                              # attention W(h)
        gh = hh[:, A:]                                                # GRU hidden gates

        # attention: A-projection on the MXU, softmax over L on sublanes
        combined = jnp.tanh(u_hs + w_ah[:, None, :])                  # (B, L, A)
        scores = (jnp.dot(combined.reshape(B * L, A), AwT_ref[...],
                          preferred_element_type=f32)
                  + Ab_ref[...]).reshape(B, L, 1)                     # (B, L, 1)
        m = jnp.max(scores, axis=1, keepdims=True)
        ex = jnp.exp(scores - m)
        denom = jnp.sum(ex, axis=1, keepdims=True)
        attn = ex * pl.reciprocal(denom, approx=True)                 # (B, L, 1)

        # weighted = bmm(a, encoder_outputs): VPU multiply + sublane reduce
        weighted = jnp.sum(attn * enc, axis=1)                        # (B, E)

        # shared-LHS fused matmuls feeding both the GRU input gates and fc_out
        ew = jnp.dot(emb, EW_ref[...], preferred_element_type=f32)    # (B, 3D+V)
        ww = jnp.dot(weighted, WW_ref[...], preferred_element_type=f32)
        iw = ew + ww + IWb_ref[...]
        gi = iw[:, :D3]                                               # GRU input gates
        pred_ew = iw[:, D3:]                                          # Fe/Fw part of fc_out

        # GRU cell (PyTorch gate order r, z, n)
        r = sig(gi[:, :D] + gh[:, :D])
        z = sig(gi[:, D:2 * D] + gh[:, D:2 * D])
        n = jnp.tanh(gi[:, 2 * D:] + r * gh[:, 2 * D:])
        h = (1.0 - z) * n + z * h                                     # new hidden (B, D)

        # prediction = fc_out(cat(output, weighted, embedded))
        pred = jnp.dot(h, Fo_ref[...], preferred_element_type=f32) + pred_ew  # (B, V)
        out_ref[:, t:t + 1, :] = pred[:, None, :]

        # next input: gate teacher-forcing vs greedy argmax (skip after last step)
        if t < T - 1:
            def _teacher():
                return (trg_all[:, t][:, None] == iota_bv).astype(f32)

            def _greedy():
                maxv = jnp.max(pred, axis=-1, keepdims=True)
                idx = jnp.min(jnp.where(pred == maxv, iota_bv, V),
                              axis=-1, keepdims=True)                 # first argmax
                return (iota_bv == idx).astype(f32)

            onehot = lax.cond(tf_ref[t - 1] == 1, _teacher, _greedy)


# ------------------------------- wrapper -------------------------------------

_WEIGHT_NAMES = ["conv_w", "conv_b", "init_w", "init_b", "emb",
                 "Uw", "Ub", "AwT", "Ab",
                 "HW", "Hb", "EW", "WW", "IWb", "Fo"]


def seq2seq_forward(params, src, trg, tf_flags, patch):
    """src: (B, C, H, W) NCHW; trg: (B, T) int; tf_flags: (T-1,) int32 in {0,1}."""
    trg = trg.astype(jnp.int32)
    B, T = trg.shape
    assert T >= 2
    _, C, H, W = src.shape
    Hp, Wp = H // patch, W // patch
    L = Hp * Wp
    Cp = C * patch * patch
    V = params["Fo"].shape[1]

    # non-overlapping PxP patches, channel-major -> (B, L, Cp)
    x = src.reshape(B, C, Hp, patch, Wp, patch).transpose(0, 2, 4, 1, 3, 5)
    patches = x.reshape(B, L, Cp).astype(jnp.float32)

    weights = [params[n] for n in _WEIGHT_NAMES]

    smem_spec = pl.BlockSpec(memory_space=pltpu.MemorySpace.SMEM)
    vmem_spec = pl.BlockSpec(memory_space=pltpu.MemorySpace.VMEM)

    out = pl.pallas_call(
        _seq2seq_kernel,
        out_shape=jax.ShapeDtypeStruct((B, T, V), jnp.float32),
        in_specs=[smem_spec, vmem_spec, vmem_spec] + [vmem_spec] * len(weights),
        out_specs=vmem_spec,
    )(tf_flags.astype(jnp.int32), trg, patches, *weights)
    return out                                                         # (B, T, V)


# ------------------------------ parameters -----------------------------------

def init_params(key, output_dim, embedding_dim, encoder_dim, decoder_dim,
                attention_dim, in_channels, patch):
    V, M, E, D, A = output_dim, embedding_dim, encoder_dim, decoder_dim, attention_dim
    Cp = in_channels * patch * patch
    ks = jax.random.split(key, 17)

    def nrm(k, shape, scale=0.08):
        return jax.random.normal(k, shape, jnp.float32) * scale

    # PyTorch-layout parameters (Linear weights are (out, in)).
    conv_w_pt = nrm(ks[0], (E, in_channels, patch, patch))
    conv_b_pt = nrm(ks[1], (E,))
    initW_pt = nrm(ks[2], (D, E));   initB_pt = nrm(ks[3], (D,))
    emb_table = nrm(ks[4], (V, M))
    attW_pt = nrm(ks[5], (A, D));    attWb_pt = nrm(ks[6], (A,))
    attU_pt = nrm(ks[7], (A, E));    attUb_pt = nrm(ks[8], (A,))
    attA_pt = nrm(ks[9], (1, A));    attAb_pt = nrm(ks[10], (1,))
    Wih_pt = nrm(ks[11], (3 * D, M + E));  bih_pt = nrm(ks[12], (3 * D,))
    Whh_pt = nrm(ks[13], (3 * D, D));      bhh_pt = nrm(ks[14], (3 * D,))
    fcW_pt = nrm(ks[15], (V, D + E + M));  fcB_pt = nrm(ks[16], (V,))

    # kernel layout: all (in, out) for x @ W; shared-LHS slabs concatenated.
    Ww = attW_pt.T                       # (D, A)
    Wh = Whh_pt.T                        # (D, 3D)
    Wi_e = Wih_pt[:, :M].T               # (M, 3D)   (GRU input = [emb | weighted])
    Wi_w = Wih_pt[:, M:].T               # (E, 3D)
    Fo = fcW_pt[:, :D].T                 # (D, V)    (fc_out input = [out|weighted|emb])
    Fw = fcW_pt[:, D:D + E].T            # (E, V)
    Fe = fcW_pt[:, D + E:].T             # (M, V)

    return dict(
        conv_w=conv_w_pt.reshape(E, Cp).T,                 # (Cp, E)
        conv_b=conv_b_pt.reshape(1, E),
        init_w=initW_pt.T,                                 # (E, D)
        init_b=initB_pt.reshape(1, D),
        emb=emb_table,                                     # (V, M)
        Uw=attU_pt.T,                                      # (E, A)
        Ub=attUb_pt.reshape(1, A),
        AwT=attA_pt.T,                                     # (A, 1)  MXU contraction
        Ab=attAb_pt.reshape(1, 1),
        HW=jnp.concatenate([Ww, Wh], axis=1),              # (D, A+3D) = (D, 128)
        Hb=jnp.concatenate([attWb_pt.reshape(1, A),
                            bhh_pt.reshape(1, 3 * D)], axis=1),
        EW=jnp.concatenate([Wi_e, Fe], axis=1),            # (M, 3D+V)
        WW=jnp.concatenate([Wi_w, Fw], axis=1),            # (E, 3D+V)
        IWb=jnp.concatenate([bih_pt.reshape(1, 3 * D),
                             fcB_pt.reshape(1, V)], axis=1),
        Fo=Fo,                                             # (D, V)
    )


# --------------------------------- main ---------------------------------------

if __name__ == "__main__":
    OUTPUT_DIM = 16       # trg vocab size
    EMBED_DIM = 16
    ENCODER_DIM = 32
    DECODER_DIM = 32
    ATTENTION_DIM = 32
    IN_CH = 3
    PATCH = 4             # stand-in conv stride; 16x16 image -> 4x4 -> L = 16
    SOS_TOKEN, EOS_TOKEN = 1, 2   # unused in forward(), kept for parity

    key = jax.random.PRNGKey(0)
    kp, kx, kt = jax.random.split(key, 3)

    params = init_params(kp, OUTPUT_DIM, EMBED_DIM, ENCODER_DIM, DECODER_DIM,
                         ATTENTION_DIM, IN_CH, PATCH)

    src = jax.random.normal(kx, (2, IN_CH, 16, 16), jnp.float32)
    trg = jax.random.randint(kt, (2, 6), 0, OUTPUT_DIM, dtype=jnp.int32)

    # deterministic teacher-forcing coin flips, same host RNG call order as the
    # PyTorch loop (one coin per timestep t = 1..T-1), precomputed for the kernel
    random.seed(0)
    T = trg.shape[1]
    teacher_forcing = 0.7
    tf_flags = jnp.asarray(
        [1 if random.random() < teacher_forcing else 0 for _ in range(1, T)],
        dtype=jnp.int32)

    outputs = seq2seq_forward(params, src, trg, tf_flags, PATCH)
    outputs = jax.block_until_ready(outputs)

    assert outputs.shape == (2, T, OUTPUT_DIM)
    assert outputs.dtype == jnp.float32
    assert bool(jnp.all(jnp.isfinite(outputs)))
    print("KERNEL_OK")
</pallas_src>

<mosaic_0001>
module attributes {stable_mosaic.version = 11 : i64} {
  func.func @_seq2seq_kernel(%arg0: memref<5xi32, #tpu.memory_space<smem>>, %arg1: memref<2x6xi32, #tpu.memory_space<vmem>>, %arg2: memref<2x16x48xf32, #tpu.memory_space<vmem>>, %arg3: memref<48x32xf32, #tpu.memory_space<vmem>>, %arg4: memref<1x32xf32, #tpu.memory_space<vmem>>, %arg5: memref<32x32xf32, #tpu.memory_space<vmem>>, %arg6: memref<1x32xf32, #tpu.memory_space<vmem>>, %arg7: memref<16x16xf32, #tpu.memory_space<vmem>>, %arg8: memref<32x32xf32, #tpu.memory_space<vmem>>, %arg9: memref<1x32xf32, #tpu.memory_space<vmem>>, %arg10: memref<32x1xf32, #tpu.memory_space<vmem>>, %arg11: memref<1x1xf32, #tpu.memory_space<vmem>>, %arg12: memref<32x128xf32, #tpu.memory_space<vmem>>, %arg13: memref<1x128xf32, #tpu.memory_space<vmem>>, %arg14: memref<16x112xf32, #tpu.memory_space<vmem>>, %arg15: memref<32x112xf32, #tpu.memory_space<vmem>>, %arg16: memref<1x112xf32, #tpu.memory_space<vmem>>, %arg17: memref<32x16xf32, #tpu.memory_space<vmem>>, %arg18: memref<2x6x16xf32, #tpu.memory_space<vmem>>) attributes {dimension_semantics = [], scalar_prefetch = 0 : i64, scratch_operands = 0 : i64, tpu.core_type = #tpu.core_type<tc>} {
    %0 = tpu.iota {dimensions = array<i32: 1>} : vector<2x16xi32>
    %c0 = arith.constant 0 : index
    %c0_0 = arith.constant 0 : index
    %1 = vector.load %arg1[%c0, %c0_0] : memref<2x6xi32, #tpu.memory_space<vmem>>, vector<2x6xi32>
    %c0_1 = arith.constant 0 : index
    %c0_2 = arith.constant 0 : index
    %c0_3 = arith.constant 0 : index
    %2 = vector.load %arg2[%c0_1, %c0_2, %c0_3] : memref<2x16x48xf32, #tpu.memory_space<vmem>>, vector<2x16x48xf32>
    %3 = vector.shape_cast %2 : vector<2x16x48xf32> to vector<32x48xf32>
    %c0_4 = arith.constant 0 : index
    %c0_5 = arith.constant 0 : index
    %4 = vector.load %arg3[%c0_4, %c0_5] : memref<48x32xf32, #tpu.memory_space<vmem>>, vector<48x32xf32>
    %cst = arith.constant dense<0.000000e+00> : vector<32x32xf32>
    %5 = tpu.matmul %3, %4, %cst {dimension_numbers = #tpu.dot_dimension_numbers<[1], [0], [0], [1], [0, 0, 1, 1], [], []>} : vector<32x48xf32>, vector<48x32xf32>, vector<32x32xf32> -> vector<32x32xf32>
    %c0_6 = arith.constant 0 : index
    %c0_7 = arith.constant 0 : index
    %6 = vector.load %arg4[%c0_6, %c0_7] : memref<1x32xf32, #tpu.memory_space<vmem>>, vector<1x32xf32>
    %7 = vector.broadcast %6 : vector<1x32xf32> to vector<32x32xf32>
    %8 = arith.addf %5, %7 : vector<32x32xf32>
    %9 = vector.shape_cast %8 : vector<32x32xf32> to vector<2x16x32xf32>
    %cst_8 = arith.constant dense<0.000000e+00> : vector<2x32xf32>
    %10 = vector.multi_reduction <add>, %9, %cst_8 [1] : vector<2x16x32xf32> to vector<2x32xf32>
    %cst_9 = arith.constant 1.600000e+01 : f32
    %11 = vector.broadcast %cst_9 : f32 to vector<2x32xf32>
    %12 = arith.divf %10, %11 : vector<2x32xf32>
    %c0_10 = arith.constant 0 : index
    %c0_11 = arith.constant 0 : index
    %13 = vector.load %arg5[%c0_10, %c0_11] : memref<32x32xf32, #tpu.memory_space<vmem>>, vector<32x32xf32>
    %cst_12 = arith.constant dense<0.000000e+00> : vector<2x32xf32>
    %14 = tpu.matmul %12, %13, %cst_12 {dimension_numbers = #tpu.dot_dimension_numbers<[1], [0], [0], [1], [0, 0, 1, 1], [], []>} : vector<2x32xf32>, vector<32x32xf32>, vector<2x32xf32> -> vector<2x32xf32>
    %c0_13 = arith.constant 0 : index
    %c0_14 = arith.constant 0 : index
    %15 = vector.load %arg6[%c0_13, %c0_14] : memref<1x32xf32, #tpu.memory_space<vmem>>, vector<1x32xf32>
    %16 = vector.broadcast %15 : vector<1x32xf32> to vector<2x32xf32>
    %17 = arith.addf %14, %16 : vector<2x32xf32>
    %c0_15 = arith.constant 0 : index
    %c0_16 = arith.constant 0 : index
    %18 = vector.load %arg8[%c0_15, %c0_16] : memref<32x32xf32, #tpu.memory_space<vmem>>, vector<32x32xf32>
    %cst_17 = arith.constant dense<0.000000e+00> : vector<32x32xf32>
    %19 = tpu.matmul %8, %18, %cst_17 {dimension_numbers = #tpu.dot_dimension_numbers<[1], [0], [0], [1], [0, 0, 1, 1], [], []>} : vector<32x32xf32>, vector<32x32xf32>, vector<32x32xf32> -> vector<32x32xf32>
    %c0_18 = arith.constant 0 : index
    %c0_19 = arith.constant 0 : index
    %20 = vector.load %arg9[%c0_18, %c0_19] : memref<1x32xf32, #tpu.memory_space<vmem>>, vector<1x32xf32>
    %21 = vector.broadcast %20 : vector<1x32xf32> to vector<32x32xf32>
    %22 = arith.addf %19, %21 : vector<32x32xf32>
    %23 = vector.shape_cast %22 : vector<32x32xf32> to vector<2x16x32xf32>
    %cst_20 = arith.constant 0.000000e+00 : f32
    %24 = vector.broadcast %cst_20 : f32 to vector<2x6x16xf32>
    %c0_21 = arith.constant 0 : index
    %c0_22 = arith.constant 0 : index
    %c0_23 = arith.constant 0 : index
    %25 = vector.load %arg18[%c0_21, %c0_22, %c0_23] : memref<2x6x16xf32, #tpu.memory_space<vmem>>, vector<2x6x16xf32>
    tpu.vector_store %arg18[%c0_21, %c0_22, %c0_23], %24 {strides = array<i32>} : memref<2x6x16xf32, #tpu.memory_space<vmem>>, vector<2x6x16xf32>,
    %26 = vector.extract_strided_slice %1 {offsets = [0, 0], sizes = [2, 1], strides = [1, 1]} : vector<2x6xi32> to vector<2x1xi32>
    %27 = vector.shape_cast %26 : vector<2x1xi32> to vector<2xi32>
    %28 = vector.shape_cast %27 : vector<2xi32> to vector<2x1xi32>
    %29 = vector.broadcast %28 : vector<2x1xi32> to vector<2x16xi32>
    %30 = arith.cmpi eq, %29, %0 : vector<2x16xi32>
    %31 = arith.extui %30 : vector<2x16xi1> to vector<2x16xi32>
    %32 = arith.sitofp %31 : vector<2x16xi32> to vector<2x16xf32>
    %c0_24 = arith.constant 0 : index
    %c0_25 = arith.constant 0 : index
    %33 = vector.load %arg7[%c0_24, %c0_25] : memref<16x16xf32, #tpu.memory_space<vmem>>, vector<16x16xf32>
    %cst_26 = arith.constant dense<0.000000e+00> : vector<2x16xf32>
    %34 = tpu.matmul %32, %33, %cst_26 {dimension_numbers = #tpu.dot_dimension_numbers<[1], [0], [0], [1], [0, 0, 1, 1], [], []>} : vector<2x16xf32>, vector<16x16xf32>, vector<2x16xf32> -> vector<2x16xf32>
    %c0_27 = arith.constant 0 : index
    %c0_28 = arith.constant 0 : index
    %35 = vector.load %arg12[%c0_27, %c0_28] : memref<32x128xf32, #tpu.memory_space<vmem>>, vector<32x128xf32>
    %cst_29 = arith.constant dense<0.000000e+00> : vector<2x128xf32>
    %36 = tpu.matmul %17, %35, %cst_29 {dimension_numbers = #tpu.dot_dimension_numbers<[1], [0], [0], [1], [0, 0, 1, 1], [], []>} : vector<2x32xf32>, vector<32x128xf32>, vector<2x128xf32> -> vector<2x128xf32>
    %c0_30 = arith.constant 0 : index
    %c0_31 = arith.constant 0 : index
    %37 = vector.load %arg13[%c0_30, %c0_31] : memref<1x128xf32, #tpu.memory_space<vmem>>, vector<1x128xf32>
    %38 = vector.broadcast %37 : vector<1x128xf32> to vector<2x128xf32>
    %39 = arith.addf %36, %38 : vector<2x128xf32>
    %40 = vector.extract_strided_slice %39 {offsets = [0, 0], sizes = [2, 32], strides = [1, 1]} : vector<2x128xf32> to vector<2x32xf32>
    %41 = vector.extract_strided_slice %39 {offsets = [0, 32], sizes = [2, 96], strides = [1, 1]} : vector<2x128xf32> to vector<2x96xf32>
    %42 = vector.shape_cast %40 : vector<2x32xf32> to vector<2x1x32xf32>
    %43 = vector.broadcast %42 : vector<2x1x32xf32> to vector<2x16x32xf32>
    %44 = arith.addf %23, %43 : vector<2x16x32xf32>
    %45 = math.tanh %44 : vector<2x16x32xf32>
    %46 = vector.shape_cast %45 : vector<2x16x32xf32> to vector<32x32xf32>
    %c0_32 = arith.constant 0 : index
    %c0_33 = arith.constant 0 : index
    %47 = vector.load %arg10[%c0_32, %c0_33] : memref<32x1xf32, #tpu.memory_space<vmem>>, vector<32x1xf32>
    %cst_34 = arith.constant dense<0.000000e+00> : vector<32x1xf32>
    %48 = tpu.matmul %46, %47, %cst_34 {dimension_numbers = #tpu.dot_dimension_numbers<[1], [0], [0], [1], [0, 0, 1, 1], [], []>} : vector<32x32xf32>, vector<32x1xf32>, vector<32x1xf32> -> vector<32x1xf32>
    %c0_35 = arith.constant 0 : index
    %c0_36 = arith.constant 0 : index
    %49 = vector.load %arg11[%c0_35, %c0_36] : memref<1x1xf32, #tpu.memory_space<vmem>>, vector<1x1xf32>
    %50 = vector.broadcast %49 : vector<1x1xf32> to vector<32x1xf32>
    %51 = arith.addf %48, %50 : vector<32x1xf32>
    %52 = vector.shape_cast %51 : vector<32x1xf32> to vector<2x16x1xf32>
    %cst_37 = arith.constant dense<0xFF800000> : vector<2x1xf32>
    %53 = vector.multi_reduction <maximumf>, %52, %cst_37 [1] : vector<2x16x1xf32> to vector<2x1xf32>
    %54 = vector.shape_cast %53 : vector<2x1xf32> to vector<2x1x1xf32>
    %55 = vector.broadcast %54 : vector<2x1x1xf32> to vector<2x16x1xf32>
    %56 = arith.subf %52, %55 : vector<2x16x1xf32>
    %57 = math.exp %56 : vector<2x16x1xf32>
    %cst_38 = arith.constant dense<0.000000e+00> : vector<2x1xf32>
    %58 = vector.multi_reduction <add>, %57, %cst_38 [1] : vector<2x16x1xf32> to vector<2x1xf32>
    %59 = vector.shape_cast %58 : vector<2x1xf32> to vector<2x1x1xf32>
    %60 = tpu.reciprocal %59 {approx = true} : vector<2x1x1xf32> -> vector<2x1x1xf32>
    %61 = vector.broadcast %60 : vector<2x1x1xf32> to vector<2x16x1xf32>
    %62 = arith.mulf %57, %61 : vector<2x16x1xf32>
    %63 = vector.broadcast %62 : vector<2x16x1xf32> to vector<2x16x32xf32>
    %64 = arith.mulf %63, %9 : vector<2x16x32xf32>
    %cst_39 = arith.constant dense<0.000000e+00> : vector<2x32xf32>
    %65 = vector.multi_reduction <add>, %64, %cst_39 [1] : vector<2x16x32xf32> to vector<2x32xf32>
    %c0_40 = arith.constant 0 : index
    %c0_41 = arith.constant 0 : index
    %66 = vector.load %arg14[%c0_40, %c0_41] : memref<16x112xf32, #tpu.memory_space<vmem>>, vector<16x112xf32>
    %cst_42 = arith.constant dense<0.000000e+00> : vector<2x112xf32>
    %67 = tpu.matmul %34, %66, %cst_42 {dimension_numbers = #tpu.dot_dimension_numbers<[1], [0], [0], [1], [0, 0, 1, 1], [], []>} : vector<2x16xf32>, vector<16x112xf32>, vector<2x112xf32> -> vector<2x112xf32>
    %c0_43 = arith.constant 0 : index
    %c0_44 = arith.constant 0 : index
    %68 = vector.load %arg15[%c0_43, %c0_44] : memref<32x112xf32, #tpu.memory_space<vmem>>, vector<32x112xf32>
    %cst_45 = arith.constant dense<0.000000e+00> : vector<2x112xf32>
    %69 = tpu.matmul %65, %68, %cst_45 {dimension_numbers = #tpu.dot_dimension_numbers<[1], [0], [0], [1], [0, 0, 1, 1], [], []>} : vector<2x32xf32>, vector<32x112xf32>, vector<2x112xf32> -> vector<2x112xf32>
    %70 = arith.addf %67, %69 : vector<2x112xf32>
    %c0_46 = arith.constant 0 : index
    %c0_47 = arith.constant 0 : index
    %71 = vector.load %arg16[%c0_46, %c0_47] : memref<1x112xf32, #tpu.memory_space<vmem>>, vector<1x112xf32>
    %72 = vector.broadcast %71 : vector<1x112xf32> to vector<2x112xf32>
    %73 = arith.addf %70, %72 : vector<2x112xf32>
    %74 = vector.extract_strided_slice %73 {offsets = [0, 0], sizes = [2, 96], strides = [1, 1]} : vector<2x112xf32> to vector<2x96xf32>
    %75 = vector.extract_strided_slice %73 {offsets = [0, 96], sizes = [2, 16], strides = [1, 1]} : vector<2x112xf32> to vector<2x16xf32>
    %76 = vector.extract_strided_slice %74 {offsets = [0, 0], sizes = [2, 32], strides = [1, 1]} : vector<2x96xf32> to vector<2x32xf32>
    %77 = vector.extract_strided_slice %41 {offsets = [0, 0], sizes = [2, 32], strides = [1, 1]} : vector<2x96xf32> to vector<2x32xf32>
    %78 = arith.addf %76, %77 : vector<2x32xf32>
    %cst_48 = arith.constant 5.000000e-01 : f32
    %79 = vector.broadcast %cst_48 : f32 to vector<2x32xf32>
    %80 = arith.mulf %79, %78 : vector<2x32xf32>
    %81 = math.tanh %80 : vector<2x32xf32>
    %cst_49 = arith.constant 1.000000e+00 : f32
    %82 = vector.broadcast %cst_49 : f32 to vector<2x32xf32>
    %83 = arith.addf %81, %82 : vector<2x32xf32>
    %cst_50 = arith.constant 5.000000e-01 : f32
    %84 = vector.broadcast %cst_50 : f32 to vector<2x32xf32>
    %85 = arith.mulf %84, %83 : vector<2x32xf32>
    %86 = vector.extract_strided_slice %74 {offsets = [0, 32], sizes = [2, 32], strides = [1, 1]} : vector<2x96xf32> to vector<2x32xf32>
    %87 = vector.extract_strided_slice %41 {offsets = [0, 32], sizes = [2, 32], strides = [1, 1]} : vector<2x96xf32> to vector<2x32xf32>
    %88 = arith.addf %86, %87 : vector<2x32xf32>
    %cst_51 = arith.constant 5.000000e-01 : f32
    %89 = vector.broadcast %cst_51 : f32 to vector<2x32xf32>
    %90 = arith.mulf %89, %88 : vector<2x32xf32>
    %91 = math.tanh %90 : vector<2x32xf32>
    %cst_52 = arith.constant 1.000000e+00 : f32
    %92 = vector.broadcast %cst_52 : f32 to vector<2x32xf32>
    %93 = arith.addf %91, %92 : vector<2x32xf32>
    %cst_53 = arith.constant 5.000000e-01 : f32
    %94 = vector.broadcast %cst_53 : f32 to vector<2x32xf32>
    %95 = arith.mulf %94, %93 : vector<2x32xf32>
    %96 = vector.extract_strided_slice %74 {offsets = [0, 64], sizes = [2, 32], strides = [1, 1]} : vector<2x96xf32> to vector<2x32xf32>
    %97 = vector.extract_strided_slice %41 {offsets = [0, 64], sizes = [2, 32], strides = [1, 1]} : vector<2x96xf32> to vector<2x32xf32>
    %98 = arith.mulf %85, %97 : vector<2x32xf32>
    %99 = arith.addf %96, %98 : vector<2x32xf32>
    %100 = math.tanh %99 : vector<2x32xf32>
    %cst_54 = arith.constant 1.000000e+00 : f32
    %101 = vector.broadcast %cst_54 : f32 to vector<2x32xf32>
    %102 = arith.subf %101, %95 : vector<2x32xf32>
    %103 = arith.mulf %102, %100 : vector<2x32xf32>
    %104 = arith.mulf %95, %17 : vector<2x32xf32>
    %105 = arith.addf %103, %104 : vector<2x32xf32>
    %c0_55 = arith.constant 0 : index
    %c0_56 = arith.constant 0 : index
    %106 = vector.load %arg17[%c0_55, %c0_56] : memref<32x16xf32, #tpu.memory_space<vmem>>, vector<32x16xf32>
    %cst_57 = arith.constant dense<0.000000e+00> : vector<2x16xf32>
    %107 = tpu.matmul %105, %106, %cst_57 {dimension_numbers = #tpu.dot_dimension_numbers<[1], [0], [0], [1], [0, 0, 1, 1], [], []>} : vector<2x32xf32>, vector<32x16xf32>, vector<2x16xf32> -> vector<2x16xf32>
    %108 = arith.addf %107, %75 : vector<2x16xf32>
    %109 = vector.shape_cast %108 : vector<2x16xf32> to vector<2x1x16xf32>
    %c0_58 = arith.constant 0 : index
    %c1 = arith.constant 1 : index
    %c0_59 = arith.constant 0 : index
    %110 = vector.load %arg18[%c0_58, %c1, %c0_59] : memref<2x6x16xf32, #tpu.memory_space<vmem>>, vector<2x1x16xf32>
    tpu.vector_store %arg18[%c0_58, %c1, %c0_59], %109 {strides = array<i32>} : memref<2x6x16xf32, #tpu.memory_space<vmem>>, vector<2x1x16xf32>,
    %c0_60 = arith.constant 0 : index
    %111 = memref.load %arg0[%c0_60] : memref<5xi32, #tpu.memory_space<smem>>
    %c1_i32 = arith.constant 1 : i32
    %112 = arith.cmpi eq, %111, %c1_i32 : i32
    %113 = arith.extui %112 : i1 to i32
    %c0_i32 = arith.constant 0 : i32
    %114 = arith.cmpi ne, %113, %c0_i32 : i32
    %115 = scf.if %114 -> (vector<2x16xf32>) {
      %443 = vector.extract_strided_slice %1 {offsets = [0, 1], sizes = [2, 1], strides = [1, 1]} : vector<2x6xi32> to vector<2x1xi32>
      %444 = vector.shape_cast %443 : vector<2x1xi32> to vector<2xi32>
      %445 = vector.shape_cast %444 : vector<2xi32> to vector<2x1xi32>
      %446 = vector.broadcast %445 : vector<2x1xi32> to vector<2x16xi32>
      %447 = arith.cmpi eq, %446, %0 : vector<2x16xi32>
      %448 = arith.extui %447 : vector<2x16xi1> to vector<2x16xi32>
      %449 = arith.sitofp %448 : vector<2x16xi32> to vector<2x16xf32>
      scf.yield %449 : vector<2x16xf32>
    } else {
      %cst_214 = arith.constant dense<0xFF800000> : vector<2xf32>
      %443 = vector.multi_reduction <maximumf>, %108, %cst_214 [1] : vector<2x16xf32> to vector<2xf32>
      %444 = vector.shape_cast %443 : vector<2xf32> to vector<2x1xf32>
      %445 = vector.broadcast %444 : vector<2x1xf32> to vector<2x16xf32>
      %446 = arith.cmpf oeq, %108, %445 : vector<2x16xf32>
      %c16_i32 = arith.constant 16 : i32
      %447 = vector.broadcast %c16_i32 : i32 to vector<2x16xi32>
      %448 = arith.select %446, %0, %447 : vector<2x16xi1>, vector<2x16xi32>
      %cst_215 = arith.constant dense<2147483647> : vector<2xi32>
      %449 = vector.multi_reduction <minsi>, %448, %cst_215 [1] : vector<2x16xi32> to vector<2xi32>
      %450 = vector.shape_cast %449 : vector<2xi32> to vector<2x1xi32>
      %451 = vector.broadcast %450 : vector<2x1xi32> to vector<2x16xi32>
      %452 = arith.cmpi eq, %0, %451 : vector<2x16xi32>
      %453 = arith.extui %452 : vector<2x16xi1> to vector<2x16xi32>
      %454 = arith.sitofp %453 : vector<2x16xi32> to vector<2x16xf32>
      scf.yield %454 : vector<2x16xf32>
    }
    %c0_61 = arith.constant 0 : index
    %c0_62 = arith.constant 0 : index
    %116 = vector.load %arg7[%c0_61, %c0_62] : memref<16x16xf32, #tpu.memory_space<vmem>>, vector<16x16xf32>
    %cst_63 = arith.constant dense<0.000000e+00> : vector<2x16xf32>
    %117 = tpu.matmul %115, %116, %cst_63 {dimension_numbers = #tpu.dot_dimension_numbers<[1], [0], [0], [1], [0, 0, 1, 1], [], []>} : vector<2x16xf32>, vector<16x16xf32>, vector<2x16xf32> -> vector<2x16xf32>
    %c0_64 = arith.constant 0 : index
    %c0_65 = arith.constant 0 : index
    %118 = vector.load %arg12[%c0_64, %c0_65] : memref<32x128xf32, #tpu.memory_space<vmem>>, vector<32x128xf32>
    %cst_66 = arith.constant dense<0.000000e+00> : vector<2x128xf32>
    %119 = tpu.matmul %105, %118, %cst_66 {dimension_numbers = #tpu.dot_dimension_numbers<[1], [0], [0], [1], [0, 0, 1, 1], [], []>} : vector<2x32xf32>, vector<32x128xf32>, vector<2x128xf32> -> vector<2x128xf32>
    %c0_67 = arith.constant 0 : index
    %c0_68 = arith.constant 0 : index
    %120 = vector.load %arg13[%c0_67, %c0_68] : memref<1x128xf32, #tpu.memory_space<vmem>>, vector<1x128xf32>
    %121 = vector.broadcast %120 : vector<1x128xf32> to vector<2x128xf32>
    %122 = arith.addf %119, %121 : vector<2x128xf32>
    %123 = vector.extract_strided_slice %122 {offsets = [0, 0], sizes = [2, 32], strides = [1, 1]} : vector<2x128xf32> to vector<2x32xf32>
    %124 = vector.extract_strided_slice %122 {offsets = [0, 32], sizes = [2, 96], strides = [1, 1]} : vector<2x128xf32> to vector<2x96xf32>
    %125 = vector.shape_cast %123 : vector<2x32xf32> to vector<2x1x32xf32>
    %126 = vector.broadcast %125 : vector<2x1x32xf32> to vector<2x16x32xf32>
    %127 = arith.addf %23, %126 : vector<2x16x32xf32>
    %128 = math.tanh %127 : vector<2x16x32xf32>
    %129 = vector.shape_cast %128 : vector<2x16x32xf32> to vector<32x32xf32>
    %c0_69 = arith.constant 0 : index
    %c0_70 = arith.constant 0 : index
    %130 = vector.load %arg10[%c0_69, %c0_70] : memref<32x1xf32, #tpu.memory_space<vmem>>, vector<32x1xf32>
    %cst_71 = arith.constant dense<0.000000e+00> : vector<32x1xf32>
    %131 = tpu.matmul %129, %130, %cst_71 {dimension_numbers = #tpu.dot_dimension_numbers<[1], [0], [0], [1], [0, 0, 1, 1], [], []>} : vector<32x32xf32>, vector<32x1xf32>, vector<32x1xf32> -> vector<32x1xf32>
    %c0_72 = arith.constant 0 : index
    %c0_73 = arith.constant 0 : index
    %132 = vector.load %arg11[%c0_72, %c0_73] : memref<1x1xf32, #tpu.memory_space<vmem>>, vector<1x1xf32>
    %133 = vector.broadcast %132 : vector<1x1xf32> to vector<32x1xf32>
    %134 = arith.addf %131, %133 : vector<32x1xf32>
    %135 = vector.shape_cast %134 : vector<32x1xf32> to vector<2x16x1xf32>
    %cst_74 = arith.constant dense<0xFF800000> : vector<2x1xf32>
    %136 = vector.multi_reduction <maximumf>, %135, %cst_74 [1] : vector<2x16x1xf32> to vector<2x1xf32>
    %137 = vector.shape_cast %136 : vector<2x1xf32> to vector<2x1x1xf32>
    %138 = vector.broadcast %137 : vector<2x1x1xf32> to vector<2x16x1xf32>
    %139 = arith.subf %135, %138 : vector<2x16x1xf32>
    %140 = math.exp %139 : vector<2x16x1xf32>
    %cst_75 = arith.constant dense<0.000000e+00> : vector<2x1xf32>
    %141 = vector.multi_reduction <add>, %140, %cst_75 [1] : vector<2x16x1xf32> to vector<2x1xf32>
    %142 = vector.shape_cast %141 : vector<2x1xf32> to vector<2x1x1xf32>
    %143 = tpu.reciprocal %142 {approx = true} : vector<2x1x1xf32> -> vector<2x1x1xf32>
    %144 = vector.broadcast %143 : vector<2x1x1xf32> to vector<2x16x1xf32>
    %145 = arith.mulf %140, %144 : vector<2x16x1xf32>
    %146 = vector.broadcast %145 : vector<2x16x1xf32> to vector<2x16x32xf32>
    %147 = arith.mulf %146, %9 : vector<2x16x32xf32>
    %cst_76 = arith.constant dense<0.000000e+00> : vector<2x32xf32>
    %148 = vector.multi_reduction <add>, %147, %cst_76 [1] : vector<2x16x32xf32> to vector<2x32xf32>
    %c0_77 = arith.constant 0 : index
    %c0_78 = arith.constant 0 : index
    %149 = vector.load %arg14[%c0_77, %c0_78] : memref<16x112xf32, #tpu.memory_space<vmem>>, vector<16x112xf32>
    %cst_79 = arith.constant dense<0.000000e+00> : vector<2x112xf32>
    %150 = tpu.matmul %117, %149, %cst_79 {dimension_numbers = #tpu.dot_dimension_numbers<[1], [0], [0], [1], [0, 0, 1, 1], [], []>} : vector<2x16xf32>, vector<16x112xf32>, vector<2x112xf32> -> vector<2x112xf32>
    %c0_80 = arith.constant 0 : index
    %c0_81 = arith.constant 0 : index
    %151 = vector.load %arg15[%c0_80, %c0_81] : memref<32x112xf32, #tpu.memory_space<vmem>>, vector<32x112xf32>
    %cst_82 = arith.constant dense<0.000000e+00> : vector<2x112xf32>
    %152 = tpu.matmul %148, %151, %cst_82 {dimension_numbers = #tpu.dot_dimension_numbers<[1], [0], [0], [1], [0, 0, 1, 1], [], []>} : vector<2x32xf32>, vector<32x112xf32>, vector<2x112xf32> -> vector<2x112xf32>
    %153 = arith.addf %150, %152 : vector<2x112xf32>
    %c0_83 = arith.constant 0 : index
    %c0_84 = arith.constant 0 : index
    %154 = vector.load %arg16[%c0_83, %c0_84] : memref<1x112xf32, #tpu.memory_space<vmem>>, vector<1x112xf32>
    %155 = vector.broadcast %154 : vector<1x112xf32> to vector<2x112xf32>
    %156 = arith.addf %153, %155 : vector<2x112xf32>
    %157 = vector.extract_strided_slice %156 {offsets = [0, 0], sizes = [2, 96], strides = [1, 1]} : vector<2x112xf32> to vector<2x96xf32>
    %158 = vector.extract_strided_slice %156 {offsets = [0, 96], sizes = [2, 16], strides = [1, 1]} : vector<2x112xf32> to vector<2x16xf32>
    %159 = vector.extract_strided_slice %157 {offsets = [0, 0], sizes = [2, 32], strides = [1, 1]} : vector<2x96xf32> to vector<2x32xf32>
    %160 = vector.extract_strided_slice %124 {offsets = [0, 0], sizes = [2, 32], strides = [1, 1]} : vector<2x96xf32> to vector<2x32xf32>
    %161 = arith.addf %159, %160 : vector<2x32xf32>
    %cst_85 = arith.constant 5.000000e-01 : f32
    %162 = vector.broadcast %cst_85 : f32 to vector<2x32xf32>
    %163 = arith.mulf %162, %161 : vector<2x32xf32>
    %164 = math.tanh %163 : vector<2x32xf32>
    %cst_86 = arith.constant 1.000000e+00 : f32
    %165 = vector.broadcast %cst_86 : f32 to vector<2x32xf32>
    %166 = arith.addf %164, %165 : vector<2x32xf32>
    %cst_87 = arith.constant 5.000000e-01 : f32
    %167 = vector.broadcast %cst_87 : f32 to vector<2x32xf32>
    %168 = arith.mulf %167, %166 : vector<2x32xf32>
    %169 = vector.extract_strided_slice %157 {offsets = [0, 32], sizes = [2, 32], strides = [1, 1]} : vector<2x96xf32> to vector<2x32xf32>
    %170 = vector.extract_strided_slice %124 {offsets = [0, 32], sizes = [2, 32], strides = [1, 1]} : vector<2x96xf32> to vector<2x32xf32>
    %171 = arith.addf %169, %170 : vector<2x32xf32>
    %cst_88 = arith.constant 5.000000e-01 : f32
    %172 = vector.broadcast %cst_88 : f32 to vector<2x32xf32>
    %173 = arith.mulf %172, %171 : vector<2x32xf32>
    %174 = math.tanh %173 : vector<2x32xf32>
    %cst_89 = arith.constant 1.000000e+00 : f32
    %175 = vector.broadcast %cst_89 : f32 to vector<2x32xf32>
    %176 = arith.addf %174, %175 : vector<2x32xf32>
    %cst_90 = arith.constant 5.000000e-01 : f32
    %177 = vector.broadcast %cst_90 : f32 to vector<2x32xf32>
    %178 = arith.mulf %177, %176 : vector<2x32xf32>
    %179 = vector.extract_strided_slice %157 {offsets = [0, 64], sizes = [2, 32], strides = [1, 1]} : vector<2x96xf32> to vector<2x32xf32>
    %180 = vector.extract_strided_slice %124 {offsets = [0, 64], sizes = [2, 32], strides = [1, 1]} : vector<2x96xf32> to vector<2x32xf32>
    %181 = arith.mulf %168, %180 : vector<2x32xf32>
    %182 = arith.addf %179, %181 : vector<2x32xf32>
    %183 = math.tanh %182 : vector<2x32xf32>
    %cst_91 = arith.constant 1.000000e+00 : f32
    %184 = vector.broadcast %cst_91 : f32 to vector<2x32xf32>
    %185 = arith.subf %184, %178 : vector<2x32xf32>
    %186 = arith.mulf %185, %183 : vector<2x32xf32>
    %187 = arith.mulf %178, %105 : vector<2x32xf32>
    %188 = arith.addf %186, %187 : vector<2x32xf32>
    %c0_92 = arith.constant 0 : index
    %c0_93 = arith.constant 0 : index
    %189 = vector.load %arg17[%c0_92, %c0_93] : memref<32x16xf32, #tpu.memory_space<vmem>>, vector<32x16xf32>
    %cst_94 = arith.constant dense<0.000000e+00> : vector<2x16xf32>
    %190 = tpu.matmul %188, %189, %cst_94 {dimension_numbers = #tpu.dot_dimension_numbers<[1], [0], [0], [1], [0, 0, 1, 1], [], []>} : vector<2x32xf32>, vector<32x16xf32>, vector<2x16xf32> -> vector<2x16xf32>
    %191 = arith.addf %190, %158 : vector<2x16xf32>
    %192 = vector.shape_cast %191 : vector<2x16xf32> to vector<2x1x16xf32>
    %c0_95 = arith.constant 0 : index
    %c2 = arith.constant 2 : index
    %c0_96 = arith.constant 0 : index
    %193 = vector.load %arg18[%c0_95, %c2, %c0_96] : memref<2x6x16xf32, #tpu.memory_space<vmem>>, vector<2x1x16xf32>
    tpu.vector_store %arg18[%c0_95, %c2, %c0_96], %192 {strides = array<i32>} : memref<2x6x16xf32, #tpu.memory_space<vmem>>, vector<2x1x16xf32>,
    %c1_97 = arith.constant 1 : index
    %194 = memref.load %arg0[%c1_97] : memref<5xi32, #tpu.memory_space<smem>>
    %c1_i32_98 = arith.constant 1 : i32
    %195 = arith.cmpi eq, %194, %c1_i32_98 : i32
    %196 = arith.extui %195 : i1 to i32
    %c0_i32_99 = arith.constant 0 : i32
    %197 = arith.cmpi ne, %196, %c0_i32_99 : i32
    %198 = scf.if %197 -> (vector<2x16xf32>) {
      %443 = vector.extract_strided_slice %1 {offsets = [0, 2], sizes = [2, 1], strides = [1, 1]} : vector<2x6xi32> to vector<2x1xi32>
      %444 = vector.shape_cast %443 : vector<2x1xi32> to vector<2xi32>
      %445 = vector.shape_cast %444 : vector<2xi32> to vector<2x1xi32>
      %446 = vector.broadcast %445 : vector<2x1xi32> to vector<2x16xi32>
      %447 = arith.cmpi eq, %446, %0 : vector<2x16xi32>
      %448 = arith.extui %447 : vector<2x16xi1> to vector<2x16xi32>
      %449 = arith.sitofp %448 : vector<2x16xi32> to vector<2x16xf32>
      scf.yield %449 : vector<2x16xf32>
    } else {
      %cst_214 = arith.constant dense<0xFF800000> : vector<2xf32>
      %443 = vector.multi_reduction <maximumf>, %191, %cst_214 [1] : vector<2x16xf32> to vector<2xf32>
      %444 = vector.shape_cast %443 : vector<2xf32> to vector<2x1xf32>
      %445 = vector.broadcast %444 : vector<2x1xf32> to vector<2x16xf32>
      %446 = arith.cmpf oeq, %191, %445 : vector<2x16xf32>
      %c16_i32 = arith.constant 16 : i32
      %447 = vector.broadcast %c16_i32 : i32 to vector<2x16xi32>
      %448 = arith.select %446, %0, %447 : vector<2x16xi1>, vector<2x16xi32>
      %cst_215 = arith.constant dense<2147483647> : vector<2xi32>
      %449 = vector.multi_reduction <minsi>, %448, %cst_215 [1] : vector<2x16xi32> to vector<2xi32>
      %450 = vector.shape_cast %449 : vector<2xi32> to vector<2x1xi32>
      %451 = vector.broadcast %450 : vector<2x1xi32> to vector<2x16xi32>
      %452 = arith.cmpi eq, %0, %451 : vector<2x16xi32>
      %453 = arith.extui %452 : vector<2x16xi1> to vector<2x16xi32>
      %454 = arith.sitofp %453 : vector<2x16xi32> to vector<2x16xf32>
      scf.yield %454 : vector<2x16xf32>
    }
    %c0_100 = arith.constant 0 : index
    %c0_101 = arith.constant 0 : index
    %199 = vector.load %arg7[%c0_100, %c0_101] : memref<16x16xf32, #tpu.memory_space<vmem>>, vector<16x16xf32>
    %cst_102 = arith.constant dense<0.000000e+00> : vector<2x16xf32>
    %200 = tpu.matmul %198, %199, %cst_102 {dimension_numbers = #tpu.dot_dimension_numbers<[1], [0], [0], [1], [0, 0, 1, 1], [], []>} : vector<2x16xf32>, vector<16x16xf32>, vector<2x16xf32> -> vector<2x16xf32>
    %c0_103 = arith.constant 0 : index
    %c0_104 = arith.constant 0 : index
    %201 = vector.load %arg12[%c0_103, %c0_104] : memref<32x128xf32, #tpu.memory_space<vmem>>, vector<32x128xf32>
    %cst_105 = arith.constant dense<0.000000e+00> : vector<2x128xf32>
    %202 = tpu.matmul %188, %201, %cst_105 {dimension_numbers = #tpu.dot_dimension_numbers<[1], [0], [0], [1], [0, 0, 1, 1], [], []>} : vector<2x32xf32>, vector<32x128xf32>, vector<2x128xf32> -> vector<2x128xf32>
    %c0_106 = arith.constant 0 : index
    %c0_107 = arith.constant 0 : index
    %203 = vector.load %arg13[%c0_106, %c0_107] : memref<1x128xf32, #tpu.memory_space<vmem>>, vector<1x128xf32>
    %204 = vector.broadcast %203 : vector<1x128xf32> to vector<2x128xf32>
    %205 = arith.addf %202, %204 : vector<2x128xf32>
    %206 = vector.extract_strided_slice %205 {offsets = [0, 0], sizes = [2, 32], strides = [1, 1]} : vector<2x128xf32> to vector<2x32xf32>
    %207 = vector.extract_strided_slice %205 {offsets = [0, 32], sizes = [2, 96], strides = [1, 1]} : vector<2x128xf32> to vector<2x96xf32>
    %208 = vector.shape_cast %206 : vector<2x32xf32> to vector<2x1x32xf32>
    %209 = vector.broadcast %208 : vector<2x1x32xf32> to vector<2x16x32xf32>
    %210 = arith.addf %23, %209 : vector<2x16x32xf32>
    %211 = math.tanh %210 : vector<2x16x32xf32>
    %212 = vector.shape_cast %211 : vector<2x16x32xf32> to vector<32x32xf32>
    %c0_108 = arith.constant 0 : index
    %c0_109 = arith.constant 0 : index
    %213 = vector.load %arg10[%c0_108, %c0_109] : memref<32x1xf32, #tpu.memory_space<vmem>>, vector<32x1xf32>
    %cst_110 = arith.constant dense<0.000000e+00> : vector<32x1xf32>
    %214 = tpu.matmul %212, %213, %cst_110 {dimension_numbers = #tpu.dot_dimension_numbers<[1], [0], [0], [1], [0, 0, 1, 1], [], []>} : vector<32x32xf32>, vector<32x1xf32>, vector<32x1xf32> -> vector<32x1xf32>
    %c0_111 = arith.constant 0 : index
    %c0_112 = arith.constant 0 : index
    %215 = vector.load %arg11[%c0_111, %c0_112] : memref<1x1xf32, #tpu.memory_space<vmem>>, vector<1x1xf32>
    %216 = vector.broadcast %215 : vector<1x1xf32> to vector<32x1xf32>
    %217 = arith.addf %214, %216 : vector<32x1xf32>
    %218 = vector.shape_cast %217 : vector<32x1xf32> to vector<2x16x1xf32>
    %cst_113 = arith.constant dense<0xFF800000> : vector<2x1xf32>
    %219 = vector.multi_reduction <maximumf>, %218, %cst_113 [1] : vector<2x16x1xf32> to vector<2x1xf32>
    %220 = vector.shape_cast %219 : vector<2x1xf32> to vector<2x1x1xf32>
    %221 = vector.broadcast %220 : vector<2x1x1xf32> to vector<2x16x1xf32>
    %222 = arith.subf %218, %221 : vector<2x16x1xf32>
    %223 = math.exp %222 : vector<2x16x1xf32>
    %cst_114 = arith.constant dense<0.000000e+00> : vector<2x1xf32>
    %224 = vector.multi_reduction <add>, %223, %cst_114 [1] : vector<2x16x1xf32> to vector<2x1xf32>
    %225 = vector.shape_cast %224 : vector<2x1xf32> to vector<2x1x1xf32>
    %226 = tpu.reciprocal %225 {approx = true} : vector<2x1x1xf32> -> vector<2x1x1xf32>
    %227 = vector.broadcast %226 : vector<2x1x1xf32> to vector<2x16x1xf32>
    %228 = arith.mulf %223, %227 : vector<2x16x1xf32>
    %229 = vector.broadcast %228 : vector<2x16x1xf32> to vector<2x16x32xf32>
    %230 = arith.mulf %229, %9 : vector<2x16x32xf32>
    %cst_115 = arith.constant dense<0.000000e+00> : vector<2x32xf32>
    %231 = vector.multi_reduction <add>, %230, %cst_115 [1] : vector<2x16x32xf32> to vector<2x32xf32>
    %c0_116 = arith.constant 0 : index
    %c0_117 = arith.constant 0 : index
    %232 = vector.load %arg14[%c0_116, %c0_117] : memref<16x112xf32, #tpu.memory_space<vmem>>, vector<16x112xf32>
    %cst_118 = arith.constant dense<0.000000e+00> : vector<2x112xf32>
    %233 = tpu.matmul %200, %232, %cst_118 {dimension_numbers = #tpu.dot_dimension_numbers<[1], [0], [0], [1], [0, 0, 1, 1], [], []>} : vector<2x16xf32>, vector<16x112xf32>, vector<2x112xf32> -> vector<2x112xf32>
    %c0_119 = arith.constant 0 : index
    %c0_120 = arith.constant 0 : index
    %234 = vector.load %arg15[%c0_119, %c0_120] : memref<32x112xf32, #tpu.memory_space<vmem>>, vector<32x112xf32>
    %cst_121 = arith.constant dense<0.000000e+00> : vector<2x112xf32>
    %235 = tpu.matmul %231, %234, %cst_121 {dimension_numbers = #tpu.dot_dimension_numbers<[1], [0], [0], [1], [0, 0, 1, 1], [], []>} : vector<2x32xf32>, vector<32x112xf32>, vector<2x112xf32> -> vector<2x112xf32>
    %236 = arith.addf %233, %235 : vector<2x112xf32>
    %c0_122 = arith.constant 0 : index
    %c0_123 = arith.constant 0 : index
    %237 = vector.load %arg16[%c0_122, %c0_123] : memref<1x112xf32, #tpu.memory_space<vmem>>, vector<1x112xf32>
    %238 = vector.broadcast %237 : vector<1x112xf32> to vector<2x112xf32>
    %239 = arith.addf %236, %238 : vector<2x112xf32>
    %240 = vector.extract_strided_slice %239 {offsets = [0, 0], sizes = [2, 96], strides = [1, 1]} : vector<2x112xf32> to vector<2x96xf32>
    %241 = vector.extract_strided_slice %239 {offsets = [0, 96], sizes = [2, 16], strides = [1, 1]} : vector<2x112xf32> to vector<2x16xf32>
    %242 = vector.extract_strided_slice %240 {offsets = [0, 0], sizes = [2, 32], strides = [1, 1]} : vector<2x96xf32> to vector<2x32xf32>
    %243 = vector.extract_strided_slice %207 {offsets = [0, 0], sizes = [2, 32], strides = [1, 1]} : vector<2x96xf32> to vector<2x32xf32>
    %244 = arith.addf %242, %243 : vector<2x32xf32>
    %cst_124 = arith.constant 5.000000e-01 : f32
    %245 = vector.broadcast %cst_124 : f32 to vector<2x32xf32>
    %246 = arith.mulf %245, %244 : vector<2x32xf32>
    %247 = math.tanh %246 : vector<2x32xf32>
    %cst_125 = arith.constant 1.000000e+00 : f32
    %248 = vector.broadcast %cst_125 : f32 to vector<2x32xf32>
    %249 = arith.addf %247, %248 : vector<2x32xf32>
    %cst_126 = arith.constant 5.000000e-01 : f32
    %250 = vector.broadcast %cst_126 : f32 to vector<2x32xf32>
    %251 = arith.mulf %250, %249 : vector<2x32xf32>
    %252 = vector.extract_strided_slice %240 {offsets = [0, 32], sizes = [2, 32], strides = [1, 1]} : vector<2x96xf32> to vector<2x32xf32>
    %253 = vector.extract_strided_slice %207 {offsets = [0, 32], sizes = [2, 32], strides = [1, 1]} : vector<2x96xf32> to vector<2x32xf32>
    %254 = arith.addf %252, %253 : vector<2x32xf32>
    %cst_127 = arith.constant 5.000000e-01 : f32
    %255 = vector.broadcast %cst_127 : f32 to vector<2x32xf32>
    %256 = arith.mulf %255, %254 : vector<2x32xf32>
    %257 = math.tanh %256 : vector<2x32xf32>
    %cst_128 = arith.constant 1.000000e+00 : f32
    %258 = vector.broadcast %cst_128 : f32 to vector<2x32xf32>
    %259 = arith.addf %257, %258 : vector<2x32xf32>
    %cst_129 = arith.constant 5.000000e-01 : f32
    %260 = vector.broadcast %cst_129 : f32 to vector<2x32xf32>
    %261 = arith.mulf %260, %259 : vector<2x32xf32>
    %262 = vector.extract_strided_slice %240 {offsets = [0, 64], sizes = [2, 32], strides = [1, 1]} : vector<2x96xf32> to vector<2x32xf32>
    %263 = vector.extract_strided_slice %207 {offsets = [0, 64], sizes = [2, 32], strides = [1, 1]} : vector<2x96xf32> to vector<2x32xf32>
    %264 = arith.mulf %251, %263 : vector<2x32xf32>
    %265 = arith.addf %262, %264 : vector<2x32xf32>
    %266 = math.tanh %265 : vector<2x32xf32>
    %cst_130 = arith.constant 1.000000e+00 : f32
    %267 = vector.broadcast %cst_130 : f32 to vector<2x32xf32>
    %268 = arith.subf %267, %261 : vector<2x32xf32>
    %269 = arith.mulf %268, %266 : vector<2x32xf32>
    %270 = arith.mulf %261, %188 : vector<2x32xf32>
    %271 = arith.addf %269, %270 : vector<2x32xf32>
    %c0_131 = arith.constant 0 : index
    %c0_132 = arith.constant 0 : index
    %272 = vector.load %arg17[%c0_131, %c0_132] : memref<32x16xf32, #tpu.memory_space<vmem>>, vector<32x16xf32>
    %cst_133 = arith.constant dense<0.000000e+00> : vector<2x16xf32>
    %273 = tpu.matmul %271, %272, %cst_133 {dimension_numbers = #tpu.dot_dimension_numbers<[1], [0], [0], [1], [0, 0, 1, 1], [], []>} : vector<2x32xf32>, vector<32x16xf32>, vector<2x16xf32> -> vector<2x16xf32>
    %274 = arith.addf %273, %241 : vector<2x16xf32>
    %275 = vector.shape_cast %274 : vector<2x16xf32> to vector<2x1x16xf32>
    %c0_134 = arith.constant 0 : index
    %c3 = arith.constant 3 : index
    %c0_135 = arith.constant 0 : index
    %276 = vector.load %arg18[%c0_134, %c3, %c0_135] : memref<2x6x16xf32, #tpu.memory_space<vmem>>, vector<2x1x16xf32>
    tpu.vector_store %arg18[%c0_134, %c3, %c0_135], %275 {strides = array<i32>} : memref<2x6x16xf32, #tpu.memory_space<vmem>>, vector<2x1x16xf32>,
    %c2_136 = arith.constant 2 : index
    %277 = memref.load %arg0[%c2_136] : memref<5xi32, #tpu.memory_space<smem>>
    %c1_i32_137 = arith.constant 1 : i32
    %278 = arith.cmpi eq, %277, %c1_i32_137 : i32
    %279 = arith.extui %278 : i1 to i32
    %c0_i32_138 = arith.constant 0 : i32
    %280 = arith.cmpi ne, %279, %c0_i32_138 : i32
    %281 = scf.if %280 -> (vector<2x16xf32>) {
      %443 = vector.extract_strided_slice %1 {offsets = [0, 3], sizes = [2, 1], strides = [1, 1]} : vector<2x6xi32> to vector<2x1xi32>
      %444 = vector.shape_cast %443 : vector<2x1xi32> to vector<2xi32>
      %445 = vector.shape_cast %444 : vector<2xi32> to vector<2x1xi32>
      %446 = vector.broadcast %445 : vector<2x1xi32> to vector<2x16xi32>
      %447 = arith.cmpi eq, %446, %0 : vector<2x16xi32>
      %448 = arith.extui %447 : vector<2x16xi1> to vector<2x16xi32>
      %449 = arith.sitofp %448 : vector<2x16xi32> to vector<2x16xf32>
      scf.yield %449 : vector<2x16xf32>
    } else {
      %cst_214 = arith.constant dense<0xFF800000> : vector<2xf32>
      %443 = vector.multi_reduction <maximumf>, %274, %cst_214 [1] : vector<2x16xf32> to vector<2xf32>
      %444 = vector.shape_cast %443 : vector<2xf32> to vector<2x1xf32>
      %445 = vector.broadcast %444 : vector<2x1xf32> to vector<2x16xf32>
      %446 = arith.cmpf oeq, %274, %445 : vector<2x16xf32>
      %c16_i32 = arith.constant 16 : i32
      %447 = vector.broadcast %c16_i32 : i32 to vector<2x16xi32>
      %448 = arith.select %446, %0, %447 : vector<2x16xi1>, vector<2x16xi32>
      %cst_215 = arith.constant dense<2147483647> : vector<2xi32>
      %449 = vector.multi_reduction <minsi>, %448, %cst_215 [1] : vector<2x16xi32> to vector<2xi32>
      %450 = vector.shape_cast %449 : vector<2xi32> to vector<2x1xi32>
      %451 = vector.broadcast %450 : vector<2x1xi32> to vector<2x16xi32>
      %452 = arith.cmpi eq, %0, %451 : vector<2x16xi32>
      %453 = arith.extui %452 : vector<2x16xi1> to vector<2x16xi32>
      %454 = arith.sitofp %453 : vector<2x16xi32> to vector<2x16xf32>
      scf.yield %454 : vector<2x16xf32>
    }
    %c0_139 = arith.constant 0 : index
    %c0_140 = arith.constant 0 : index
    %282 = vector.load %arg7[%c0_139, %c0_140] : memref<16x16xf32, #tpu.memory_space<vmem>>, vector<16x16xf32>
    %cst_141 = arith.constant dense<0.000000e+00> : vector<2x16xf32>
    %283 = tpu.matmul %281, %282, %cst_141 {dimension_numbers = #tpu.dot_dimension_numbers<[1], [0], [0], [1], [0, 0, 1, 1], [], []>} : vector<2x16xf32>, vector<16x16xf32>, vector<2x16xf32> -> vector<2x16xf32>
    %c0_142 = arith.constant 0 : index
    %c0_143 = arith.constant 0 : index
    %284 = vector.load %arg12[%c0_142, %c0_143] : memref<32x128xf32, #tpu.memory_space<vmem>>, vector<32x128xf32>
    %cst_144 = arith.constant dense<0.000000e+00> : vector<2x128xf32>
    %285 = tpu.matmul %271, %284, %cst_144 {dimension_numbers = #tpu.dot_dimension_numbers<[1], [0], [0], [1], [0, 0, 1, 1], [], []>} : vector<2x32xf32>, vector<32x128xf32>, vector<2x128xf32> -> vector<2x128xf32>
    %c0_145 = arith.constant 0 : index
    %c0_146 = arith.constant 0 : index
    %286 = vector.load %arg13[%c0_145, %c0_146] : memref<1x128xf32, #tpu.memory_space<vmem>>, vector<1x128xf32>
    %287 = vector.broadcast %286 : vector<1x128xf32> to vector<2x128xf32>
    %288 = arith.addf %285, %287 : vector<2x128xf32>
    %289 = vector.extract_strided_slice %288 {offsets = [0, 0], sizes = [2, 32], strides = [1, 1]} : vector<2x128xf32> to vector<2x32xf32>
    %290 = vector.extract_strided_slice %288 {offsets = [0, 32], sizes = [2, 96], strides = [1, 1]} : vector<2x128xf32> to vector<2x96xf32>
    %291 = vector.shape_cast %289 : vector<2x32xf32> to vector<2x1x32xf32>
    %292 = vector.broadcast %291 : vector<2x1x32xf32> to vector<2x16x32xf32>
    %293 = arith.addf %23, %292 : vector<2x16x32xf32>
    %294 = math.tanh %293 : vector<2x16x32xf32>
    %295 = vector.shape_cast %294 : vector<2x16x32xf32> to vector<32x32xf32>
    %c0_147 = arith.constant 0 : index
    %c0_148 = arith.constant 0 : index
    %296 = vector.load %arg10[%c0_147, %c0_148] : memref<32x1xf32, #tpu.memory_space<vmem>>, vector<32x1xf32>
    %cst_149 = arith.constant dense<0.000000e+00> : vector<32x1xf32>
    %297 = tpu.matmul %295, %296, %cst_149 {dimension_numbers = #tpu.dot_dimension_numbers<[1], [0], [0], [1], [0, 0, 1, 1], [], []>} : vector<32x32xf32>, vector<32x1xf32>, vector<32x1xf32> -> vector<32x1xf32>
    %c0_150 = arith.constant 0 : index
    %c0_151 = arith.constant 0 : index
    %298 = vector.load %arg11[%c0_150, %c0_151] : memref<1x1xf32, #tpu.memory_space<vmem>>, vector<1x1xf32>
    %299 = vector.broadcast %298 : vector<1x1xf32> to vector<32x1xf32>
    %300 = arith.addf %297, %299 : vector<32x1xf32>
    %301 = vector.shape_cast %300 : vector<32x1xf32> to vector<2x16x1xf32>
    %cst_152 = arith.constant dense<0xFF800000> : vector<2x1xf32>
    %302 = vector.multi_reduction <maximumf>, %301, %cst_152 [1] : vector<2x16x1xf32> to vector<2x1xf32>
    %303 = vector.shape_cast %302 : vector<2x1xf32> to vector<2x1x1xf32>
    %304 = vector.broadcast %303 : vector<2x1x1xf32> to vector<2x16x1xf32>
    %305 = arith.subf %301, %304 : vector<2x16x1xf32>
    %306 = math.exp %305 : vector<2x16x1xf32>
    %cst_153 = arith.constant dense<0.000000e+00> : vector<2x1xf32>
    %307 = vector.multi_reduction <add>, %306, %cst_153 [1] : vector<2x16x1xf32> to vector<2x1xf32>
    %308 = vector.shape_cast %307 : vector<2x1xf32> to vector<2x1x1xf32>
    %309 = tpu.reciprocal %308 {approx = true} : vector<2x1x1xf32> -> vector<2x1x1xf32>
    %310 = vector.broadcast %309 : vector<2x1x1xf32> to vector<2x16x1xf32>
    %311 = arith.mulf %306, %310 : vector<2x16x1xf32>
    %312 = vector.broadcast %311 : vector<2x16x1xf32> to vector<2x16x32xf32>
    %313 = arith.mulf %312, %9 : vector<2x16x32xf32>
    %cst_154 = arith.constant dense<0.000000e+00> : vector<2x32xf32>
    %314 = vector.multi_reduction <add>, %313, %cst_154 [1] : vector<2x16x32xf32> to vector<2x32xf32>
    %c0_155 = arith.constant 0 : index
    %c0_156 = arith.constant 0 : index
    %315 = vector.load %arg14[%c0_155, %c0_156] : memref<16x112xf32, #tpu.memory_space<vmem>>, vector<16x112xf32>
    %cst_157 = arith.constant dense<0.000000e+00> : vector<2x112xf32>
    %316 = tpu.matmul %283, %315, %cst_157 {dimension_numbers = #tpu.dot_dimension_numbers<[1], [0], [0], [1], [0, 0, 1, 1], [], []>} : vector<2x16xf32>, vector<16x112xf32>, vector<2x112xf32> -> vector<2x112xf32>
    %c0_158 = arith.constant 0 : index
    %c0_159 = arith.constant 0 : index
    %317 = vector.load %arg15[%c0_158, %c0_159] : memref<32x112xf32, #tpu.memory_space<vmem>>, vector<32x112xf32>
    %cst_160 = arith.constant dense<0.000000e+00> : vector<2x112xf32>
    %318 = tpu.matmul %314, %317, %cst_160 {dimension_numbers = #tpu.dot_dimension_numbers<[1], [0], [0], [1], [0, 0, 1, 1], [], []>} : vector<2x32xf32>, vector<32x112xf32>, vector<2x112xf32> -> vector<2x112xf32>
    %319 = arith.addf %316, %318 : vector<2x112xf32>
    %c0_161 = arith.constant 0 : index
    %c0_162 = arith.constant 0 : index
    %320 = vector.load %arg16[%c0_161, %c0_162] : memref<1x112xf32, #tpu.memory_space<vmem>>, vector<1x112xf32>
    %321 = vector.broadcast %320 : vector<1x112xf32> to vector<2x112xf32>
    %322 = arith.addf %319, %321 : vector<2x112xf32>
    %323 = vector.extract_strided_slice %322 {offsets = [0, 0], sizes = [2, 96], strides = [1, 1]} : vector<2x112xf32> to vector<2x96xf32>
    %324 = vector.extract_strided_slice %322 {offsets = [0, 96], sizes = [2, 16], strides = [1, 1]} : vector<2x112xf32> to vector<2x16xf32>
    %325 = vector.extract_strided_slice %323 {offsets = [0, 0], sizes = [2, 32], strides = [1, 1]} : vector<2x96xf32> to vector<2x32xf32>
    %326 = vector.extract_strided_slice %290 {offsets = [0, 0], sizes = [2, 32], strides = [1, 1]} : vector<2x96xf32> to vector<2x32xf32>
    %327 = arith.addf %325, %326 : vector<2x32xf32>
    %cst_163 = arith.constant 5.000000e-01 : f32
    %328 = vector.broadcast %cst_163 : f32 to vector<2x32xf32>
    %329 = arith.mulf %328, %327 : vector<2x32xf32>
    %330 = math.tanh %329 : vector<2x32xf32>
    %cst_164 = arith.constant 1.000000e+00 : f32
    %331 = vector.broadcast %cst_164 : f32 to vector<2x32xf32>
    %332 = arith.addf %330, %331 : vector<2x32xf32>
    %cst_165 = arith.constant 5.000000e-01 : f32
    %333 = vector.broadcast %cst_165 : f32 to vector<2x32xf32>
    %334 = arith.mulf %333, %332 : vector<2x32xf32>
    %335 = vector.extract_strided_slice %323 {offsets = [0, 32], sizes = [2, 32], strides = [1, 1]} : vector<2x96xf32> to vector<2x32xf32>
    %336 = vector.extract_strided_slice %290 {offsets = [0, 32], sizes = [2, 32], strides = [1, 1]} : vector<2x96xf32> to vector<2x32xf32>
    %337 = arith.addf %335, %336 : vector<2x32xf32>
    %cst_166 = arith.constant 5.000000e-01 : f32
    %338 = vector.broadcast %cst_166 : f32 to vector<2x32xf32>
    %339 = arith.mulf %338, %337 : vector<2x32xf32>
    %340 = math.tanh %339 : vector<2x32xf32>
    %cst_167 = arith.constant 1.000000e+00 : f32
    %341 = vector.broadcast %cst_167 : f32 to vector<2x32xf32>
    %342 = arith.addf %340, %341 : vector<2x32xf32>
    %cst_168 = arith.constant 5.000000e-01 : f32
    %343 = vector.broadcast %cst_168 : f32 to vector<2x32xf32>
    %344 = arith.mulf %343, %342 : vector<2x32xf32>
    %345 = vector.extract_strided_slice %323 {offsets = [0, 64], sizes = [2, 32], strides = [1, 1]} : vector<2x96xf32> to vector<2x32xf32>
    %346 = vector.extract_strided_slice %290 {offsets = [0, 64], sizes = [2, 32], strides = [1, 1]} : vector<2x96xf32> to vector<2x32xf32>
    %347 = arith.mulf %334, %346 : vector<2x32xf32>
    %348 = arith.addf %345, %347 : vector<2x32xf32>
    %349 = math.tanh %348 : vector<2x32xf32>
    %cst_169 = arith.constant 1.000000e+00 : f32
    %350 = vector.broadcast %cst_169 : f32 to vector<2x32xf32>
    %351 = arith.subf %350, %344 : vector<2x32xf32>
    %352 = arith.mulf %351, %349 : vector<2x32xf32>
    %353 = arith.mulf %344, %271 : vector<2x32xf32>
    %354 = arith.addf %352, %353 : vector<2x32xf32>
    %c0_170 = arith.constant 0 : index
    %c0_171 = arith.constant 0 : index
    %355 = vector.load %arg17[%c0_170, %c0_171] : memref<32x16xf32, #tpu.memory_space<vmem>>, vector<32x16xf32>
    %cst_172 = arith.constant dense<0.000000e+00> : vector<2x16xf32>
    %356 = tpu.matmul %354, %355, %cst_172 {dimension_numbers = #tpu.dot_dimension_numbers<[1], [0], [0], [1], [0, 0, 1, 1], [], []>} : vector<2x32xf32>, vector<32x16xf32>, vector<2x16xf32> -> vector<2x16xf32>
    %357 = arith.addf %356, %324 : vector<2x16xf32>
    %358 = vector.shape_cast %357 : vector<2x16xf32> to vector<2x1x16xf32>
    %c0_173 = arith.constant 0 : index
    %c4 = arith.constant 4 : index
    %c0_174 = arith.constant 0 : index
    %359 = vector.load %arg18[%c0_173, %c4, %c0_174] : memref<2x6x16xf32, #tpu.memory_space<vmem>>, vector<2x1x16xf32>
    tpu.vector_store %arg18[%c0_173, %c4, %c0_174], %358 {strides = array<i32>} : memref<2x6x16xf32, #tpu.memory_space<vmem>>, vector<2x1x16xf32>,
    %c3_175 = arith.constant 3 : index
    %360 = memref.load %arg0[%c3_175] : memref<5xi32, #tpu.memory_space<smem>>
    %c1_i32_176 = arith.constant 1 : i32
    %361 = arith.cmpi eq, %360, %c1_i32_176 : i32
    %362 = arith.extui %361 : i1 to i32
    %c0_i32_177 = arith.constant 0 : i32
    %363 = arith.cmpi ne, %362, %c0_i32_177 : i32
    %364 = scf.if %363 -> (vector<2x16xf32>) {
      %443 = vector.extract_strided_slice %1 {offsets = [0, 4], sizes = [2, 1], strides = [1, 1]} : vector<2x6xi32> to vector<2x1xi32>
      %444 = vector.shape_cast %443 : vector<2x1xi32> to vector<2xi32>
      %445 = vector.shape_cast %444 : vector<2xi32> to vector<2x1xi32>
      %446 = vector.broadcast %445 : vector<2x1xi32> to vector<2x16xi32>
      %447 = arith.cmpi eq, %446, %0 : vector<2x16xi32>
      %448 = arith.extui %447 : vector<2x16xi1> to vector<2x16xi32>
      %449 = arith.sitofp %448 : vector<2x16xi32> to vector<2x16xf32>
      scf.yield %449 : vector<2x16xf32>
    } else {
      %cst_214 = arith.constant dense<0xFF800000> : vector<2xf32>
      %443 = vector.multi_reduction <maximumf>, %357, %cst_214 [1] : vector<2x16xf32> to vector<2xf32>
      %444 = vector.shape_cast %443 : vector<2xf32> to vector<2x1xf32>
      %445 = vector.broadcast %444 : vector<2x1xf32> to vector<2x16xf32>
      %446 = arith.cmpf oeq, %357, %445 : vector<2x16xf32>
      %c16_i32 = arith.constant 16 : i32
      %447 = vector.broadcast %c16_i32 : i32 to vector<2x16xi32>
      %448 = arith.select %446, %0, %447 : vector<2x16xi1>, vector<2x16xi32>
      %cst_215 = arith.constant dense<2147483647> : vector<2xi32>
      %449 = vector.multi_reduction <minsi>, %448, %cst_215 [1] : vector<2x16xi32> to vector<2xi32>
      %450 = vector.shape_cast %449 : vector<2xi32> to vector<2x1xi32>
      %451 = vector.broadcast %450 : vector<2x1xi32> to vector<2x16xi32>
      %452 = arith.cmpi eq, %0, %451 : vector<2x16xi32>
      %453 = arith.extui %452 : vector<2x16xi1> to vector<2x16xi32>
      %454 = arith.sitofp %453 : vector<2x16xi32> to vector<2x16xf32>
      scf.yield %454 : vector<2x16xf32>
    }
    %c0_178 = arith.constant 0 : index
    %c0_179 = arith.constant 0 : index
    %365 = vector.load %arg7[%c0_178, %c0_179] : memref<16x16xf32, #tpu.memory_space<vmem>>, vector<16x16xf32>
    %cst_180 = arith.constant dense<0.000000e+00> : vector<2x16xf32>
    %366 = tpu.matmul %364, %365, %cst_180 {dimension_numbers = #tpu.dot_dimension_numbers<[1], [0], [0], [1], [0, 0, 1, 1], [], []>} : vector<2x16xf32>, vector<16x16xf32>, vector<2x16xf32> -> vector<2x16xf32>
    %c0_181 = arith.constant 0 : index
    %c0_182 = arith.constant 0 : index
    %367 = vector.load %arg12[%c0_181, %c0_182] : memref<32x128xf32, #tpu.memory_space<vmem>>, vector<32x128xf32>
    %cst_183 = arith.constant dense<0.000000e+00> : vector<2x128xf32>
    %368 = tpu.matmul %354, %367, %cst_183 {dimension_numbers = #tpu.dot_dimension_numbers<[1], [0], [0], [1], [0, 0, 1, 1], [], []>} : vector<2x32xf32>, vector<32x128xf32>, vector<2x128xf32> -> vector<2x128xf32>
    %c0_184 = arith.constant 0 : index
    %c0_185 = arith.constant 0 : index
    %369 = vector.load %arg13[%c0_184, %c0_185] : memref<1x128xf32, #tpu.memory_space<vmem>>, vector<1x128xf32>
    %370 = vector.broadcast %369 : vector<1x128xf32> to vector<2x128xf32>
    %371 = arith.addf %368, %370 : vector<2x128xf32>
    %372 = vector.extract_strided_slice %371 {offsets = [0, 0], sizes = [2, 32], strides = [1, 1]} : vector<2x128xf32> to vector<2x32xf32>
    %373 = vector.extract_strided_slice %371 {offsets = [0, 32], sizes = [2, 96], strides = [1, 1]} : vector<2x128xf32> to vector<2x96xf32>
    %374 = vector.shape_cast %372 : vector<2x32xf32> to vector<2x1x32xf32>
    %375 = vector.broadcast %374 : vector<2x1x32xf32> to vector<2x16x32xf32>
    %376 = arith.addf %23, %375 : vector<2x16x32xf32>
    %377 = math.tanh %376 : vector<2x16x32xf32>
    %378 = vector.shape_cast %377 : vector<2x16x32xf32> to vector<32x32xf32>
    %c0_186 = arith.constant 0 : index
    %c0_187 = arith.constant 0 : index
    %379 = vector.load %arg10[%c0_186, %c0_187] : memref<32x1xf32, #tpu.memory_space<vmem>>, vector<32x1xf32>
    %cst_188 = arith.constant dense<0.000000e+00> : vector<32x1xf32>
    %380 = tpu.matmul %378, %379, %cst_188 {dimension_numbers = #tpu.dot_dimension_numbers<[1], [0], [0], [1], [0, 0, 1, 1], [], []>} : vector<32x32xf32>, vector<32x1xf32>, vector<32x1xf32> -> vector<32x1xf32>
    %c0_189 = arith.constant 0 : index
    %c0_190 = arith.constant 0 : index
    %381 = vector.load %arg11[%c0_189, %c0_190] : memref<1x1xf32, #tpu.memory_space<vmem>>, vector<1x1xf32>
    %382 = vector.broadcast %381 : vector<1x1xf32> to vector<32x1xf32>
    %383 = arith.addf %380, %382 : vector<32x1xf32>
    %384 = vector.shape_cast %383 : vector<32x1xf32> to vector<2x16x1xf32>
    %cst_191 = arith.constant dense<0xFF800000> : vector<2x1xf32>
    %385 = vector.multi_reduction <maximumf>, %384, %cst_191 [1] : vector<2x16x1xf32> to vector<2x1xf32>
    %386 = vector.shape_cast %385 : vector<2x1xf32> to vector<2x1x1xf32>
    %387 = vector.broadcast %386 : vector<2x1x1xf32> to vector<2x16x1xf32>
    %388 = arith.subf %384, %387 : vector<2x16x1xf32>
    %389 = math.exp %388 : vector<2x16x1xf32>
    %cst_192 = arith.constant dense<0.000000e+00> : vector<2x1xf32>
    %390 = vector.multi_reduction <add>, %389, %cst_192 [1] : vector<2x16x1xf32> to vector<2x1xf32>
    %391 = vector.shape_cast %390 : vector<2x1xf32> to vector<2x1x1xf32>
    %392 = tpu.reciprocal %391 {approx = true} : vector<2x1x1xf32> -> vector<2x1x1xf32>
    %393 = vector.broadcast %392 : vector<2x1x1xf32> to vector<2x16x1xf32>
    %394 = arith.mulf %389, %393 : vector<2x16x1xf32>
    %395 = vector.broadcast %394 : vector<2x16x1xf32> to vector<2x16x32xf32>
    %396 = arith.mulf %395, %9 : vector<2x16x32xf32>
    %cst_193 = arith.constant dense<0.000000e+00> : vector<2x32xf32>
    %397 = vector.multi_reduction <add>, %396, %cst_193 [1] : vector<2x16x32xf32> to vector<2x32xf32>
    %c0_194 = arith.constant 0 : index
    %c0_195 = arith.constant 0 : index
    %398 = vector.load %arg14[%c0_194, %c0_195] : memref<16x112xf32, #tpu.memory_space<vmem>>, vector<16x112xf32>
    %cst_196 = arith.constant dense<0.000000e+00> : vector<2x112xf32>
    %399 = tpu.matmul %366, %398, %cst_196 {dimension_numbers = #tpu.dot_dimension_numbers<[1], [0], [0], [1], [0, 0, 1, 1], [], []>} : vector<2x16xf32>, vector<16x112xf32>, vector<2x112xf32> -> vector<2x112xf32>
    %c0_197 = arith.constant 0 : index
    %c0_198 = arith.constant 0 : index
    %400 = vector.load %arg15[%c0_197, %c0_198] : memref<32x112xf32, #tpu.memory_space<vmem>>, vector<32x112xf32>
    %cst_199 = arith.constant dense<0.000000e+00> : vector<2x112xf32>
    %401 = tpu.matmul %397, %400, %cst_199 {dimension_numbers = #tpu.dot_dimension_numbers<[1], [0], [0], [1], [0, 0, 1, 1], [], []>} : vector<2x32xf32>, vector<32x112xf32>, vector<2x112xf32> -> vector<2x112xf32>
    %402 = arith.addf %399, %401 : vector<2x112xf32>
    %c0_200 = arith.constant 0 : index
    %c0_201 = arith.constant 0 : index
    %403 = vector.load %arg16[%c0_200, %c0_201] : memref<1x112xf32, #tpu.memory_space<vmem>>, vector<1x112xf32>
    %404 = vector.broadcast %403 : vector<1x112xf32> to vector<2x112xf32>
    %405 = arith.addf %402, %404 : vector<2x112xf32>
    %406 = vector.extract_strided_slice %405 {offsets = [0, 0], sizes = [2, 96], strides = [1, 1]} : vector<2x112xf32> to vector<2x96xf32>
    %407 = vector.extract_strided_slice %405 {offsets = [0, 96], sizes = [2, 16], strides = [1, 1]} : vector<2x112xf32> to vector<2x16xf32>
    %408 = vector.extract_strided_slice %406 {offsets = [0, 0], sizes = [2, 32], strides = [1, 1]} : vector<2x96xf32> to vector<2x32xf32>
    %409 = vector.extract_strided_slice %373 {offsets = [0, 0], sizes = [2, 32], strides = [1, 1]} : vector<2x96xf32> to vector<2x32xf32>
    %410 = arith.addf %408, %409 : vector<2x32xf32>
    %cst_202 = arith.constant 5.000000e-01 : f32
    %411 = vector.broadcast %cst_202 : f32 to vector<2x32xf32>
    %412 = arith.mulf %411, %410 : vector<2x32xf32>
    %413 = math.tanh %412 : vector<2x32xf32>
    %cst_203 = arith.constant 1.000000e+00 : f32
    %414 = vector.broadcast %cst_203 : f32 to vector<2x32xf32>
    %415 = arith.addf %413, %414 : vector<2x32xf32>
    %cst_204 = arith.constant 5.000000e-01 : f32
    %416 = vector.broadcast %cst_204 : f32 to vector<2x32xf32>
    %417 = arith.mulf %416, %415 : vector<2x32xf32>
    %418 = vector.extract_strided_slice %406 {offsets = [0, 32], sizes = [2, 32], strides = [1, 1]} : vector<2x96xf32> to vector<2x32xf32>
    %419 = vector.extract_strided_slice %373 {offsets = [0, 32], sizes = [2, 32], strides = [1, 1]} : vector<2x96xf32> to vector<2x32xf32>
    %420 = arith.addf %418, %419 : vector<2x32xf32>
    %cst_205 = arith.constant 5.000000e-01 : f32
    %421 = vector.broadcast %cst_205 : f32 to vector<2x32xf32>
    %422 = arith.mulf %421, %420 : vector<2x32xf32>
    %423 = math.tanh %422 : vector<2x32xf32>
    %cst_206 = arith.constant 1.000000e+00 : f32
    %424 = vector.broadcast %cst_206 : f32 to vector<2x32xf32>
    %425 = arith.addf %423, %424 : vector<2x32xf32>
    %cst_207 = arith.constant 5.000000e-01 : f32
    %426 = vector.broadcast %cst_207 : f32 to vector<2x32xf32>
    %427 = arith.mulf %426, %425 : vector<2x32xf32>
    %428 = vector.extract_strided_slice %406 {offsets = [0, 64], sizes = [2, 32], strides = [1, 1]} : vector<2x96xf32> to vector<2x32xf32>
    %429 = vector.extract_strided_slice %373 {offsets = [0, 64], sizes = [2, 32], strides = [1, 1]} : vector<2x96xf32> to vector<2x32xf32>
    %430 = arith.mulf %417, %429 : vector<2x32xf32>
    %431 = arith.addf %428, %430 : vector<2x32xf32>
    %432 = math.tanh %431 : vector<2x32xf32>
    %cst_208 = arith.constant 1.000000e+00 : f32
    %433 = vector.broadcast %cst_208 : f32 to vector<2x32xf32>
    %434 = arith.subf %433, %427 : vector<2x32xf32>
    %435 = arith.mulf %434, %432 : vector<2x32xf32>
    %436 = arith.mulf %427, %354 : vector<2x32xf32>
    %437 = arith.addf %435, %436 : vector<2x32xf32>
    %c0_209 = arith.constant 0 : index
    %c0_210 = arith.constant 0 : index
    %438 = vector.load %arg17[%c0_209, %c0_210] : memref<32x16xf32, #tpu.memory_space<vmem>>, vector<32x16xf32>
    %cst_211 = arith.constant dense<0.000000e+00> : vector<2x16xf32>
    %439 = tpu.matmul %437, %438, %cst_211 {dimension_numbers = #tpu.dot_dimension_numbers<[1], [0], [0], [1], [0, 0, 1, 1], [], []>} : vector<2x32xf32>, vector<32x16xf32>, vector<2x16xf32> -> vector<2x16xf32>
    %440 = arith.addf %439, %407 : vector<2x16xf32>
    %441 = vector.shape_cast %440 : vector<2x16xf32> to vector<2x1x16xf32>
    %c0_212 = arith.constant 0 : index
    %c5 = arith.constant 5 : index
    %c0_213 = arith.constant 0 : index
    %442 = vector.load %arg18[%c0_212, %c5, %c0_213] : memref<2x6x16xf32, #tpu.memory_space<vmem>>, vector<2x1x16xf32>
    tpu.vector_store %arg18[%c0_212, %c5, %c0_213], %441 {strides = array<i32>} : memref<2x6x16xf32, #tpu.memory_space<vmem>>, vector<2x1x16xf32>,
    return
  }
}

</mosaic_0001>

<bundles_post_ra>
// kernel: tpu_custom_call.1
= control target key start
LH: loop header
LB: loop body
LE: loop exit
PB: predicated region body
PF: predicated region fallthrough
CT: control target
= control target key end

     0   :  { %s3357_s0 = inlined_call_operand.hbm [shape: s32[5], index: 0, kind: input, shape index: {}]   ;;  %s3358_s1 = inlined_call_operand.vmem [shape: s32[2,6], index: 1, kind: input, shape index: {}]   ;;  %s3359_s2 = inlined_call_operand.vmem [shape: f32[2,16,48], index: 2, kind: input, shape index: {}]   ;;  %s3360_s3 = inlined_call_operand.vmem [shape: f32[48,32], index: 3, kind: input, shape index: {}]   ;;  %s3361_s4 = inlined_call_operand.vmem [shape: f32[1,32], index: 4, kind: input, shape index: {}]   ;;  %s3362_s5 = inlined_call_operand.vmem [shape: f32[32,32], index: 5, kind: input, shape index: {}]   ;;  %s3363_s6 = inlined_call_operand.vmem [shape: f32[1,32], index: 6, kind: input, shape index: {}]   ;;  %s3364_s7 = inlined_call_operand.vmem [shape: f32[16,16], index: 7, kind: input, shape index: {}]   ;;  %s3365_s8 = inlined_call_operand.vmem [shape: f32[32,32], index: 8, kind: input, shape index: {}]   ;;  %s3366_s9 = inlined_call_operand.vmem [shape: f32[1,32], index: 9, kind: input, shape index: {}]   ;;  %s3367_s10 = inlined_call_operand.vmem [shape: f32[32,1], index: 10, kind: input, shape index: {}]   ;;  %s3368_s11 = inlined_call_operand.<no memory space> [shape: f32[1,1], index: 11, kind: input, shape index: {}]   ;;  %s3369_s12 = inlined_call_operand.hbm [shape: f32[32,128], index: 12, kind: input, shape index: {}]   ;;  %s3370_s13 = inlined_call_operand.vmem [shape: f32[1,128], index: 13, kind: input, shape index: {}]   ;;  %s3371_s14 = inlined_call_operand.hbm [shape: f32[16,112], index: 14, kind: input, shape index: {}]   ;;  %s3372_s15 = inlined_call_operand.hbm [shape: f32[32,112], index: 15, kind: input, shape index: {}]   ;;  %s3373_s16 = inlined_call_operand.vmem [shape: f32[1,112], index: 16, kind: input, shape index: {}]   ;;  %s3374_s17 = inlined_call_operand.vmem [shape: f32[32,16], index: 17, kind: input, shape index: {}]   ;;  %s3375_s18 = inlined_call_operand.vmem [shape: f32[2,6,16], index: 18, kind: output, shape index: {}]  }
   0x1   :  { %3377 = sst [smem:[#allocation13_spill]] %s3357_s0  ;;  %v23_v0 = vstv %s3368_s11 }
   0x2   :  { %3378 = sst [smem:[#allocation14_spill]] %s3358_s1  ;;  %24 = vst [vmem:[#allocation2] sm:$0x1] %v23_v0 }
   0x3   :  { %3379 = sst [smem:[#allocation15_spill]] %s3359_s2 }
   0x4   :  { %25 = vsyncpa [#allocation5], 0 }
   0x5   :  { %26 = vsyncpa [#allocation4], 0 }
   0x6   :  { %27 = vsyncpa [#allocation8], 0  ;;  %s78_s0 = sshll.u32 %s3371_s14, 4  ;;  %s2622_s19 = smov [#allocation7]   ;;  %s79_s0 = int_to_ptr.hbm [resolvable:$true] %s78_s0 }
   0x7   :  { %s80_s1 = sshll.u32 %s2622_s19, 4  ;;  %s3380_s22 = sld [smem:[#allocation13_spill]]  ;;  %s81_s1 = int_to_ptr.vmem [resolvable:$true] %s80_s1 }
   0x8   :  { %s2623_s23 = smov 128   ;;  %s2624_s24 = smov 8  }
   0x9   :  { %86 = dma.hbm_to_vmem [thread:$0]  %s79_s0, 256, %s81_s1, [#allocation8], %s2623_s23, %s2623_s23, %s2624_s24  }
   0xa   :  { %s2625_s11 = smov [#allocation3]   ;;  %s63_s27 = sshll.u32 %s3369_s12, 4  ;;  %s64_s27 = int_to_ptr.hbm [resolvable:$true] %s63_s27 }
   0xb   :  { %s2626_s14 = smov [#allocation6]   ;;  %s91_s19 = sshll.u32 %s3372_s15, 4  ;;  %s92_s19 = int_to_ptr.hbm [resolvable:$true] %s91_s19 }
   0xc   :  { %s65_s28 = sshll.u32 %s2626_s14, 4  ;;  %s2627_s20 = smov [#allocation9]   ;;  %s66_s28 = int_to_ptr.vmem [resolvable:$true] %s65_s28 }
   0xd   :  { %s33_s2 = sshll.u32 %s3380_s22, 4  ;;  %s93_s21 = sshll.u32 %s2627_s20, 4  ;;  %s34_s2 = int_to_ptr.hbm [resolvable:$true] %s33_s2  ;;  %s94_s21 = int_to_ptr.vmem [resolvable:$true] %s93_s21 }
   0xe   :  { %36 = dma.hbm_to_smem %s34_s2, 16, %s2625_s11, [#allocation5]  }
   0xf   :  { %71 = dma.hbm_to_vmem [thread:$0]  %s64_s27, 512, %s66_s28, [#allocation4], %s2623_s23, %s2623_s23, %s2624_s24  }
  0x10   :  { %99 = dma.hbm_to_vmem [thread:$0]  %s92_s19, 512, %s94_s21, [#allocation8], %s2623_s23, %s2623_s23, %s2624_s24  }
  0x11   :  { %2584 = dma.done.wait [#allocation5], 16  }
  0x12   :  { %2585 = vsyncadd [#allocation5], 4294967280 }
  0x13   :  { %2586 = dma.done.wait [#allocation4], 512  }
  0x14   :  { %2587 = vsyncadd [#allocation4], 4294966784 }
  0x15   :  { %2588 = dma.done.wait [#allocation8], 768  }
  0x16   :  { %2589 = vsyncadd [#allocation8], 4294966528 }
  0x17   :  { %120 = sfence }
  0x18   :  { %v133_v1 = vld [vmem:[%s3360_s3 + $0x28] sm:$0xff]  ;;  %v132_v2 = vld [vmem:[%s3360_s3 + $0x20] sm:$0xff]  ;;  %v131_v3 = vld [vmem:[%s3360_s3 + $0x18] sm:$0xff]  ;;  %s3381_s21 = sld [smem:[#allocation15_spill]]  ;;  %vm138_vm0 = vcmask 392192   ;;  %vm180_vm1 = vcmask 261120   ;;  %v121_v60 = vlaneseq }
  0x19   :  { %161 = vmatpush.msra.mxu0 %v133_v1  ;;  %v130_v4 = vld [vmem:[%s3360_s3 + $0x10] sm:$0xff]  ;;  %v245_v5 = vld [vmem:[%s3365_s8 + $0x18] sm:$0xff]  ;;  %v129_v7 = vld [vmem:[%s3360_s3 + $0x8] sm:$0xff]  ;;  %s3382_s12 = sld [smem:[#allocation14_spill]]  ;;  %v2628_v28 = vmov 16.0   ;;  %v2629_v29 = vmov 0  }
  0x1a   :  { %v244_v6 = vld [vmem:[%s3365_s8 + $0x10] sm:$0xff]  ;;  %274 = vmatpush.msra.mxu2 %v245_v5  ;;  %2221 = vmatpush.msra.mxu3 %v245_v5  ;;  %v128_v8 = vld [vmem:[%s3360_s3] sm:$0xff]  ;;  %v243_v13 = vld [vmem:[%s3365_s8 + $0x8] sm:$0xff]  ;;  %2322 = vrcp.f32 %v2628_v28  ;;  %vm218_vm3 = vcmask 1041409   ;;  %vm291_vm4 = vcmask 128000   ;;  %v2630_v62 = vmov 0.0  }
  0x1b   :  { %162 = vmatpush.msra.mxu0 %v132_v2  ;;  %v242_v14 = vld [vmem:[%s3365_s8] sm:$0xff]  ;;  %v211_v18 = vld [vmem:[%s3362_s5 + $0x18] sm:$0xff]  ;;  %v210_v19 = vld [vmem:[%s3362_s5 + $0x10] sm:$0xff]  ;;  %2313 = vset.pattern.permute.xlu0 %v2629_v29  ;;  %292 = vst.msk [vmem:[%s3375_s18] sm:$0x3f] %vm291_vm4, %v2630_v62  ;;  %v2860_v1 = vand.u32 127, %v121_v60 }
  0x1c   :  { %275 = vmatpush.msra.mxu2 %v244_v6  ;;  %2222 = vmatpush.msra.mxu3 %v244_v6  ;;  %v2316_v15 = vld [vmem:[%s3361_s4] ss:$0 sm:$0xff]  ;;  %v209_v20 = vld [vmem:[%s3362_s5 + $0x8] sm:$0xff]  ;;  %v328_v63 = vld [vmem:[#allocation6 + $0x10] sm:$0xff]  ;;  %293 = vst.msk [vmem:[%s3375_s18 + $0x8] sm:$0x3f] %vm291_vm4, %v2630_v62 }
  0x1d   :  { %163 = vmatpush.msra.mxu0 %v131_v3  ;;  %234 = vmatpush.msra.mxu1 %v211_v18  ;;  %v208_v22 = vld [vmem:[%s3362_s5] sm:$0xff]  ;;  %v301_v58 = vld [vmem:[%s3364_s7 + $0x8] sm:$0xff]  ;;  %vm302_vm5 = vcmask 130048   ;;  %vm420_vm7 = vcmask 7168   ;;  %s2633_s0 = smov 64   ;;  %s644_s25 = sld [smem:[#allocation3]] }
  0x1e   :  { %v124_v9 = vld [vmem:[%s3381_s21] sm:$0xff]  ;;  %v125_v10 = vld [vmem:[%s3381_s21 + $0x8] sm:$0xff]  ;;  %v126_v11 = vld [vmem:[%s3381_s21 + $0x10] sm:$0xff]  ;;  %276 = vmatpush.msra.mxu2 %v243_v13  ;;  %2223 = vmatpush.msra.mxu3 %v243_v13  ;;  %vm641_vm8 = vcmask 122880  }
  0x1f   :  { %164 = vmatpush.msra.mxu0 %v130_v4  ;;  %v127_v12 = vld [vmem:[%s3381_s21 + $0x18] sm:$0xff]  ;;  %235 = vmatpush.msra.mxu1 %v210_v19  ;;  %v2828_v26 = vld [vmem:[%s3382_s12] sm:$0x3]  ;;  %v327_v2 = vld [vmem:[#allocation6 + $0x8] sm:$0xff]  ;;  %s2632_s21 = smov 96  }
  0x20   :  { %277 = vmatpush.msra.mxu2 %v242_v14  ;;  %2224 = vmatpush.msra.mxu3 %v242_v14  ;;  %v2323_v33 = vpop.eup %2322  ;;  %v300_v59 = vld [vmem:[%s3364_s7] sm:$0xff] }
  0x21   :  { %165 = vmatpush.msra.mxu0 %v129_v7  ;;  %236 = vmatpush.msra.mxu1 %v209_v20  ;;  %v200_v35 = vmul.f32 16.0, %v2323_v33  ;;  %vm204_vm2 = vweird.f32 %v2323_v33  ;;  %v329_v61 = vld [vmem:[#allocation6 + $0x18] sm:$0xff]  ;;  %v326_v4 = vld [vmem:[#allocation6] sm:$0xff] }
  0x22   :  { %2314 = vset.pattern.permute.xlu1 %v2629_v29  ;;  %295 = vperm.xlu0 %2313, %v2828_v26   ;;  %v2318_v5 = vld [vmem:[%s3363_s6] ss:$0 sm:$0xff] }
  0x23   :  { %166 = vmatpush.msra.mxu0 %v128_v8  ;;  %237 = vmatpush.msra.mxu1 %v208_v22  ;;  %v201_v41 = vsub.f32 1.0, %v200_v35  ;;  %v374_v8 = vld [vmem:[%s3367_s10 + $0x18] sm:$0xff]  ;;  %p645_p0 = scmp.eq.s32.totalorder %s644_s25, 1  ;;  %p2170_p1 = scmp.ne.s32.totalorder %s644_s25, 1 }
  0x24   :  { %2151 = vmatmul.msk.f32.vlgmr.msra.gmra.mxu0 %vm138_vm0, %v124_v9  ;;  %2315 = vset.pattern.permute.xlu2 %v2629_v29  ;;  %v373_v9 = vld [vmem:[%s3367_s10 + $0x10] sm:$0xff] }
  0x25   :  { %v202_v45 = vmul.f32 %v2323_v33, %v201_v41  ;;  %320 = vmatpush.msrb.mxu3 %v301_v58  ;;  %403 = vmatpush.msrb.mxu1 %v374_v8 }
  0x27   :  { %v203_v49 = vadd.f32 %v2323_v33, %v202_v45  ;;  %321 = vmatpush.msrb.mxu3 %v300_v59  ;;  %404 = vmatpush.msrb.mxu1 %v373_v9 }
  0x29   :  { %v205_v53 = vsel %vm204_vm2, %v2323_v33, %v203_v49 }
  0x2c   :  { %2152 = vmatmul.msk.f32.gmra.mxu0 %vm138_vm0, %v125_v10  ;;  %v372_v10 = vld [vmem:[%s3367_s10 + $0x8] sm:$0xff] }
  0x2d   :  { %405 = vmatpush.msrb.mxu1 %v372_v10 }
  0x34   :  { %2153 = vmatmul.msk.f32.gmra.mxu0 %vm138_vm0, %v126_v11  ;;  %v371_v11 = vld [vmem:[%s3367_s10] sm:$0xff] }
  0x35   :  { %406 = vmatpush.msrb.mxu1 %v371_v11 }
  0x3c   :  { %2154 = vmatmul.msk.f32.gmra.mxu0 %vm138_vm0, %v127_v12 }
  0x94   :  { %v296_v0 = vpop.permute.xlu0 %295 }
  0x95   :  { %vm297_vm6 = vcmp.eq.s32.totalorder %v296_v0, %v2860_v1 }
  0x96   :  { %v2160_v3 = vsel %vm297_vm6, 1.0, %v2630_v62 }
  0xa1   :  { %v168_v16 = vpop.f32.mrf.mxu0 }
  0xa2   :  { %v2801_v17 = vadd.f32 %v2316_v15, %v168_v16  ;;  %v2317_v16 = vld [vmem:[%s3366_s9] ss:$0 sm:$0xff]  ;;  %s2631_s9 = smov 32  }
  0xa4   :  { %2156 = vmatmul.msk.f32.vlgmr.msra.gmra.mxu2 %vm180_vm1, %v2801_v17  ;;  %v181_v25 = vsel %vm180_vm1, %v2801_v17, 0.0 }
  0xa9   :  { %v171_v21 = vpop.f32.mrf.mxu0 }
  0xaa   :  { %v2817_v23 = vadd.f32 %v2316_v15, %v171_v21 }
  0xac   :  { %v182_v24 = vsel %vm180_vm1, %v2817_v23, 0.0  ;;  %2157 = vmatmul.msk.f32.gmra.mxu2 %vm180_vm1, %v2817_v23 }
  0xad   :  { %v183_v27 = vadd.f32 %v182_v24, %v181_v25 }
  0xaf   :  { %v184_v32 = vrot.slane %v183_v27, 4 }
  0xb1   :  { %v174_v30 = vpop.f32.mrf.mxu0  ;;  %v185_v34 = vadd.f32 %v184_v32, %v183_v27 }
  0xb2   :  { %v2834_v31 = vadd.f32 %v2316_v15, %v174_v30 }
  0xb3   :  { %v186_v38 = vrot.slane %v185_v34, 2 }
  0xb4   :  { %2158 = vmatmul.msk.f32.gmra.mxu2 %vm180_vm1, %v2834_v31  ;;  %v190_v39 = vsel %vm180_vm1, %v2834_v31, 0.0 }
  0xb5   :  { %v187_v43 = vadd.f32 %v186_v38, %v185_v34 }
  0xb7   :  { %v188_v48 = vrot.slane %v187_v43, 1 }
  0xb9   :  { %v177_v36 = vpop.f32.mrf.mxu0  ;;  %v189_v51 = vadd.f32 %v188_v48, %v187_v43  ;;  %v2320_v43 = vld [vmem:[#allocation2] ss:$0 sm:$0xff] }
  0xba   :  { %v2838_v37 = vadd.f32 %v2316_v15, %v177_v36  ;;  %v2319_v15 = vld [vmem:[%s3370_s13] ss:$0 sm:$0xff] }
  0xbb   :  { %v206_v55 = vmul.f32 %v205_v53, %v189_v51 }
  0xbc   :  { %v191_v40 = vsel %vm180_vm1, %v2838_v37, 0.0  ;;  %2159 = vmatmul.msk.f32.vlgmr.msra.gmra.mxu3 %vm180_vm1, %v2838_v37 }
  0xbd   :  { %v192_v42 = vadd.f32 %v191_v40, %v190_v39  ;;  %349 = vmatpush.msra.mxu3 %v329_v61 }
  0xbf   :  { %v193_v44 = vrot.slane %v192_v42, 4  ;;  %350 = vmatpush.msra.mxu3 %v328_v63 }
  0xc1   :  { %v194_v46 = vadd.f32 %v193_v44, %v192_v42  ;;  %351 = vmatpush.msra.mxu3 %v327_v2 }
  0xc3   :  { %v195_v47 = vrot.slane %v194_v46, 2  ;;  %352 = vmatpush.msra.mxu3 %v326_v4 }
  0xc4   :  { %2161 = vmatmul.msk.f32.vlgmr.msrb.gmra.mxu3 %vm302_vm5, %v2160_v3 }
  0xc5   :  { %v196_v50 = vadd.f32 %v195_v47, %v194_v46 }
  0xc7   :  { %v197_v52 = vrot.slane %v196_v50, 1 }
  0xc9   :  { %v198_v54 = vadd.f32 %v197_v52, %v196_v50 }
  0xcb   :  { %v207_v56 = vmul.f32 %v205_v53, %v198_v54 }
  0xcd   :  { %v219_v57 = vsel %vm218_vm3, %v207_v56, %v206_v55 }
  0xce   :  { %2155 = vmatmul.msk.f32.vlgmr.msra.gmra.mxu1 %vm180_vm1, %v219_v57 }
 0x127   :  { %v279_v14 = vpop.f32.mrf.mxu2 }
 0x128   :  { %v2893_v20 = vadd.f32 %v2317_v16, %v279_v14 }
 0x12f   :  { %v282_v22 = vpop.f32.mrf.mxu2 }
 0x130   :  { %v2897_v25 = vadd.f32 %v2317_v16, %v282_v22 }
 0x137   :  { %v285_v32 = vpop.f32.mrf.mxu2 }
 0x138   :  { %v2902_v34 = vadd.f32 %v2317_v16, %v285_v32 }
 0x13f   :  { %v288_v12 = vpop.f32.mrf.mxu3 }
 0x140   :  { %v2906_v38 = vadd.f32 %v2317_v16, %v288_v12 }
 0x147   :  { %v2883_v13 = vpop.f32.mrf.mxu3 }
 0x14b   :  { %v239_v6 = vpop.f32.mrf.mxu1 }
 0x14c   :  { %v2867_v7 = vadd.f32 %v2318_v5, %v239_v6 }
 0x14e   :  { %2162 = vmatmul.msk.f32.vlgmr.msra.gmra.mxu3 %vm180_vm1, %v2867_v7 }
 0x1d1   :  { %v354_v18 = vpop.f32.mrf.mxu3 }
 0x1d2   :  { %v2891_v19 = vadd.f32 %v2319_v15, %v354_v18 }
 0x1d4   :  { %v359_v21 = vperm.slane %v2891_v19, 0  ;;  %v358_v27 = vrot.slane %v2891_v19, 1 }
 0x1d6   :  { %v363_v24 = vadd.f32 %v359_v21, %v2893_v20  ;;  %v364_v28 = vadd.f32 %v359_v21, %v2897_v25  ;;  %v360_v33 = vperm.slane %v358_v27, 0 }
 0x1d8   :  { %2324 = vtanh.f32 %v363_v24  ;;  %v365_v35 = vadd.f32 %v360_v33, %v2902_v34  ;;  %v366_v39 = vadd.f32 %v360_v33, %v2906_v38 }
 0x1d9   :  { %2326 = vtanh.f32 %v364_v28 }
 0x1da   :  { %2328 = vtanh.f32 %v365_v35 }
 0x1db   :  { %2330 = vtanh.f32 %v366_v39 }
 0x1de   :  { %v2325_v30 = vpop.eup %2324 }
 0x1df   :  { %2163 = vmatmul.msk.f32.vlgmr.msrb.gmra.mxu1 %vm180_vm1, %v2325_v30  ;;  %v2327_v36 = vpop.eup %2326 }
 0x1e0   :  { %v2329_v40 = vpop.eup %2328 }
 0x1e1   :  { %v2331_v41 = vpop.eup %2330 }
 0x1e7   :  { %2164 = vmatmul.msk.f32.gmra.mxu1 %vm180_vm1, %v2327_v36 }
 0x1ef   :  { %2165 = vmatmul.msk.f32.gmra.mxu1 %vm180_vm1, %v2329_v40 }
 0x1f7   :  { %2166 = vmatmul.msk.f32.gmra.mxu1 %vm180_vm1, %v2331_v41 }
 0x25c   :  { %v408_v42 = vpop.f32.mrf.mxu1 }
 0x25d   :  { %v409_v44 = vadd.f32 %v2320_v43, %v408_v42 }
 0x25f   :  { %v421_v47 = vsel %vm420_vm7, %v409_v44, -inf }
 0x264   :  { %v411_v45 = vpop.f32.mrf.mxu1 }
 0x265   :  { %v412_v46 = vadd.f32 %v2320_v43, %v411_v45 }
 0x267   :  { %v422_v48 = vsel %vm420_vm7, %v412_v46, -inf }
 0x268   :  { %v423_v49 = vmax.f32 %v421_v47, %v422_v48 }
 0x26a   :  { %v424_v50 = vrot.slane %v423_v49, 4 }
 0x26c   :  { %v425_v51 = vmax.f32 %v423_v49, %v424_v50  ;;  %v414_v52 = vpop.f32.mrf.mxu1 }
 0x26d   :  { %v415_v56 = vadd.f32 %v2320_v43, %v414_v52 }
 0x26e   :  { %v426_v53 = vrot.slane %v425_v51, 2 }
 0x26f   :  { %v430_v62 = vsel %vm420_vm7, %v415_v56, -inf }
 0x270   :  { %v427_v54 = vmax.f32 %v425_v51, %v426_v53 }
 0x272   :  { %v428_v55 = vrot.slane %v427_v54, 1 }
 0x274   :  { %v429_v57 = vmax.f32 %v427_v54, %v428_v55  ;;  %v417_v58 = vpop.f32.mrf.mxu1  ;;  %v522_v55 = vld [vmem:[#allocation9 + $0x18] sm:$0xff] }
 0x275   :  { %v418_v59 = vadd.f32 %v2320_v43, %v417_v58  ;;  %540 = vmatpush.msrb.mxu3 %v522_v55 }
 0x276   :  { %v439_v60 = vsub.f32 %v409_v44, %v429_v57  ;;  %v440_v61 = vsub.f32 %v412_v46, %v429_v57 }
 0x277   :  { %v431_v63 = vsel %vm420_vm7, %v418_v59, -inf }
 0x278   :  { %v443_v0 = vmul.f32 1.442695, %v439_v60  ;;  %v445_v2 = vmul.f32 1.442695, %v440_v61  ;;  %v432_v3 = vmax.f32 %v430_v62, %v431_v63  ;;  %v519_v60 = vld [vmem:[#allocation9] sm:$0xff]  ;;  %v517_v63 = vld [vmem:[#allocation7] sm:$0xff] }
 0x27a   :  { %2332 = vpow2.f32 %v443_v0  ;;  %v433_v4 = vrot.slane %v432_v3, 4 }
 0x27b   :  { %2334 = vpow2.f32 %v445_v2 }
 0x27c   :  { %v434_v5 = vmax.f32 %v432_v3, %v433_v4 }
 0x27e   :  { %v435_v6 = vrot.slane %v434_v5, 2 }
 0x280   :  { %v2333_v8 = vpop.eup %2332  ;;  %v436_v9 = vmax.f32 %v434_v5, %v435_v6 }
 0x281   :  { %v2335_v10 = vpop.eup %2334  ;;  %v451_v11 = vsel %vm420_vm7, %v2333_v8, 0.0 }
 0x282   :  { %v452_v12 = vsel %vm420_vm7, %v2335_v10, 0.0  ;;  %v437_v14 = vrot.slane %v436_v9, 1 }
 0x283   :  { %v453_v15 = vadd.f32 %v452_v12, %v451_v11 }
 0x284   :  { %v438_v16 = vmax.f32 %v436_v9, %v437_v14 }
 0x285   :  { %v454_v18 = vrot.slane %v453_v15, 4 }
 0x286   :  { %v441_v21 = vsub.f32 %v415_v56, %v438_v16  ;;  %v442_v22 = vsub.f32 %v418_v59, %v438_v16  ;;  %v521_v56 = vld [vmem:[#allocation9 + $0x10] sm:$0xff]  ;;  %v520_v59 = vld [vmem:[#allocation9 + $0x8] sm:$0xff] }
 0x287   :  { %v455_v24 = vadd.f32 %v454_v18, %v453_v15  ;;  %541 = vmatpush.msrb.mxu3 %v521_v56 }
 0x288   :  { %v447_v27 = vmul.f32 1.442695, %v441_v21  ;;  %v449_v28 = vmul.f32 1.442695, %v442_v22 }
 0x289   :  { %v456_v30 = vrot.slane %v455_v24, 2  ;;  %542 = vmatpush.msrb.mxu3 %v520_v59 }
 0x28a   :  { %2336 = vpow2.f32 %v447_v27 }
 0x28b   :  { %2338 = vpow2.f32 %v449_v28  ;;  %v457_v32 = vadd.f32 %v456_v30, %v455_v24  ;;  %543 = vmatpush.msrb.mxu3 %v519_v60 }
 0x28d   :  { %v458_v33 = vrot.slane %v457_v32, 1 }
 0x28f   :  { %v459_v35 = vadd.f32 %v458_v33, %v457_v32 }
 0x290   :  { %v2337_v36 = vpop.eup %2336 }
 0x291   :  { %v2339_v39 = vpop.eup %2338  ;;  %v460_v40 = vsel %vm420_vm7, %v2337_v36, 0.0  ;;  %2340 = vrcp.f32 %v459_v35  ;;  %v2321_v35 = vld [vmem:[%s3373_s16] ss:$0 sm:$0xff] }
 0x292   :  { %v461_v41 = vsel %vm420_vm7, %v2339_v39, 0.0 }
 0x293   :  { %v462_v42 = vadd.f32 %v461_v41, %v460_v40 }
 0x295   :  { %v463_v43 = vrot.slane %v462_v42, 4 }
 0x297   :  { %v2341_v44 = vpop.eup %2340  ;;  %v464_v45 = vadd.f32 %v463_v43, %v462_v42 }
 0x298   :  { %v472_v46 = vmul.f32 %v2341_v44, %v2335_v10  ;;  %v471_v47 = vmul.f32 %v2341_v44, %v2333_v8 }
 0x299   :  { %v465_v48 = vrot.slane %v464_v45, 2 }
 0x29a   :  { %482 = vperm.xlu1 %2314, %v472_v46   ;;  %477 = vperm.xlu0 %2313, %v471_v47  }
 0x29b   :  { %v466_v49 = vadd.f32 %v465_v48, %v464_v45 }
 0x29d   :  { %v467_v50 = vrot.slane %v466_v49, 1 }
 0x29f   :  { %v468_v51 = vadd.f32 %v467_v50, %v466_v49 }
 0x2a1   :  { %2342 = vrcp.f32 %v468_v51  ;;  %v608_v51 = vld [vmem:[%s3374_s17 + $0x18] sm:$0xff] }
 0x2a2   :  { %584 = vrot.lane.b32.xlu0 %v2891_v19, %s2631_s9 }
 0x2a7   :  { %v2343_v52 = vpop.eup %2342 }
 0x2a8   :  { %v474_v53 = vmul.f32 %v2343_v52, %v2339_v39  ;;  %v473_v54 = vmul.f32 %v2343_v52, %v2337_v36  ;;  %v607_v52 = vld [vmem:[%s3374_s17 + $0x10] sm:$0xff] }
 0x2aa   :  { %600 = vrot.lane.b32.xlu0 %v2867_v7, %s2631_s9  ;;  %492 = vperm.xlu2 %2315, %v474_v53   ;;  %v518_v7 = vld [vmem:[#allocation7 + $0x8] sm:$0xff] }
 0x2ab   :  { %487 = vperm.xlu1 %2314, %v473_v54   ;;  %565 = vmatpush.msra.mxu3 %v518_v7  ;;  %v606_v53 = vld [vmem:[%s3374_s17 + $0x8] sm:$0xff]  ;;  %v605_v54 = vld [vmem:[%s3374_s17] sm:$0xff] }
 0x2ad   :  { %566 = vmatpush.msra.mxu3 %v517_v63 }
 0x2b2   :  { %576 = vrot.lane.b32.xlu2 %v2891_v19, %s2632_s21 }
 0x304   :  { %v493_v3 = vpop.permute.xlu2 %492 }
 0x305   :  { %v498_v5 = vmul.f32 %v493_v3, %v2838_v37 }
 0x307   :  { %v509_v10 = vsel %vm180_vm1, %v498_v5, 0.0 }
 0x30c   :  { %v483_v57 = vpop.permute.xlu1 %482  ;;  %v478_v58 = vpop.permute.xlu0 %477 }
 0x30d   :  { %v496_v61 = vmul.f32 %v483_v57, %v2817_v23  ;;  %v495_v62 = vmul.f32 %v478_v58, %v2801_v17  ;;  %v577_v41 = vpop.permute.xlu2 %576 }
 0x30f   :  { %v500_v0 = vsel %vm180_vm1, %v496_v61, 0.0  ;;  %v499_v19 = vsel %vm180_vm1, %v495_v62, 0.0 }
 0x310   :  { %v501_v2 = vadd.f32 %v500_v0, %v499_v19  ;;  %v2590_v19 = vmov 0  }
 0x312   :  { %v502_v4 = vrot.slane %v501_v2, 4 }
 0x314   :  { %v503_v6 = vadd.f32 %v502_v4, %v501_v2  ;;  %v585_v47 = vpop.permute.xlu0 %584 }
 0x316   :  { %v504_v12 = vrot.slane %v503_v6, 2 }
 0x318   :  { %v505_v16 = vadd.f32 %v504_v12, %v503_v6 }
 0x31a   :  { %v506_v22 = vrot.slane %v505_v16, 1 }
 0x31c   :  { %v507_v28 = vadd.f32 %v506_v22, %v505_v16  ;;  %v601_v56 = vpop.permute.xlu0 %600 }
 0x31d   :  { %v488_v8 = vpop.permute.xlu1 %487 }
 0x31e   :  { %v497_v9 = vmul.f32 %v488_v8, %v2834_v31 }
 0x320   :  { %v508_v11 = vsel %vm180_vm1, %v497_v9, 0.0 }
 0x321   :  { %v510_v14 = vadd.f32 %v509_v10, %v508_v11 }
 0x323   :  { %v511_v15 = vrot.slane %v510_v14, 4 }
 0x325   :  { %v512_v18 = vadd.f32 %v511_v15, %v510_v14 }
 0x327   :  { %v513_v21 = vrot.slane %v512_v18, 2 }
 0x329   :  { %v514_v24 = vadd.f32 %v513_v21, %v512_v18 }
 0x32b   :  { %v515_v27 = vrot.slane %v514_v24, 1 }
 0x32d   :  { %v516_v30 = vadd.f32 %v515_v27, %v514_v24 }
 0x32f   :  { %v525_v32 = vsel %vm218_vm3, %v516_v30, %v507_v28 }
 0x330   :  { %2167 = vmatmul.msk.f32.vlgmr.msrb.gmra.mxu3 %vm180_vm1, %v525_v32 }
 0x331   :  { %630 = vmatpush.msrb.mxu3 %v608_v51 }
 0x333   :  { %631 = vmatpush.msrb.mxu3 %v607_v52 }
 0x335   :  { %632 = vmatpush.msrb.mxu3 %v606_v53 }
 0x337   :  { %633 = vmatpush.msrb.mxu3 %v605_v54 }
 0x338   :  { %2168 = vmatmul.msk.f32.vlgmr.msra.gmra.mxu3 %vm302_vm5, %v2883_v13 }
 0x3b3   :  { %v545_v33 = vpop.f32.mrf.mxu3 }
 0x3bb   :  { %v568_v36 = vpop.f32.mrf.mxu3 }
 0x3bc   :  { %v569_v39 = vadd.f32 %v568_v36, %v545_v33 }
 0x3be   :  { %v575_v40 = vadd.f32 %v2321_v35, %v569_v39 }
 0x3c0   :  { %v579_v42 = vadd.f32 %v577_v41, %v575_v40 }
 0x3c2   :  { %v580_v43 = vmul.f32 0.5, %v579_v42 }
 0x3c4   :  { %2344 = vtanh.f32 %v580_v43 }
 0x3ca   :  { %v2345_v44 = vpop.eup %2344 }
 0x3cb   :  { %v582_v45 = vadd.f32 1.0, %v2345_v44 }
 0x3cd   :  { %v583_v46 = vmul.f32 0.5, %v582_v45 }
 0x3cf   :  { %v587_v48 = vmul.f32 %v585_v47, %v583_v46  ;;  %v594_v55 = vsub.f32 1.0, %v583_v46  ;;  %v603_v58 = vmul.f32 %v601_v56, %v583_v46 }
 0x3d1   :  { %589 = vrot.lane.b32.xlu1 %v587_v48, %s2633_s0 }
 0x443   :  { %v590_v13 = vpop.permute.xlu1 %589 }
 0x444   :  { %v592_v49 = vadd.f32 %v590_v13, %v575_v40 }
 0x446   :  { %2346 = vtanh.f32 %v592_v49 }
 0x44c   :  { %v2347_v50 = vpop.eup %2346 }
 0x44d   :  { %596 = vrot.lane.b32.xlu2 %v2347_v50, %s2632_s21 }
 0x455   :  { %613 = vrot.lane.b32.xlu2 %v575_v40, %s2631_s9 }
 0x4a7   :  { %v597_v57 = vpop.permute.xlu2 %596 }
 0x4a8   :  { %v599_v59 = vmul.f32 %v597_v57, %v594_v55 }
 0x4aa   :  { %v2955_v60 = vadd.f32 %v603_v58, %v599_v59 }
 0x4ac   :  { %610 = vrot.lane.b32.xlu1 %v2955_v60, %s2632_s21 }
 0x4af   :  { %v614_v62 = vpop.permute.xlu2 %613 }
 0x51e   :  { %v2959_v61 = vpop.permute.xlu1 %610 }
 0x51f   :  { %2169 = vmatmul.msk.f32.vlgmr.msrb.gmra.mxu3 %vm180_vm1, %v2959_v61 }
 0x5a2   :  { %v635_v7 = vpop.f32.mrf.mxu3 }
 0x5a3   :  { %v636_v63 = vadd.f32 %v635_v7, %v614_v62  ;;  %648 = sbr.rel (%p2170_p1) target bundleno = 1567 (0x61f), region = 93 }
 0x5a5   :  { %v639_v0 = vrot.slane %v636_v63, 1  ;;  %642 = vst.msk [vmem:[%s3375_s18 + $0x1] sm:$0x1] %vm641_vm8, %v636_v63 }
 0x5a7   :  { %643 = vst.msk [vmem:[%s3375_s18 + $0x9] sm:$0x1] %vm641_vm8, %v639_v0 }
 0x5a8   :  { %v2634_v2 = vmov 1   ;;  %v2635_v4 = vmov 0.0  }
 0x5a9   :  { %2348 = vset.pattern.permute.xlu0 %v2634_v2 }
 0x5aa   :  { %650 = vperm.xlu0 %2348, %v2828_v26  }
 0x61c   :  { %v651_v3 = vpop.permute.xlu0 %650 }
 0x61d   :  { %vm652_vm9 = vcmp.eq.s32.totalorder %v651_v3, %v2860_v1 }
 0x61e   :  { %v2171_v19 = vsel %vm652_vm9, 1.0, %v2635_v4  }
 0x61f PF:  { %v2594_v5 = vmov %v2592_v19   ;;  %658 = sbr.rel (%p645_p0) target bundleno = 1937 (0x791), region = 97  ;;  %v2592_v19 = vphi %v2590_v19, %v2171_v19  }
 0x624   :  { %vm659_vm10 = vcmask 123904   ;;  %v2636_v30 = vmov 0.0  }
 0x625   :  { %v660_v6 = vsel %vm659_vm10, %v636_v63, -inf }
 0x626   :  { %661 = vmax.xlane.f32.xlu0 %v660_v6 }
 0x699   :  { %v662_v8 = vpop.xlane.xlu0 %661 }
 0x69a   :  { %vm663_vm11 = vcmp.eq.f32.partialorder %v636_v63, %v662_v8 }
 0x69b   :  { %v664_v9 = vsel %vm663_vm11, %v2860_v1, 16 }
 0x69c   :  { %v665_v10 = vsel %vm659_vm10, %v664_v9, 2147483647 }
 0x69d   :  { %v667_v11 = vshra.s32 %v665_v10, 16  ;;  %v666_v14 = vand.u32 65535, %v665_v10 }
 0x69f   :  { %v669_v12 = vcvt.s32.f32 %v667_v11  ;;  %v668_v16 = vcvt.s32.f32 %v666_v14 }
 0x6a1   :  { %670 = vmin.xlane.f32.xlu0 %v669_v12 }
 0x714   :  { %v671_v15 = vpop.xlane.xlu0 %670 }
 0x715   :  { %vm672_vm12 = vcmp.eq.f32.partialorder %v669_v12, %v671_v15  ;;  %v677_v21 = vcvt.f32.s32 %v671_v15 }
 0x716   :  { %v673_v18 = vsel %vm672_vm12, %v668_v16, inf }
 0x717   :  { %674 = vmin.xlane.f32.xlu1 %v673_v18  ;;  %v678_v24 = vshll.u32 %v677_v21, 16 }
 0x78a   :  { %v675_v22 = vpop.xlane.xlu1 %674 }
 0x78b   :  { %v676_v27 = vcvt.f32.s32 %v675_v22 }
 0x78d   :  { %v679_v28 = vadd.s32 %v678_v24, %v676_v27 }
 0x78f   :  { %vm680_vm13 = vcmp.eq.s32.totalorder %v2860_v1, %v679_v28 }
 0x790   :  { %v2172_v5 = vsel %vm680_vm13, 1.0, %v2636_v30  }
 0x791 PF:  { %v712_v32 = vld [vmem:[#allocation6 + $0x18] sm:$0xff]  ;;  %v711_v33 = vld [vmem:[#allocation6 + $0x10] sm:$0xff]  ;;  %2349 = vset.pattern.permute.xlu0 %v2629_v29  ;;  %2350 = vset.pattern.permute.xlu1 %v2629_v29  ;;  %v710_v35 = vld [vmem:[#allocation6 + $0x8] sm:$0xff]  ;;  %s2182_s8 = sld [smem:[#allocation3 + $0x1]]  ;;  %v2596_v5 = vphi %v2594_v5, %v2172_v5  }
 0x792   :  { %729 = vmatpush.msrb.mxu0 %v712_v32  ;;  %v709_v36 = vld [vmem:[#allocation6] sm:$0xff]  ;;  %v754_v39 = vld [vmem:[%s3367_s10 + $0x18] sm:$0xff]  ;;  %v753_v40 = vld [vmem:[%s3367_s10 + $0x10] sm:$0xff] }
 0x793   :  { %783 = vmatpush.msra.mxu3 %v754_v39  ;;  %v752_v41 = vld [vmem:[%s3367_s10 + $0x8] sm:$0xff]  ;;  %v751_v42 = vld [vmem:[%s3367_s10] sm:$0xff] }
 0x794   :  { %730 = vmatpush.msrb.mxu0 %v711_v33  ;;  %v2351_v43 = vld [vmem:[%s3370_s13] ss:$0 sm:$0xff] }
 0x795   :  { %784 = vmatpush.msra.mxu3 %v753_v40  ;;  %v2352_v57 = vld [vmem:[#allocation2] ss:$0 sm:$0xff] }
 0x796   :  { %731 = vmatpush.msrb.mxu0 %v710_v35 }
 0x797   :  { %785 = vmatpush.msra.mxu3 %v752_v41  ;;  %p1020_p2 = scmp.eq.s32.totalorder %s2182_s8, 1  ;;  %p2183_p3 = scmp.ne.s32.totalorder %s2182_s8, 1 }
 0x798   :  { %732 = vmatpush.msrb.mxu0 %v709_v36 }
 0x799   :  { %2174 = vmatmul.msk.f32.vlgmr.msrb.gmra.mxu0 %vm180_vm1, %v2959_v61  ;;  %786 = vmatpush.msra.mxu3 %v751_v42 }
 0x816   :  { %v734_v44 = vpop.f32.mrf.mxu0 }
 0x817   :  { %v735_v45 = vadd.f32 %v2351_v43, %v734_v44 }
 0x819   :  { %v739_v46 = vperm.slane %v735_v45, 0  ;;  %955 = vrot.lane.b32.xlu2 %v735_v45, %s2632_s21  ;;  %v738_v48 = vrot.slane %v735_v45, 1 }
 0x81b   :  { %v743_v47 = vadd.f32 %v739_v46, %v2893_v20  ;;  %v744_v13 = vadd.f32 %v739_v46, %v2897_v25  ;;  %v740_v50 = vperm.slane %v738_v48, 0 }
 0x81d   :  { %2354 = vtanh.f32 %v743_v47  ;;  %v745_v51 = vadd.f32 %v740_v50, %v2902_v34  ;;  %v746_v53 = vadd.f32 %v740_v50, %v2906_v38 }
 0x81e   :  { %2356 = vtanh.f32 %v744_v13  ;;  %v685_v13 = vld [vmem:[%s3364_s7 + $0x8] sm:$0xff] }
 0x81f   :  { %2358 = vtanh.f32 %v745_v51  ;;  %703 = vmatpush.msrb.mxu2 %v685_v13 }
 0x820   :  { %2360 = vtanh.f32 %v746_v53 }
 0x821   :  { %963 = vrot.lane.b32.xlu2 %v735_v45, %s2631_s9 }
 0x823   :  { %v2355_v49 = vpop.eup %2354 }
 0x824   :  { %2175 = vmatmul.msk.f32.vlgmr.msra.gmra.mxu3 %vm180_vm1, %v2355_v49  ;;  %v2357_v52 = vpop.eup %2356  ;;  %v684_v49 = vld [vmem:[%s3364_s7] sm:$0xff] }
 0x825   :  { %v2359_v54 = vpop.eup %2358  ;;  %704 = vmatpush.msrb.mxu2 %v684_v49 }
 0x826   :  { %v2361_v55 = vpop.eup %2360  ;;  %2173 = vmatmul.msk.f32.vlgmr.msrb.gmra.mxu2 %vm302_vm5, %v2596_v5 }
 0x82c   :  { %2176 = vmatmul.msk.f32.gmra.mxu3 %vm180_vm1, %v2357_v52 }
 0x834   :  { %2177 = vmatmul.msk.f32.gmra.mxu3 %vm180_vm1, %v2359_v54 }
 0x83c   :  { %2178 = vmatmul.msk.f32.gmra.mxu3 %vm180_vm1, %v2361_v55 }
 0x8a7   :  { %v788_v56 = vpop.f32.mrf.mxu3 }
 0x8a8   :  { %v789_v58 = vadd.f32 %v2352_v57, %v788_v56 }
 0x8aa   :  { %v800_v62 = vsel %vm420_vm7, %v789_v58, -inf }
 0x8af   :  { %v791_v59 = vpop.f32.mrf.mxu3 }
 0x8b0   :  { %v792_v61 = vadd.f32 %v2352_v57, %v791_v59 }
 0x8b2   :  { %v801_v7 = vsel %vm420_vm7, %v792_v61, -inf }
 0x8b3   :  { %v802_v63 = vmax.f32 %v800_v62, %v801_v7 }
 0x8b5   :  { %v803_v0 = vrot.slane %v802_v63, 4 }
 0x8b7   :  { %v804_v19 = vmax.f32 %v802_v63, %v803_v0  ;;  %v794_v2 = vpop.f32.mrf.mxu3 }
 0x8b8   :  { %v795_v8 = vadd.f32 %v2352_v57, %v794_v2 }
 0x8b9   :  { %v805_v3 = vrot.slane %v804_v19, 2 }
 0x8ba   :  { %v809_v15 = vsel %vm420_vm7, %v795_v8, -inf }
 0x8bb   :  { %v806_v4 = vmax.f32 %v804_v19, %v805_v3 }
 0x8bd   :  { %v807_v6 = vrot.slane %v806_v4, 1 }
 0x8bf   :  { %v808_v9 = vmax.f32 %v806_v4, %v807_v6  ;;  %v797_v10 = vpop.f32.mrf.mxu3 }
 0x8c0   :  { %v798_v11 = vadd.f32 %v2352_v57, %v797_v10  ;;  %v901_v10 = vld [vmem:[#allocation9 + $0x18] sm:$0xff] }
 0x8c1   :  { %v818_v12 = vsub.f32 %v789_v58, %v808_v9  ;;  %v819_v14 = vsub.f32 %v792_v61, %v808_v9  ;;  %v896_v9 = vld [vmem:[#allocation7] sm:$0xff]  ;;  %919 = vmatpush.msra.mxu1 %v901_v10 }
 0x8c2   :  { %v810_v16 = vsel %vm420_vm7, %v798_v11, -inf }
 0x8c3   :  { %v822_v18 = vmul.f32 1.442695, %v818_v12  ;;  %v824_v21 = vmul.f32 1.442695, %v819_v14  ;;  %v811_v22 = vmax.f32 %v809_v15, %v810_v16  ;;  %v706_v12 = vpop.f32.mrf.mxu2  ;;  %v899_v14 = vld [vmem:[#allocation9 + $0x8] sm:$0xff]  ;;  %v898_v15 = vld [vmem:[#allocation9] sm:$0xff] }
 0x8c5   :  { %2362 = vpow2.f32 %v822_v18  ;;  %v812_v24 = vrot.slane %v811_v22, 4 }
 0x8c6   :  { %2364 = vpow2.f32 %v824_v21 }
 0x8c7   :  { %v813_v27 = vmax.f32 %v811_v22, %v812_v24 }
 0x8c9   :  { %v814_v28 = vrot.slane %v813_v27, 2 }
 0x8cb   :  { %v2363_v30 = vpop.eup %2362  ;;  %v815_v32 = vmax.f32 %v813_v27, %v814_v28 }
 0x8cc   :  { %v2365_v33 = vpop.eup %2364  ;;  %v830_v35 = vsel %vm420_vm7, %v2363_v30, 0.0 }
 0x8cd   :  { %v831_v36 = vsel %vm420_vm7, %v2365_v33, 0.0  ;;  %v816_v39 = vrot.slane %v815_v32, 1 }
 0x8ce   :  { %v832_v40 = vadd.f32 %v831_v36, %v830_v35 }
 0x8cf   :  { %v817_v41 = vmax.f32 %v815_v32, %v816_v39 }
 0x8d0   :  { %v833_v42 = vrot.slane %v832_v40, 4 }
 0x8d1   :  { %v820_v43 = vsub.f32 %v795_v8, %v817_v41  ;;  %v821_v44 = vsub.f32 %v798_v11, %v817_v41  ;;  %v897_v8 = vld [vmem:[#allocation7 + $0x8] sm:$0xff]  ;;  %v900_v11 = vld [vmem:[#allocation9 + $0x10] sm:$0xff] }
 0x8d2   :  { %v834_v45 = vadd.f32 %v833_v42, %v832_v40  ;;  %944 = vmatpush.msra.mxu2 %v897_v8  ;;  %920 = vmatpush.msra.mxu1 %v900_v11  ;;  %v981_v8 = vld [vmem:[%s3374_s17] sm:$0xff] }
 0x8d3   :  { %v826_v46 = vmul.f32 1.442695, %v820_v43  ;;  %v828_v47 = vmul.f32 1.442695, %v821_v44 }
 0x8d4   :  { %v835_v48 = vrot.slane %v834_v45, 2  ;;  %945 = vmatpush.msra.mxu2 %v896_v9  ;;  %921 = vmatpush.msra.mxu1 %v899_v14 }
 0x8d5   :  { %2366 = vpow2.f32 %v826_v46  ;;  %2180 = vmatmul.msk.f32.vlgmr.msra.gmra.mxu2 %vm302_vm5, %v706_v12 }
 0x8d6   :  { %2368 = vpow2.f32 %v828_v47  ;;  %v836_v50 = vadd.f32 %v835_v48, %v834_v45  ;;  %922 = vmatpush.msra.mxu1 %v898_v15 }
 0x8d8   :  { %v837_v51 = vrot.slane %v836_v50, 1 }
 0x8da   :  { %v838_v52 = vadd.f32 %v837_v51, %v836_v50 }
 0x8db   :  { %v2367_v53 = vpop.eup %2366 }
 0x8dc   :  { %v2369_v54 = vpop.eup %2368  ;;  %v839_v55 = vsel %vm420_vm7, %v2367_v53, 0.0  ;;  %2370 = vrcp.f32 %v838_v52 }
 0x8dd   :  { %v840_v56 = vsel %vm420_vm7, %v2369_v54, 0.0 }
 0x8de   :  { %v841_v57 = vadd.f32 %v840_v56, %v839_v55 }
 0x8e0   :  { %v842_v58 = vrot.slane %v841_v57, 4 }
 0x8e2   :  { %v2371_v59 = vpop.eup %2370  ;;  %v843_v61 = vadd.f32 %v842_v58, %v841_v57  ;;  %v956_v57 = vpop.permute.xlu2 %955 }
 0x8e3   :  { %v850_v62 = vmul.f32 %v2371_v59, %v2363_v30  ;;  %v851_v2 = vmul.f32 %v2371_v59, %v2365_v33 }
 0x8e4   :  { %v844_v7 = vrot.slane %v843_v61, 2 }
 0x8e5   :  { %856 = vperm.xlu0 %2349, %v850_v62  }
 0x8e6   :  { %v845_v63 = vadd.f32 %v844_v7, %v843_v61 }
 0x8e8   :  { %v846_v0 = vrot.slane %v845_v63, 1 }
 0x8ea   :  { %v847_v19 = vadd.f32 %v846_v0, %v845_v63  ;;  %v964_v63 = vpop.permute.xlu2 %963 }
 0x8ec   :  { %2372 = vrcp.f32 %v847_v19 }
 0x8ed   :  { %861 = vperm.xlu0 %2349, %v851_v2  }
 0x8f2   :  { %v2373_v5 = vpop.eup %2372 }
 0x8f3   :  { %v852_v3 = vmul.f32 %v2373_v5, %v2367_v53  ;;  %v853_v4 = vmul.f32 %v2373_v5, %v2369_v54  ;;  %v2353_v53 = vld [vmem:[%s3373_s16] ss:$0 sm:$0xff] }
 0x8f5   :  { %866 = vperm.xlu1 %2350, %v852_v3   ;;  %v984_v3 = vld [vmem:[%s3374_s17 + $0x18] sm:$0xff] }
 0x8f6   :  { %1006 = vmatpush.msra.mxu0 %v984_v3 }
 0x8fd   :  { %871 = vperm.xlu1 %2350, %v853_v4   ;;  %v983_v4 = vld [vmem:[%s3374_s17 + $0x10] sm:$0xff] }
 0x8fe   :  { %1007 = vmatpush.msra.mxu0 %v983_v4 }
 0x957   :  { %v857_v6 = vpop.permute.xlu0 %856 }
 0x958   :  { %v874_v21 = vmul.f32 %v857_v6, %v2801_v17  ;;  %v947_v52 = vpop.f32.mrf.mxu2  ;;  %v982_v6 = vld [vmem:[%s3374_s17 + $0x8] sm:$0xff] }
 0x959   :  { %1008 = vmatpush.msra.mxu0 %v982_v6 }
 0x95a   :  { %v878_v24 = vsel %vm180_vm1, %v874_v21, 0.0 }
 0x95b   :  { %1009 = vmatpush.msra.mxu0 %v981_v8 }
 0x95f   :  { %v862_v16 = vpop.permute.xlu0 %861 }
 0x960   :  { %v875_v18 = vmul.f32 %v862_v16, %v2817_v23 }
 0x962   :  { %v879_v22 = vsel %vm180_vm1, %v875_v18, 0.0 }
 0x963   :  { %v880_v27 = vadd.f32 %v879_v22, %v878_v24 }
 0x965   :  { %v881_v30 = vrot.slane %v880_v27, 4 }
 0x967   :  { %v867_v28 = vpop.permute.xlu1 %866  ;;  %v882_v33 = vadd.f32 %v881_v30, %v880_v27 }
 0x968   :  { %v876_v32 = vmul.f32 %v867_v28, %v2834_v31 }
 0x969   :  { %v883_v41 = vrot.slane %v882_v33, 2 }
 0x96a   :  { %v887_v39 = vsel %vm180_vm1, %v876_v32, 0.0 }
 0x96b   :  { %v884_v45 = vadd.f32 %v883_v41, %v882_v33 }
 0x96d   :  { %v885_v47 = vrot.slane %v884_v45, 1 }
 0x96f   :  { %v872_v35 = vpop.permute.xlu1 %871  ;;  %v886_v49 = vadd.f32 %v885_v47, %v884_v45 }
 0x970   :  { %v877_v36 = vmul.f32 %v872_v35, %v2838_v37 }
 0x972   :  { %v888_v40 = vsel %vm180_vm1, %v877_v36, 0.0 }
 0x973   :  { %v889_v42 = vadd.f32 %v888_v40, %v887_v39 }
 0x975   :  { %v890_v43 = vrot.slane %v889_v42, 4 }
 0x977   :  { %v891_v44 = vadd.f32 %v890_v43, %v889_v42 }
 0x979   :  { %v892_v46 = vrot.slane %v891_v44, 2 }
 0x97b   :  { %v893_v48 = vadd.f32 %v892_v46, %v891_v44 }
 0x97d   :  { %v894_v13 = vrot.slane %v893_v48, 1 }
 0x97f   :  { %v895_v50 = vadd.f32 %v894_v13, %v893_v48 }
 0x981   :  { %v904_v51 = vsel %vm218_vm3, %v895_v50, %v886_v49 }
 0x982   :  { %2179 = vmatmul.msk.f32.vlgmr.msra.gmra.mxu1 %vm180_vm1, %v904_v51 }
 0x9ff   :  { %v924_v54 = vpop.f32.mrf.mxu1 }
 0xa00   :  { %v948_v55 = vadd.f32 %v947_v52, %v924_v54 }
 0xa02   :  { %v954_v56 = vadd.f32 %v2353_v53, %v948_v55 }
 0xa04   :  { %v958_v58 = vadd.f32 %v956_v57, %v954_v56 }
 0xa06   :  { %v959_v59 = vmul.f32 0.5, %v958_v58 }
 0xa08   :  { %2374 = vtanh.f32 %v959_v59 }
 0xa0e   :  { %v2375_v61 = vpop.eup %2374 }
 0xa0f   :  { %v961_v62 = vadd.f32 1.0, %v2375_v61 }
 0xa11   :  { %v962_v7 = vmul.f32 0.5, %v961_v62 }
 0xa13   :  { %v966_v0 = vmul.f32 %v964_v63, %v962_v7  ;;  %v973_v9 = vsub.f32 1.0, %v962_v7  ;;  %v979_v12 = vmul.f32 %v962_v7, %v2955_v60  ;;  %v2598_v60 = vmov 0  }
 0xa15   :  { %968 = vrot.lane.b32.xlu0 %v966_v0, %s2633_s0 }
 0xa1d   :  { %989 = vrot.lane.b32.xlu0 %v954_v56, %s2631_s9 }
 0xa87   :  { %v969_v19 = vpop.permute.xlu0 %968 }
 0xa88   :  { %v971_v2 = vadd.f32 %v969_v19, %v954_v56 }
 0xa8a   :  { %2376 = vtanh.f32 %v971_v2 }
 0xa8f   :  { %v990_v16 = vpop.permute.xlu0 %989 }
 0xa90   :  { %v2377_v5 = vpop.eup %2376 }
 0xa91   :  { %975 = vrot.lane.b32.xlu1 %v2377_v5, %s2632_s21 }
 0xb03   :  { %v976_v10 = vpop.permute.xlu1 %975 }
 0xb04   :  { %v978_v11 = vmul.f32 %v976_v10, %v973_v9 }
 0xb06   :  { %v3053_v14 = vadd.f32 %v979_v12, %v978_v11 }
 0xb08   :  { %986 = vrot.lane.b32.xlu2 %v3053_v14, %s2632_s21 }
 0xb62   :  { %v3057_v15 = vpop.permute.xlu2 %986 }
 0xb63   :  { %2181 = vmatmul.msk.f32.vlgmr.msra.gmra.mxu0 %vm180_vm1, %v3057_v15 }
 0xbe0   :  { %v1011_v18 = vpop.f32.mrf.mxu0 }
 0xbe1   :  { %v1012_v21 = vadd.f32 %v1011_v18, %v990_v16  ;;  %1023 = sbr.rel (%p2183_p3) target bundleno = 3165 (0xc5d), region = 101 }
 0xbe3   :  { %v1015_v22 = vrot.slane %v1012_v21, 1  ;;  %1017 = vst.msk [vmem:[%s3375_s18 + $0x2] sm:$0x1] %vm641_vm8, %v1012_v21 }
 0xbe5   :  { %1018 = vst.msk [vmem:[%s3375_s18 + $0xa] sm:$0x1] %vm641_vm8, %v1015_v22 }
 0xbe6   :  { %v2637_v24 = vmov 2   ;;  %v2638_v28 = vmov 0.0  }
 0xbe7   :  { %2378 = vset.pattern.permute.xlu0 %v2637_v24 }
 0xbe8   :  { %1025 = vperm.xlu0 %2378, %v2828_v26  }
 0xc5a   :  { %v1026_v27 = vpop.permute.xlu0 %1025 }
 0xc5b   :  { %vm1027_vm14 = vcmp.eq.s32.totalorder %v1026_v27, %v2860_v1 }
 0xc5c   :  { %v2184_v60 = vsel %vm1027_vm14, 1.0, %v2638_v28  }
 0xc5d PF:  { %v2602_v30 = vmov %v2600_v60   ;;  %1033 = sbr.rel (%p1020_p2) target bundleno = 3535 (0xdcf), region = 105  ;;  %v2600_v60 = vphi %v2598_v60, %v2184_v60  }
 0xc62   :  { %vm1034_vm15 = vcmask 123904   ;;  %v2639_v49 = vmov 0.0  }
 0xc63   :  { %v1035_v32 = vsel %vm1034_vm15, %v1012_v21, -inf }
 0xc64   :  { %1036 = vmax.xlane.f32.xlu0 %v1035_v32 }
 0xcd7   :  { %v1037_v33 = vpop.xlane.xlu0 %1036 }
 0xcd8   :  { %vm1038_vm0 = vcmp.eq.f32.partialorder %v1012_v21, %v1037_v33 }
 0xcd9   :  { %v1039_v35 = vsel %vm1038_vm0, %v2860_v1, 16 }
 0xcda   :  { %v1040_v36 = vsel %vm1034_vm15, %v1039_v35, 2147483647 }
 0xcdb   :  { %v1042_v39 = vshra.s32 %v1040_v36, 16  ;;  %v1041_v41 = vand.u32 65535, %v1040_v36 }
 0xcdd   :  { %v1044_v40 = vcvt.s32.f32 %v1042_v39  ;;  %v1043_v43 = vcvt.s32.f32 %v1041_v41 }
 0xcdf   :  { %1045 = vmin.xlane.f32.xlu0 %v1044_v40 }
 0xd52   :  { %v1046_v42 = vpop.xlane.xlu0 %1045 }
 0xd53   :  { %vm1047_vm2 = vcmp.eq.f32.partialorder %v1044_v40, %v1046_v42  ;;  %v1052_v45 = vcvt.f32.s32 %v1046_v42 }
 0xd54   :  { %v1048_v44 = vsel %vm1047_vm2, %v1043_v43, inf }
 0xd55   :  { %1049 = vmin.xlane.f32.xlu1 %v1048_v44  ;;  %v1053_v47 = vshll.u32 %v1052_v45, 16 }
 0xdc8   :  { %v1050_v46 = vpop.xlane.xlu1 %1049 }
 0xdc9   :  { %v1051_v48 = vcvt.f32.s32 %v1050_v46 }
 0xdcb   :  { %v1054_v13 = vadd.s32 %v1053_v47, %v1051_v48 }
 0xdcd   :  { %vm1055_vm4 = vcmp.eq.s32.totalorder %v2860_v1, %v1054_v13 }
 0xdce   :  { %v2185_v30 = vsel %vm1055_vm4, 1.0, %v2639_v49  }
 0xdcf PF:  { %v1087_v50 = vld [vmem:[#allocation6 + $0x18] sm:$0xff]  ;;  %v1086_v51 = vld [vmem:[#allocation6 + $0x10] sm:$0xff]  ;;  %2379 = vset.pattern.permute.xlu0 %v2629_v29  ;;  %2380 = vset.pattern.permute.xlu1 %v2629_v29  ;;  %v1085_v52 = vld [vmem:[#allocation6 + $0x8] sm:$0xff]  ;;  %s2195_s1 = sld [smem:[#allocation3 + $0x2]]  ;;  %v2604_v30 = vphi %v2602_v30, %v2185_v30  }
 0xdd0   :  { %1104 = vmatpush.msrb.mxu2 %v1087_v50  ;;  %v1084_v53 = vld [vmem:[#allocation6] sm:$0xff]  ;;  %v1129_v54 = vld [vmem:[%s3367_s10 + $0x18] sm:$0xff]  ;;  %v1128_v55 = vld [vmem:[%s3367_s10 + $0x10] sm:$0xff] }
 0xdd1   :  { %1158 = vmatpush.msrb.mxu0 %v1129_v54  ;;  %v1127_v56 = vld [vmem:[%s3367_s10 + $0x8] sm:$0xff]  ;;  %v1126_v57 = vld [vmem:[%s3367_s10] sm:$0xff] }
 0xdd2   :  { %1105 = vmatpush.msrb.mxu2 %v1086_v51  ;;  %v2381_v58 = vld [vmem:[%s3370_s13] ss:$0 sm:$0xff] }
 0xdd3   :  { %1159 = vmatpush.msrb.mxu0 %v1128_v55  ;;  %v2382_v10 = vld [vmem:[#allocation2] ss:$0 sm:$0xff] }
 0xdd4   :  { %1106 = vmatpush.msrb.mxu2 %v1085_v52 }
 0xdd5   :  { %1160 = vmatpush.msrb.mxu0 %v1127_v56  ;;  %p1395_p4 = scmp.eq.s32.totalorder %s2195_s1, 1  ;;  %p2196_p5 = scmp.ne.s32.totalorder %s2195_s1, 1 }
 0xdd6   :  { %1107 = vmatpush.msrb.mxu2 %v1084_v53 }
 0xdd7   :  { %2187 = vmatmul.msk.f32.vlgmr.msrb.gmra.mxu2 %vm180_vm1, %v3057_v15  ;;  %1161 = vmatpush.msrb.mxu0 %v1126_v57 }
 0xe5a   :  { %v1109_v59 = vpop.f32.mrf.mxu2 }
 0xe5b   :  { %v1110_v61 = vadd.f32 %v2381_v58, %v1109_v59 }
 0xe5d   :  { %v1114_v62 = vperm.slane %v1110_v61, 0  ;;  %1330 = vrot.lane.b32.xlu2 %v1110_v61, %s2632_s21  ;;  %v1113_v63 = vrot.slane %v1110_v61, 1 }
 0xe5f   :  { %v1118_v7 = vadd.f32 %v1114_v62, %v2893_v20  ;;  %v1119_v0 = vadd.f32 %v1114_v62, %v2897_v25  ;;  %v1115_v2 = vperm.slane %v1113_v63, 0 }
 0xe61   :  { %2384 = vtanh.f32 %v1118_v7  ;;  %v1120_v5 = vadd.f32 %v1115_v2, %v2902_v34  ;;  %v1121_v4 = vadd.f32 %v1115_v2, %v2906_v38 }
 0xe62   :  { %2386 = vtanh.f32 %v1119_v0  ;;  %v1060_v0 = vld [vmem:[%s3364_s7 + $0x8] sm:$0xff] }
 0xe63   :  { %2388 = vtanh.f32 %v1120_v5  ;;  %1078 = vmatpush.msrb.mxu1 %v1060_v0 }
 0xe64   :  { %2390 = vtanh.f32 %v1121_v4 }
 0xe65   :  { %1338 = vrot.lane.b32.xlu2 %v1110_v61, %s2631_s9 }
 0xe67   :  { %v2385_v19 = vpop.eup %2384 }
 0xe68   :  { %2188 = vmatmul.msk.f32.vlgmr.msrb.gmra.mxu0 %vm180_vm1, %v2385_v19  ;;  %v2387_v3 = vpop.eup %2386 }
 0xe69   :  { %v2389_v6 = vpop.eup %2388 }
 0xe6a   :  { %v2391_v8 = vpop.eup %2390 }
 0xe70   :  { %2189 = vmatmul.msk.f32.gmra.mxu0 %vm180_vm1, %v2387_v3 }
 0xe78   :  { %2190 = vmatmul.msk.f32.gmra.mxu0 %vm180_vm1, %v2389_v6 }
 0xe80   :  { %2191 = vmatmul.msk.f32.gmra.mxu0 %vm180_vm1, %v2391_v8  ;;  %v1059_v8 = vld [vmem:[%s3364_s7] sm:$0xff] }
 0xe81   :  { %1079 = vmatpush.msrb.mxu1 %v1059_v8 }
 0xe82   :  { %2186 = vmatmul.msk.f32.vlgmr.msrb.gmra.mxu1 %vm302_vm5, %v2604_v30  ;;  %v1271_v30 = vld [vmem:[#allocation7] sm:$0xff] }
 0xee5   :  { %v1163_v9 = vpop.f32.mrf.mxu0 }
 0xee6   :  { %v1164_v11 = vadd.f32 %v2382_v10, %v1163_v9 }
 0xee8   :  { %v1175_v16 = vsel %vm420_vm7, %v1164_v11, -inf }
 0xeed   :  { %v1166_v12 = vpop.f32.mrf.mxu0 }
 0xeee   :  { %v1167_v15 = vadd.f32 %v2382_v10, %v1166_v12 }
 0xef0   :  { %v1176_v18 = vsel %vm420_vm7, %v1167_v15, -inf }
 0xef1   :  { %v1177_v21 = vmax.f32 %v1175_v16, %v1176_v18 }
 0xef3   :  { %v1178_v22 = vrot.slane %v1177_v21, 4 }
 0xef5   :  { %v1179_v60 = vmax.f32 %v1177_v21, %v1178_v22  ;;  %v1169_v24 = vpop.f32.mrf.mxu0 }
 0xef6   :  { %v1170_v33 = vadd.f32 %v2382_v10, %v1169_v24 }
 0xef7   :  { %v1180_v27 = vrot.slane %v1179_v60, 2 }
 0xef8   :  { %v1184_v42 = vsel %vm420_vm7, %v1170_v33, -inf }
 0xef9   :  { %v1181_v28 = vmax.f32 %v1179_v60, %v1180_v27 }
 0xefb   :  { %v1182_v32 = vrot.slane %v1181_v28, 1 }
 0xefd   :  { %v1183_v35 = vmax.f32 %v1181_v28, %v1182_v32  ;;  %v1172_v36 = vpop.f32.mrf.mxu0 }
 0xefe   :  { %v1173_v39 = vadd.f32 %v2382_v10, %v1172_v36  ;;  %v1276_v36 = vld [vmem:[#allocation9 + $0x18] sm:$0xff] }
 0xeff   :  { %v1193_v40 = vsub.f32 %v1164_v11, %v1183_v35  ;;  %v1194_v41 = vsub.f32 %v1167_v15, %v1183_v35  ;;  %v1272_v35 = vld [vmem:[#allocation7 + $0x8] sm:$0xff]  ;;  %1294 = vmatpush.msra.mxu1 %v1276_v36 }
 0xf00   :  { %v1185_v43 = vsel %vm420_vm7, %v1173_v39, -inf  ;;  %1319 = vmatpush.msra.mxu2 %v1272_v35  ;;  %v1356_v35 = vld [vmem:[%s3374_s17] sm:$0xff] }
 0xf01   :  { %v1197_v44 = vmul.f32 1.442695, %v1193_v40  ;;  %v1199_v45 = vmul.f32 1.442695, %v1194_v41  ;;  %v1186_v46 = vmax.f32 %v1184_v42, %v1185_v43  ;;  %v1081_v40 = vpop.f32.mrf.mxu1  ;;  %v1274_v41 = vld [vmem:[#allocation9 + $0x8] sm:$0xff]  ;;  %v1273_v42 = vld [vmem:[#allocation9] sm:$0xff] }
 0xf02   :  { %1320 = vmatpush.msra.mxu2 %v1271_v30 }
 0xf03   :  { %2392 = vpow2.f32 %v1197_v44  ;;  %v1187_v47 = vrot.slane %v1186_v46, 4  ;;  %2193 = vmatmul.msk.f32.vlgmr.msra.gmra.mxu2 %vm302_vm5, %v1081_v40 }
 0xf04   :  { %2394 = vpow2.f32 %v1199_v45 }
 0xf05   :  { %v1188_v48 = vmax.f32 %v1186_v46, %v1187_v47 }
 0xf07   :  { %v1189_v13 = vrot.slane %v1188_v48, 2 }
 0xf09   :  { %v2393_v49 = vpop.eup %2392  ;;  %v1190_v50 = vmax.f32 %v1188_v48, %v1189_v13 }
 0xf0a   :  { %v2395_v51 = vpop.eup %2394  ;;  %v1205_v52 = vsel %vm420_vm7, %v2393_v49, 0.0 }
 0xf0b   :  { %v1206_v53 = vsel %vm420_vm7, %v2395_v51, 0.0  ;;  %v1191_v54 = vrot.slane %v1190_v50, 1 }
 0xf0c   :  { %v1207_v55 = vadd.f32 %v1206_v53, %v1205_v52 }
 0xf0d   :  { %v1192_v56 = vmax.f32 %v1190_v50, %v1191_v54 }
 0xf0e   :  { %v1208_v57 = vrot.slane %v1207_v55, 4 }
 0xf0f   :  { %v1195_v58 = vsub.f32 %v1170_v33, %v1192_v56  ;;  %v1196_v59 = vsub.f32 %v1173_v39, %v1192_v56  ;;  %v1275_v39 = vld [vmem:[#allocation9 + $0x10] sm:$0xff] }
 0xf10   :  { %v1209_v61 = vadd.f32 %v1208_v57, %v1207_v55  ;;  %1295 = vmatpush.msra.mxu1 %v1275_v39 }
 0xf11   :  { %v1201_v62 = vmul.f32 1.442695, %v1195_v58  ;;  %v1203_v7 = vmul.f32 1.442695, %v1196_v59 }
 0xf12   :  { %v1210_v63 = vrot.slane %v1209_v61, 2  ;;  %1296 = vmatpush.msra.mxu1 %v1274_v41 }
 0xf13   :  { %2396 = vpow2.f32 %v1201_v62 }
 0xf14   :  { %2398 = vpow2.f32 %v1203_v7  ;;  %v1211_v19 = vadd.f32 %v1210_v63, %v1209_v61  ;;  %1297 = vmatpush.msra.mxu1 %v1273_v42 }
 0xf16   :  { %v1212_v2 = vrot.slane %v1211_v19, 1 }
 0xf18   :  { %v1213_v5 = vadd.f32 %v1212_v2, %v1211_v19 }
 0xf19   :  { %v2397_v3 = vpop.eup %2396 }
 0xf1a   :  { %v2399_v4 = vpop.eup %2398  ;;  %v1214_v6 = vsel %vm420_vm7, %v2397_v3, 0.0  ;;  %2400 = vrcp.f32 %v1213_v5 }
 0xf1b   :  { %v1215_v9 = vsel %vm420_vm7, %v2399_v4, 0.0 }
 0xf1c   :  { %v1216_v10 = vadd.f32 %v1215_v9, %v1214_v6 }
 0xf1e   :  { %v1217_v11 = vrot.slane %v1216_v10, 4 }
 0xf20   :  { %v2401_v12 = vpop.eup %2400  ;;  %v1218_v15 = vadd.f32 %v1217_v11, %v1216_v10  ;;  %v1331_v10 = vpop.permute.xlu2 %1330 }
 0xf21   :  { %v1225_v16 = vmul.f32 %v2401_v12, %v2393_v49  ;;  %v1226_v24 = vmul.f32 %v2401_v12, %v2395_v51 }
 0xf22   :  { %v1219_v18 = vrot.slane %v1218_v15, 2 }
 0xf23   :  { %1231 = vperm.xlu0 %2379, %v1225_v16  }
 0xf24   :  { %v1220_v21 = vadd.f32 %v1219_v18, %v1218_v15 }
 0xf26   :  { %v1221_v22 = vrot.slane %v1220_v21, 1 }
 0xf28   :  { %v1222_v60 = vadd.f32 %v1221_v22, %v1220_v21  ;;  %v1339_v21 = vpop.permute.xlu2 %1338 }
 0xf2a   :  { %2402 = vrcp.f32 %v1222_v60 }
 0xf2b   :  { %1236 = vperm.xlu0 %2379, %v1226_v24  }
 0xf30   :  { %v2403_v27 = vpop.eup %2402 }
 0xf31   :  { %v1227_v28 = vmul.f32 %v2403_v27, %v2397_v3  ;;  %v1228_v32 = vmul.f32 %v2403_v27, %v2399_v4  ;;  %v2383_v4 = vld [vmem:[%s3373_s16] ss:$0 sm:$0xff] }
 0xf33   :  { %1241 = vperm.xlu1 %2380, %v1227_v28   ;;  %v1359_v28 = vld [vmem:[%s3374_s17 + $0x18] sm:$0xff] }
 0xf34   :  { %1381 = vmatpush.msrb.mxu1 %v1359_v28 }
 0xf3b   :  { %1246 = vperm.xlu1 %2380, %v1228_v32   ;;  %v1358_v32 = vld [vmem:[%s3374_s17 + $0x10] sm:$0xff] }
 0xf3c   :  { %1382 = vmatpush.msrb.mxu1 %v1358_v32 }
 0xf86   :  { %v1322_v3 = vpop.f32.mrf.mxu2 }
 0xf95   :  { %v1232_v33 = vpop.permute.xlu0 %1231 }
 0xf96   :  { %v1249_v45 = vmul.f32 %v1232_v33, %v2801_v17  ;;  %v1357_v33 = vld [vmem:[%s3374_s17 + $0x8] sm:$0xff] }
 0xf97   :  { %1383 = vmatpush.msrb.mxu1 %v1357_v33 }
 0xf98   :  { %v1253_v47 = vsel %vm180_vm1, %v1249_v45, 0.0 }
 0xf99   :  { %1384 = vmatpush.msrb.mxu1 %v1356_v35 }
 0xf9d   :  { %v1237_v43 = vpop.permute.xlu0 %1236 }
 0xf9e   :  { %v1250_v44 = vmul.f32 %v1237_v43, %v2817_v23 }
 0xfa0   :  { %v1254_v46 = vsel %vm180_vm1, %v1250_v44, 0.0 }
 0xfa1   :  { %v1255_v48 = vadd.f32 %v1254_v46, %v1253_v47 }
 0xfa3   :  { %v1256_v49 = vrot.slane %v1255_v48, 4 }
 0xfa5   :  { %v1242_v13 = vpop.permute.xlu1 %1241  ;;  %v1257_v51 = vadd.f32 %v1256_v49, %v1255_v48 }
 0xfa6   :  { %v1251_v50 = vmul.f32 %v1242_v13, %v2834_v31 }
 0xfa7   :  { %v1258_v56 = vrot.slane %v1257_v51, 2 }
 0xfa8   :  { %v1262_v54 = vsel %vm180_vm1, %v1251_v50, 0.0 }
 0xfa9   :  { %v1259_v61 = vadd.f32 %v1258_v56, %v1257_v51 }
 0xfab   :  { %v1260_v7 = vrot.slane %v1259_v61, 1 }
 0xfad   :  { %v1247_v52 = vpop.permute.xlu1 %1246  ;;  %v1261_v19 = vadd.f32 %v1260_v7, %v1259_v61 }
 0xfae   :  { %v1252_v53 = vmul.f32 %v1247_v52, %v2838_v37 }
 0xfb0   :  { %v1263_v55 = vsel %vm180_vm1, %v1252_v53, 0.0 }
 0xfb1   :  { %v1264_v57 = vadd.f32 %v1263_v55, %v1262_v54 }
 0xfb3   :  { %v1265_v58 = vrot.slane %v1264_v57, 4 }
 0xfb5   :  { %v1266_v59 = vadd.f32 %v1265_v58, %v1264_v57 }
 0xfb7   :  { %v1267_v62 = vrot.slane %v1266_v59, 2 }
 0xfb9   :  { %v1268_v63 = vadd.f32 %v1267_v62, %v1266_v59 }
 0xfbb   :  { %v1269_v0 = vrot.slane %v1268_v63, 1 }
 0xfbd   :  { %v1270_v2 = vadd.f32 %v1269_v0, %v1268_v63 }
 0xfbf   :  { %v1279_v5 = vsel %vm218_vm3, %v1270_v2, %v1261_v19 }
 0xfc0   :  { %2192 = vmatmul.msk.f32.vlgmr.msra.gmra.mxu1 %vm180_vm1, %v1279_v5 }
0x103d   :  { %v1299_v6 = vpop.f32.mrf.mxu1 }
0x103e   :  { %v1323_v8 = vadd.f32 %v1322_v3, %v1299_v6 }
0x1040   :  { %v1329_v9 = vadd.f32 %v2383_v4, %v1323_v8 }
0x1042   :  { %v1333_v11 = vadd.f32 %v1331_v10, %v1329_v9 }
0x1044   :  { %v1334_v12 = vmul.f32 0.5, %v1333_v11 }
0x1046   :  { %2404 = vtanh.f32 %v1334_v12 }
0x104c   :  { %v2405_v15 = vpop.eup %2404 }
0x104d   :  { %v1336_v16 = vadd.f32 1.0, %v2405_v15 }
0x104f   :  { %v1337_v18 = vmul.f32 0.5, %v1336_v16 }
0x1051   :  { %v1341_v22 = vmul.f32 %v1339_v21, %v1337_v18  ;;  %v1348_v30 = vsub.f32 1.0, %v1337_v18  ;;  %v1354_v40 = vmul.f32 %v1337_v18, %v3053_v14  ;;  %v2606_v14 = vmov 0  }
0x1053   :  { %1343 = vrot.lane.b32.xlu0 %v1341_v22, %s2633_s0 }
0x105b   :  { %1364 = vrot.lane.b32.xlu0 %v1329_v9, %s2631_s9 }
0x10c5   :  { %v1344_v60 = vpop.permute.xlu0 %1343 }
0x10c6   :  { %v1346_v24 = vadd.f32 %v1344_v60, %v1329_v9 }
0x10c8   :  { %2406 = vtanh.f32 %v1346_v24 }
0x10cd   :  { %v1365_v43 = vpop.permute.xlu0 %1364 }
0x10ce   :  { %v2407_v27 = vpop.eup %2406 }
0x10cf   :  { %1350 = vrot.lane.b32.xlu1 %v2407_v27, %s2632_s21 }
0x1141   :  { %v1351_v36 = vpop.permute.xlu1 %1350 }
0x1142   :  { %v1353_v39 = vmul.f32 %v1351_v36, %v1348_v30 }
0x1144   :  { %v3151_v41 = vadd.f32 %v1354_v40, %v1353_v39 }
0x1146   :  { %1361 = vrot.lane.b32.xlu2 %v3151_v41, %s2632_s21 }
0x11a0   :  { %v3155_v42 = vpop.permute.xlu2 %1361 }
0x11a1   :  { %2194 = vmatmul.msk.f32.vlgmr.msrb.gmra.mxu1 %vm180_vm1, %v3155_v42 }
0x121e   :  { %v1386_v44 = vpop.f32.mrf.mxu1 }
0x121f   :  { %v1387_v45 = vadd.f32 %v1386_v44, %v1365_v43  ;;  %1398 = sbr.rel (%p2196_p5) target bundleno = 4763 (0x129b), region = 109 }
0x1221   :  { %v1390_v46 = vrot.slane %v1387_v45, 1  ;;  %1392 = vst.msk [vmem:[%s3375_s18 + $0x3] sm:$0x1] %vm641_vm8, %v1387_v45 }
0x1223   :  { %1393 = vst.msk [vmem:[%s3375_s18 + $0xb] sm:$0x1] %vm641_vm8, %v1390_v46 }
0x1224   :  { %v2640_v47 = vmov 3   ;;  %v2641_v13 = vmov 0.0  }
0x1225   :  { %2408 = vset.pattern.permute.xlu0 %v2640_v47 }
0x1226   :  { %1400 = vperm.xlu0 %2408, %v2828_v26  }
0x1298   :  { %v1401_v48 = vpop.permute.xlu0 %1400 }
0x1299   :  { %vm1402_vm6 = vcmp.eq.s32.totalorder %v1401_v48, %v2860_v1 }
0x129a   :  { %v2197_v14 = vsel %vm1402_vm6, 1.0, %v2641_v13  }
0x129b PF:  { %v2610_v49 = vmov %v2608_v14   ;;  %1408 = sbr.rel (%p1395_p4) target bundleno = 5133 (0x140d), region = 113  ;;  %v2608_v14 = vphi %v2606_v14, %v2197_v14  }
0x12a0   :  { %vm1409_vm9 = vcmask 123904   ;;  %v2642_v19 = vmov 0.0  }
0x12a1   :  { %v1410_v50 = vsel %vm1409_vm9, %v1387_v45, -inf }
0x12a2   :  { %1411 = vmax.xlane.f32.xlu0 %v1410_v50 }
0x1315   :  { %v1412_v51 = vpop.xlane.xlu0 %1411 }
0x1316   :  { %vm1413_vm10 = vcmp.eq.f32.partialorder %v1387_v45, %v1412_v51 }
0x1317   :  { %v1414_v52 = vsel %vm1413_vm10, %v2860_v1, 16 }
0x1318   :  { %v1415_v53 = vsel %vm1409_vm9, %v1414_v52, 2147483647 }
0x1319   :  { %v1417_v54 = vshra.s32 %v1415_v53, 16  ;;  %v1416_v56 = vand.u32 65535, %v1415_v53 }
0x131b   :  { %v1419_v55 = vcvt.s32.f32 %v1417_v54  ;;  %v1418_v58 = vcvt.s32.f32 %v1416_v56 }
0x131d   :  { %1420 = vmin.xlane.f32.xlu0 %v1419_v55 }
0x1390   :  { %v1421_v57 = vpop.xlane.xlu0 %1420 }
0x1391   :  { %vm1422_vm11 = vcmp.eq.f32.partialorder %v1419_v55, %v1421_v57  ;;  %v1427_v61 = vcvt.f32.s32 %v1421_v57 }
0x1392   :  { %v1423_v59 = vsel %vm1422_vm11, %v1418_v58, inf }
0x1393   :  { %1424 = vmin.xlane.f32.xlu1 %v1423_v59  ;;  %v1428_v7 = vshll.u32 %v1427_v61, 16 }
0x1406   :  { %v1425_v62 = vpop.xlane.xlu1 %1424 }
0x1407   :  { %v1426_v63 = vcvt.f32.s32 %v1425_v62 }
0x1409   :  { %v1429_v0 = vadd.s32 %v1428_v7, %v1426_v63 }
0x140b   :  { %vm1430_vm12 = vcmp.eq.s32.totalorder %v2860_v1, %v1429_v0 }
0x140c   :  { %v2198_v49 = vsel %vm1430_vm12, 1.0, %v2642_v19  }
0x140d PF:  { %v1462_v2 = vld [vmem:[#allocation6 + $0x18] sm:$0xff]  ;;  %v1461_v5 = vld [vmem:[#allocation6 + $0x10] sm:$0xff]  ;;  %2409 = vset.pattern.permute.xlu0 %v2629_v29  ;;  %2410 = vset.pattern.permute.xlu1 %v2629_v29  ;;  %v1460_v3 = vld [vmem:[#allocation6 + $0x8] sm:$0xff]  ;;  %s2208_s11 = sld [smem:[#allocation3 + $0x3]]  ;;  %v2612_v49 = vphi %v2610_v49, %v2198_v49  }
0x140e   :  { %1479 = vmatpush.msrb.mxu3 %v1462_v2  ;;  %v1459_v4 = vld [vmem:[#allocation6] sm:$0xff]  ;;  %v1504_v6 = vld [vmem:[%s3367_s10 + $0x18] sm:$0xff]  ;;  %v1503_v8 = vld [vmem:[%s3367_s10 + $0x10] sm:$0xff] }
0x140f   :  { %1533 = vmatpush.msra.mxu1 %v1504_v6  ;;  %v1502_v9 = vld [vmem:[%s3367_s10 + $0x8] sm:$0xff]  ;;  %v1501_v10 = vld [vmem:[%s3367_s10] sm:$0xff] }
0x1410   :  { %1480 = vmatpush.msrb.mxu3 %v1461_v5  ;;  %v2411_v11 = vld [vmem:[%s3370_s13] ss:$0 sm:$0xff] }
0x1411   :  { %1534 = vmatpush.msra.mxu1 %v1503_v8  ;;  %v2412_v36 = vld [vmem:[#allocation2] ss:$0 sm:$0xff] }
0x1412   :  { %1481 = vmatpush.msrb.mxu3 %v1460_v3 }
0x1413   :  { %1535 = vmatpush.msra.mxu1 %v1502_v9  ;;  %p1770_p6 = scmp.eq.s32.totalorder %s2208_s11, 1  ;;  %p2209_p7 = scmp.ne.s32.totalorder %s2208_s11, 1 }
0x1414   :  { %1482 = vmatpush.msrb.mxu3 %v1459_v4 }
0x1415   :  { %2200 = vmatmul.msk.f32.vlgmr.msrb.gmra.mxu3 %vm180_vm1, %v3155_v42  ;;  %1536 = vmatpush.msra.mxu1 %v1501_v10 }
0x1498   :  { %v1484_v12 = vpop.f32.mrf.mxu3 }
0x1499   :  { %v1485_v15 = vadd.f32 %v2411_v11, %v1484_v12 }
0x149b   :  { %v1489_v16 = vperm.slane %v1485_v15, 0  ;;  %1705 = vrot.lane.b32.xlu2 %v1485_v15, %s2632_s21  ;;  %v1488_v21 = vrot.slane %v1485_v15, 1 }
0x149d   :  { %v1493_v18 = vadd.f32 %v1489_v16, %v2893_v20  ;;  %v1494_v22 = vadd.f32 %v1489_v16, %v2897_v25  ;;  %v1490_v24 = vperm.slane %v1488_v21, 0 }
0x149f   :  { %2414 = vtanh.f32 %v1493_v18  ;;  %v1495_v27 = vadd.f32 %v1490_v24, %v2902_v34  ;;  %v1496_v32 = vadd.f32 %v1490_v24, %v2906_v38 }
0x14a0   :  { %2416 = vtanh.f32 %v1494_v22  ;;  %v1435_v22 = vld [vmem:[%s3364_s7 + $0x8] sm:$0xff] }
0x14a1   :  { %2418 = vtanh.f32 %v1495_v27  ;;  %1453 = vmatpush.msrb.mxu2 %v1435_v22 }
0x14a2   :  { %2420 = vtanh.f32 %v1496_v32 }
0x14a3   :  { %1713 = vrot.lane.b32.xlu2 %v1485_v15, %s2631_s9 }
0x14a5   :  { %v2415_v60 = vpop.eup %2414 }
0x14a6   :  { %2201 = vmatmul.msk.f32.vlgmr.msra.gmra.mxu1 %vm180_vm1, %v2415_v60  ;;  %v2417_v28 = vpop.eup %2416 }
0x14a7   :  { %v2419_v33 = vpop.eup %2418 }
0x14a8   :  { %v2421_v35 = vpop.eup %2420 }
0x14ae   :  { %2202 = vmatmul.msk.f32.gmra.mxu1 %vm180_vm1, %v2417_v28 }
0x14b6   :  { %2203 = vmatmul.msk.f32.gmra.mxu1 %vm180_vm1, %v2419_v33 }
0x14be   :  { %2204 = vmatmul.msk.f32.gmra.mxu1 %vm180_vm1, %v2421_v35  ;;  %v1434_v35 = vld [vmem:[%s3364_s7] sm:$0xff] }
0x14bf   :  { %1454 = vmatpush.msrb.mxu2 %v1434_v35 }
0x14c0   :  { %2199 = vmatmul.msk.f32.vlgmr.msrb.gmra.mxu2 %vm302_vm5, %v2612_v49  ;;  %v1647_v49 = vld [vmem:[#allocation7 + $0x8] sm:$0xff] }
0x14c1   :  { %1694 = vmatpush.msra.mxu3 %v1647_v49 }
0x1523   :  { %v1538_v30 = vpop.f32.mrf.mxu1 }
0x1524   :  { %v1539_v39 = vadd.f32 %v2412_v36, %v1538_v30 }
0x1526   :  { %v1550_v43 = vsel %vm420_vm7, %v1539_v39, -inf }
0x152b   :  { %v1541_v40 = vpop.f32.mrf.mxu1 }
0x152c   :  { %v1542_v42 = vadd.f32 %v2412_v36, %v1541_v40 }
0x152e   :  { %v1551_v44 = vsel %vm420_vm7, %v1542_v42, -inf }
0x152f   :  { %v1552_v45 = vmax.f32 %v1550_v43, %v1551_v44 }
0x1531   :  { %v1553_v46 = vrot.slane %v1552_v45, 4 }
0x1533   :  { %v1554_v14 = vmax.f32 %v1552_v45, %v1553_v46  ;;  %v1544_v47 = vpop.f32.mrf.mxu1 }
0x1534   :  { %v1545_v51 = vadd.f32 %v2412_v36, %v1544_v47 }
0x1535   :  { %v1555_v48 = vrot.slane %v1554_v14, 2 }
0x1536   :  { %v1559_v57 = vsel %vm420_vm7, %v1545_v51, -inf }
0x1537   :  { %v1556_v13 = vmax.f32 %v1554_v14, %v1555_v48 }
0x1539   :  { %v1557_v50 = vrot.slane %v1556_v13, 1 }
0x153b   :  { %v1558_v52 = vmax.f32 %v1556_v13, %v1557_v50  ;;  %v1547_v53 = vpop.f32.mrf.mxu1 }
0x153c   :  { %v1548_v54 = vadd.f32 %v2412_v36, %v1547_v53  ;;  %v1650_v53 = vld [vmem:[#allocation9 + $0x10] sm:$0xff] }
0x153d   :  { %v1568_v55 = vsub.f32 %v1539_v39, %v1558_v52  ;;  %v1569_v56 = vsub.f32 %v1542_v42, %v1558_v52  ;;  %v1651_v52 = vld [vmem:[#allocation9 + $0x18] sm:$0xff] }
0x153e   :  { %v1560_v58 = vsel %vm420_vm7, %v1548_v54, -inf  ;;  %1669 = vmatpush.msra.mxu2 %v1651_v52  ;;  %v1731_v52 = vld [vmem:[%s3374_s17] sm:$0xff] }
0x153f   :  { %v1572_v59 = vmul.f32 1.442695, %v1568_v55  ;;  %v1574_v61 = vmul.f32 1.442695, %v1569_v56  ;;  %v1561_v62 = vmax.f32 %v1559_v57, %v1560_v58  ;;  %v1649_v55 = vld [vmem:[#allocation9 + $0x8] sm:$0xff]  ;;  %v1648_v56 = vld [vmem:[#allocation9] sm:$0xff] }
0x1540   :  { %1670 = vmatpush.msra.mxu2 %v1650_v53 }
0x1541   :  { %2422 = vpow2.f32 %v1572_v59  ;;  %v1562_v7 = vrot.slane %v1561_v62, 4 }
0x1542   :  { %2424 = vpow2.f32 %v1574_v61  ;;  %1671 = vmatpush.msra.mxu2 %v1649_v55 }
0x1543   :  { %v1563_v63 = vmax.f32 %v1561_v62, %v1562_v7  ;;  %v1456_v59 = vpop.f32.mrf.mxu2 }
0x1544   :  { %1672 = vmatpush.msra.mxu2 %v1648_v56 }
0x1545   :  { %v1564_v0 = vrot.slane %v1563_v63, 2 }
0x1547   :  { %v2423_v19 = vpop.eup %2422  ;;  %v1565_v2 = vmax.f32 %v1563_v63, %v1564_v0 }
0x1548   :  { %v2425_v5 = vpop.eup %2424  ;;  %v1580_v3 = vsel %vm420_vm7, %v2423_v19, 0.0 }
0x1549   :  { %v1581_v4 = vsel %vm420_vm7, %v2425_v5, 0.0  ;;  %v1566_v6 = vrot.slane %v1565_v2, 1 }
0x154a   :  { %v1582_v8 = vadd.f32 %v1581_v4, %v1580_v3 }
0x154b   :  { %v1567_v9 = vmax.f32 %v1565_v2, %v1566_v6 }
0x154c   :  { %v1583_v10 = vrot.slane %v1582_v8, 4 }
0x154d   :  { %v1570_v11 = vsub.f32 %v1545_v51, %v1567_v9  ;;  %v1571_v12 = vsub.f32 %v1548_v54, %v1567_v9  ;;  %v1646_v54 = vld [vmem:[#allocation7] sm:$0xff] }
0x154e   :  { %v1584_v15 = vadd.f32 %v1583_v10, %v1582_v8  ;;  %1695 = vmatpush.msra.mxu3 %v1646_v54 }
0x154f   :  { %v1576_v16 = vmul.f32 1.442695, %v1570_v11  ;;  %v1578_v18 = vmul.f32 1.442695, %v1571_v12  ;;  %2206 = vmatmul.msk.f32.vlgmr.msra.gmra.mxu3 %vm302_vm5, %v1456_v59 }
0x1550   :  { %v1585_v21 = vrot.slane %v1584_v15, 2 }
0x1551   :  { %2426 = vpow2.f32 %v1576_v16 }
0x1552   :  { %2428 = vpow2.f32 %v1578_v18  ;;  %v1586_v60 = vadd.f32 %v1585_v21, %v1584_v15 }
0x1554   :  { %v1587_v24 = vrot.slane %v1586_v60, 1 }
0x1556   :  { %v1588_v27 = vadd.f32 %v1587_v24, %v1586_v60 }
0x1557   :  { %v2427_v28 = vpop.eup %2426 }
0x1558   :  { %v2429_v32 = vpop.eup %2428  ;;  %v1589_v33 = vsel %vm420_vm7, %v2427_v28, 0.0  ;;  %2430 = vrcp.f32 %v1588_v27 }
0x1559   :  { %v1590_v30 = vsel %vm420_vm7, %v2429_v32, 0.0 }
0x155a   :  { %v1591_v36 = vadd.f32 %v1590_v30, %v1589_v33 }
0x155c   :  { %v1592_v39 = vrot.slane %v1591_v36, 4 }
0x155e   :  { %v2431_v40 = vpop.eup %2430  ;;  %v1593_v42 = vadd.f32 %v1592_v39, %v1591_v36  ;;  %v1706_v36 = vpop.permute.xlu2 %1705 }
0x155f   :  { %v1600_v43 = vmul.f32 %v2431_v40, %v2423_v19  ;;  %v1601_v47 = vmul.f32 %v2431_v40, %v2425_v5 }
0x1560   :  { %v1594_v44 = vrot.slane %v1593_v42, 2 }
0x1561   :  { %1606 = vperm.xlu0 %2409, %v1600_v43  }
0x1562   :  { %v1595_v45 = vadd.f32 %v1594_v44, %v1593_v42 }
0x1564   :  { %v1596_v46 = vrot.slane %v1595_v45, 1 }
0x1566   :  { %v1597_v14 = vadd.f32 %v1596_v46, %v1595_v45  ;;  %v1714_v45 = vpop.permute.xlu2 %1713 }
0x1568   :  { %2432 = vrcp.f32 %v1597_v14 }
0x1569   :  { %1611 = vperm.xlu0 %2409, %v1601_v47  }
0x156e   :  { %v2433_v48 = vpop.eup %2432 }
0x156f   :  { %v1602_v13 = vmul.f32 %v2433_v48, %v2427_v28  ;;  %v1603_v50 = vmul.f32 %v2433_v48, %v2429_v32  ;;  %v2413_v32 = vld [vmem:[%s3373_s16] ss:$0 sm:$0xff] }
0x1571   :  { %1616 = vperm.xlu1 %2410, %v1602_v13   ;;  %v1734_v13 = vld [vmem:[%s3374_s17 + $0x18] sm:$0xff] }
0x1572   :  { %1756 = vmatpush.msrb.mxu2 %v1734_v13 }
0x1579   :  { %1621 = vperm.xlu1 %2410, %v1603_v50   ;;  %v1733_v50 = vld [vmem:[%s3374_s17 + $0x10] sm:$0xff] }
0x157a   :  { %1757 = vmatpush.msrb.mxu2 %v1733_v50 }
0x15d2   :  { %v1697_v28 = vpop.f32.mrf.mxu3 }
0x15d3   :  { %v1607_v51 = vpop.permute.xlu0 %1606 }
0x15d4   :  { %v1624_v61 = vmul.f32 %v1607_v51, %v2801_v17  ;;  %v1732_v51 = vld [vmem:[%s3374_s17 + $0x8] sm:$0xff] }
0x15d5   :  { %1758 = vmatpush.msrb.mxu2 %v1732_v51 }
0x15d6   :  { %v1628_v7 = vsel %vm180_vm1, %v1624_v61, 0.0 }
0x15d7   :  { %1759 = vmatpush.msrb.mxu2 %v1731_v52 }
0x15db   :  { %v1612_v57 = vpop.permute.xlu0 %1611 }
0x15dc   :  { %v1625_v58 = vmul.f32 %v1612_v57, %v2817_v23 }
0x15de   :  { %v1629_v62 = vsel %vm180_vm1, %v1625_v58, 0.0 }
0x15df   :  { %v1630_v63 = vadd.f32 %v1629_v62, %v1628_v7 }
0x15e1   :  { %v1631_v19 = vrot.slane %v1630_v63, 4 }
0x15e3   :  { %v1617_v0 = vpop.permute.xlu1 %1616  ;;  %v1632_v5 = vadd.f32 %v1631_v19, %v1630_v63 }
0x15e4   :  { %v1626_v2 = vmul.f32 %v1617_v0, %v2834_v31 }
0x15e5   :  { %v1633_v9 = vrot.slane %v1632_v5, 2 }
0x15e6   :  { %v1637_v6 = vsel %vm180_vm1, %v1626_v2, 0.0 }
0x15e7   :  { %v1634_v15 = vadd.f32 %v1633_v9, %v1632_v5 }
0x15e9   :  { %v1635_v18 = vrot.slane %v1634_v15, 1 }
0x15eb   :  { %v1622_v3 = vpop.permute.xlu1 %1621  ;;  %v1636_v60 = vadd.f32 %v1635_v18, %v1634_v15 }
0x15ec   :  { %v1627_v4 = vmul.f32 %v1622_v3, %v2838_v37 }
0x15ee   :  { %v1638_v8 = vsel %vm180_vm1, %v1627_v4, 0.0 }
0x15ef   :  { %v1639_v10 = vadd.f32 %v1638_v8, %v1637_v6 }
0x15f1   :  { %v1640_v11 = vrot.slane %v1639_v10, 4 }
0x15f3   :  { %v1641_v12 = vadd.f32 %v1640_v11, %v1639_v10 }
0x15f5   :  { %v1642_v16 = vrot.slane %v1641_v12, 2 }
0x15f7   :  { %v1643_v21 = vadd.f32 %v1642_v16, %v1641_v12 }
0x15f9   :  { %v1644_v22 = vrot.slane %v1643_v21, 1 }
0x15fb   :  { %v1645_v24 = vadd.f32 %v1644_v22, %v1643_v21 }
0x15fd   :  { %v1654_v27 = vsel %vm218_vm3, %v1645_v24, %v1636_v60 }
0x15fe   :  { %2205 = vmatmul.msk.f32.vlgmr.msra.gmra.mxu2 %vm180_vm1, %v1654_v27 }
0x1681   :  { %v1674_v33 = vpop.f32.mrf.mxu2 }
0x1682   :  { %v1698_v35 = vadd.f32 %v1697_v28, %v1674_v33 }
0x1684   :  { %v1704_v30 = vadd.f32 %v2413_v32, %v1698_v35 }
0x1686   :  { %v1708_v39 = vadd.f32 %v1706_v36, %v1704_v30 }
0x1688   :  { %v1709_v40 = vmul.f32 0.5, %v1708_v39 }
0x168a   :  { %2434 = vtanh.f32 %v1709_v40 }
0x1690   :  { %v2435_v42 = vpop.eup %2434 }
0x1691   :  { %v1711_v43 = vadd.f32 1.0, %v2435_v42 }
0x1693   :  { %v1712_v44 = vmul.f32 0.5, %v1711_v43 }
0x1695   :  { %v1716_v46 = vmul.f32 %v1714_v45, %v1712_v44  ;;  %v1723_v49 = vsub.f32 1.0, %v1712_v44  ;;  %v1729_v55 = vmul.f32 %v1712_v44, %v3151_v41  ;;  %v2614_v41 = vmov 0  }
0x1697   :  { %1718 = vrot.lane.b32.xlu0 %v1716_v46, %s2633_s0 }
0x169f   :  { %1739 = vrot.lane.b32.xlu0 %v1704_v30, %s2631_s9 }
0x1709   :  { %v1719_v14 = vpop.permute.xlu0 %1718 }
0x170a   :  { %v1721_v47 = vadd.f32 %v1719_v14, %v1704_v30 }
0x170c   :  { %2436 = vtanh.f32 %v1721_v47 }
0x1711   :  { %v1740_v58 = vpop.permute.xlu0 %1739 }
0x1712   :  { %v2437_v48 = vpop.eup %2436 }
0x1713   :  { %1725 = vrot.lane.b32.xlu1 %v2437_v48, %s2632_s21 }
0x1785   :  { %v1726_v53 = vpop.permute.xlu1 %1725 }
0x1786   :  { %v1728_v54 = vmul.f32 %v1726_v53, %v1723_v49 }
0x1788   :  { %v3249_v56 = vadd.f32 %v1729_v55, %v1728_v54 }
0x178a   :  { %1736 = vrot.lane.b32.xlu2 %v3249_v56, %s2632_s21 }
0x17e4   :  { %v3253_v57 = vpop.permute.xlu2 %1736 }
0x17e5   :  { %2207 = vmatmul.msk.f32.vlgmr.msrb.gmra.mxu2 %vm180_vm1, %v3253_v57 }
0x1868   :  { %v1761_v59 = vpop.f32.mrf.mxu2 }
0x1869   :  { %v1762_v61 = vadd.f32 %v1761_v59, %v1740_v58  ;;  %1773 = sbr.rel (%p2209_p7) target bundleno = 6373 (0x18e5), region = 117 }
0x186b   :  { %v1765_v62 = vrot.slane %v1762_v61, 1  ;;  %1767 = vst.msk [vmem:[%s3375_s18 + $0x4] sm:$0x1] %vm641_vm8, %v1762_v61 }
0x186d   :  { %1768 = vst.msk [vmem:[%s3375_s18 + $0xc] sm:$0x1] %vm641_vm8, %v1765_v62 }
0x186e   :  { %v2643_v7 = vmov 4   ;;  %v2644_v0 = vmov 0.0  }
0x186f   :  { %2438 = vset.pattern.permute.xlu0 %v2643_v7 }
0x1870   :  { %1775 = vperm.xlu0 %2438, %v2828_v26  }
0x18e2   :  { %v1776_v63 = vpop.permute.xlu0 %1775 }
0x18e3   :  { %vm1777_vm13 = vcmp.eq.s32.totalorder %v1776_v63, %v2860_v1 }
0x18e4   :  { %v2210_v41 = vsel %vm1777_vm13, 1.0, %v2644_v0  }
0x18e5 PF:  { %v2618_v19 = vmov %v2616_v41   ;;  %1783 = sbr.rel (%p1770_p6) target bundleno = 6743 (0x1a57), region = 121  ;;  %v2616_v41 = vphi %v2614_v41, %v2210_v41  }
0x18ea   :  { %vm1784_vm14 = vcmask 123904   ;;  %v2645_v22 = vmov 0.0  }
0x18eb   :  { %v1785_v2 = vsel %vm1784_vm14, %v1762_v61, -inf }
0x18ec   :  { %1786 = vmax.xlane.f32.xlu0 %v1785_v2 }
0x195f   :  { %v1787_v5 = vpop.xlane.xlu0 %1786 }
0x1960   :  { %vm1788_vm15 = vcmp.eq.f32.partialorder %v1762_v61, %v1787_v5 }
0x1961   :  { %v1789_v3 = vsel %vm1788_vm15, %v2860_v1, 16 }
0x1962   :  { %v1790_v26 = vsel %vm1784_vm14, %v1789_v3, 2147483647 }
0x1963   :  { %v1792_v4 = vshra.s32 %v1790_v26, 16  ;;  %v1791_v8 = vand.u32 65535, %v1790_v26 }
0x1965   :  { %v1794_v6 = vcvt.s32.f32 %v1792_v4  ;;  %v1793_v10 = vcvt.s32.f32 %v1791_v8 }
0x1967   :  { %1795 = vmin.xlane.f32.xlu0 %v1794_v6 }
0x19da   :  { %v1796_v9 = vpop.xlane.xlu0 %1795 }
0x19db   :  { %vm1797_vm0 = vcmp.eq.f32.partialorder %v1794_v6, %v1796_v9  ;;  %v1802_v12 = vcvt.f32.s32 %v1796_v9 }
0x19dc   :  { %v1798_v11 = vsel %vm1797_vm0, %v1793_v10, inf }
0x19dd   :  { %1799 = vmin.xlane.f32.xlu1 %v1798_v11  ;;  %v1803_v16 = vshll.u32 %v1802_v12, 16 }
0x1a50   :  { %v1800_v15 = vpop.xlane.xlu1 %1799 }
0x1a51   :  { %v1801_v18 = vcvt.f32.s32 %v1800_v15 }
0x1a53   :  { %v1804_v21 = vadd.s32 %v1803_v16, %v1801_v18 }
0x1a55   :  { %vm1805_vm2 = vcmp.eq.s32.totalorder %v2860_v1, %v1804_v21 }
0x1a56   :  { %v2211_v19 = vsel %vm1805_vm2, 1.0, %v2645_v22  }
0x1a57 PF:  { %v1837_v60 = vld [vmem:[#allocation6 + $0x18] sm:$0xff]  ;;  %v1836_v24 = vld [vmem:[#allocation6 + $0x10] sm:$0xff]  ;;  %2439 = vset.pattern.permute.xlu0 %v2629_v29  ;;  %2440 = vset.pattern.permute.xlu1 %v2629_v29  ;;  %v1835_v27 = vld [vmem:[#allocation6 + $0x8] sm:$0xff]  ;;  %v2620_v19 = vphi %v2618_v19, %v2211_v19  }
0x1a58   :  { %1854 = vmatpush.msrb.mxu3 %v1837_v60  ;;  %v1834_v28 = vld [vmem:[#allocation6] sm:$0xff]  ;;  %v1879_v1 = vld [vmem:[%s3367_s10 + $0x18] sm:$0xff]  ;;  %v1878_v32 = vld [vmem:[%s3367_s10 + $0x10] sm:$0xff] }
0x1a59   :  { %1908 = vmatpush.msra.mxu2 %v1879_v1  ;;  %v1877_v29 = vld [vmem:[%s3367_s10 + $0x8] sm:$0xff]  ;;  %v1876_v33 = vld [vmem:[%s3367_s10] sm:$0xff] }
0x1a5a   :  { %1855 = vmatpush.msrb.mxu3 %v1836_v24  ;;  %v2441_v35 = vld [vmem:[%s3370_s13] ss:$0 sm:$0xff] }
0x1a5b   :  { %1909 = vmatpush.msra.mxu2 %v1878_v32  ;;  %v2442_v13 = vld [vmem:[#allocation2] ss:$0 sm:$0xff] }
0x1a5c   :  { %1856 = vmatpush.msrb.mxu3 %v1835_v27 }
0x1a5d   :  { %1910 = vmatpush.msra.mxu2 %v1877_v29 }
0x1a5e   :  { %1857 = vmatpush.msrb.mxu3 %v1834_v28 }
0x1a5f   :  { %2213 = vmatmul.msk.f32.vlgmr.msrb.gmra.mxu3 %vm180_vm1, %v3253_v57  ;;  %1911 = vmatpush.msra.mxu2 %v1876_v33  ;;  %v1810_v33 = vld [vmem:[%s3364_s7 + $0x8] sm:$0xff] }
0x1a60   :  { %1828 = vmatpush.msra.mxu0 %v1810_v33 }
0x1ae2   :  { %v1859_v30 = vpop.f32.mrf.mxu3 }
0x1ae3   :  { %v1860_v36 = vadd.f32 %v2441_v35, %v1859_v30 }
0x1ae5   :  { %v1864_v39 = vperm.slane %v1860_v36, 0  ;;  %2080 = vrot.lane.b32.xlu2 %v1860_v36, %s2632_s21  ;;  %v1863_v42 = vrot.slane %v1860_v36, 1 }
0x1ae7   :  { %v1868_v40 = vadd.f32 %v1864_v39, %v2893_v20  ;;  %v1869_v43 = vadd.f32 %v1864_v39, %v2897_v25  ;;  %v1865_v45 = vperm.slane %v1863_v42, 0 }
0x1ae9   :  { %2444 = vtanh.f32 %v1868_v40  ;;  %v1870_v46 = vadd.f32 %v1865_v45, %v2902_v34  ;;  %v1871_v47 = vadd.f32 %v1865_v45, %v2906_v38 }
0x1aea   :  { %2446 = vtanh.f32 %v1869_v43  ;;  %v1809_v43 = vld [vmem:[%s3364_s7] sm:$0xff] }
0x1aeb   :  { %2448 = vtanh.f32 %v1870_v46  ;;  %1829 = vmatpush.msra.mxu0 %v1809_v43 }
0x1aec   :  { %2450 = vtanh.f32 %v1871_v47  ;;  %2212 = vmatmul.msk.f32.vlgmr.msra.gmra.mxu0 %vm302_vm5, %v2620_v19  ;;  %v2021_v19 = vld [vmem:[#allocation7] sm:$0xff] }
0x1aed   :  { %2088 = vrot.lane.b32.xlu2 %v1860_v36, %s2631_s9 }
0x1aef   :  { %v2445_v44 = vpop.eup %2444 }
0x1af0   :  { %2214 = vmatmul.msk.f32.vlgmr.msra.gmra.mxu2 %vm180_vm1, %v2445_v44  ;;  %v2447_v14 = vpop.eup %2446 }
0x1af1   :  { %v2449_v20 = vpop.eup %2448 }
0x1af2   :  { %v2451_v48 = vpop.eup %2450 }
0x1af8   :  { %2215 = vmatmul.msk.f32.gmra.mxu2 %vm180_vm1, %v2447_v14 }
0x1b00   :  { %2216 = vmatmul.msk.f32.gmra.mxu2 %vm180_vm1, %v2449_v20 }
0x1b08   :  { %2217 = vmatmul.msk.f32.gmra.mxu2 %vm180_vm1, %v2451_v48 }
0x1b73   :  { %v1913_v25 = vpop.f32.mrf.mxu2 }
0x1b74   :  { %v1914_v50 = vadd.f32 %v2442_v13, %v1913_v25 }
0x1b76   :  { %v1925_v34 = vsel %vm420_vm7, %v1914_v50, -inf }
0x1b7b   :  { %v1916_v51 = vpop.f32.mrf.mxu2 }
0x1b7c   :  { %v1917_v52 = vadd.f32 %v2442_v13, %v1916_v51 }
0x1b7e   :  { %v1926_v49 = vsel %vm420_vm7, %v1917_v52, -inf }
0x1b7f   :  { %v1927_v53 = vmax.f32 %v1925_v34, %v1926_v49 }
0x1b81   :  { %v1928_v54 = vrot.slane %v1927_v53, 4 }
0x1b83   :  { %v1929_v55 = vmax.f32 %v1927_v53, %v1928_v54  ;;  %v1919_v38 = vpop.f32.mrf.mxu2  ;;  %v2022_v54 = vld [vmem:[#allocation7 + $0x8] sm:$0xff] }
0x1b84   :  { %v1920_v61 = vadd.f32 %v2442_v13, %v1919_v38  ;;  %2069 = vmatpush.msra.mxu3 %v2022_v54  ;;  %v2025_v38 = vld [vmem:[#allocation9 + $0x10] sm:$0xff] }
0x1b85   :  { %v1930_v57 = vrot.slane %v1929_v55, 2 }
0x1b86   :  { %v1934_v2 = vsel %vm420_vm7, %v1920_v61, -inf  ;;  %2070 = vmatpush.msra.mxu3 %v2021_v19 }
0x1b87   :  { %v1931_v58 = vmax.f32 %v1929_v55, %v1930_v57  ;;  %v2026_v55 = vld [vmem:[#allocation9 + $0x18] sm:$0xff]  ;;  %v1831_v57 = vpop.f32.mrf.mxu0 }
0x1b88   :  { %2044 = vmatpush.msrb.mxu0 %v2026_v55  ;;  %2219 = vmatmul.msk.f32.vlgmr.msra.gmra.mxu3 %vm302_vm5, %v1831_v57 }
0x1b89   :  { %v1932_v59 = vrot.slane %v1931_v58, 1 }
0x1b8a   :  { %2045 = vmatpush.msrb.mxu0 %v2025_v38 }
0x1b8b   :  { %v1933_v62 = vmax.f32 %v1931_v58, %v1932_v59  ;;  %v1922_v41 = vpop.f32.mrf.mxu2  ;;  %v2024_v58 = vld [vmem:[#allocation9 + $0x8] sm:$0xff]  ;;  %v2023_v59 = vld [vmem:[#allocation9] sm:$0xff] }
0x1b8c   :  { %v1923_v7 = vadd.f32 %v2442_v13, %v1922_v41  ;;  %2046 = vmatpush.msrb.mxu0 %v2024_v58 }
0x1b8d   :  { %v1943_v63 = vsub.f32 %v1914_v50, %v1933_v62  ;;  %v1944_v0 = vsub.f32 %v1917_v52, %v1933_v62 }
0x1b8e   :  { %v1935_v5 = vsel %vm420_vm7, %v1923_v7, -inf  ;;  %2047 = vmatpush.msrb.mxu0 %v2023_v59 }
0x1b8f   :  { %v1947_v3 = vmul.f32 1.442695, %v1943_v63  ;;  %v1949_v26 = vmul.f32 1.442695, %v1944_v0  ;;  %v1936_v4 = vmax.f32 %v1934_v2, %v1935_v5 }
0x1b91   :  { %2452 = vpow2.f32 %v1947_v3  ;;  %v1937_v6 = vrot.slane %v1936_v4, 4 }
0x1b92   :  { %2454 = vpow2.f32 %v1949_v26 }
0x1b93   :  { %v1938_v8 = vmax.f32 %v1936_v4, %v1937_v6 }
0x1b95   :  { %v1939_v9 = vrot.slane %v1938_v8, 2 }
0x1b97   :  { %v2453_v10 = vpop.eup %2452  ;;  %v1940_v11 = vmax.f32 %v1938_v8, %v1939_v9 }
0x1b98   :  { %v2455_v12 = vpop.eup %2454  ;;  %v1955_v15 = vsel %vm420_vm7, %v2453_v10, 0.0 }
0x1b99   :  { %v1956_v16 = vsel %vm420_vm7, %v2455_v12, 0.0  ;;  %v1941_v18 = vrot.slane %v1940_v11, 1 }
0x1b9a   :  { %v1957_v21 = vadd.f32 %v1956_v16, %v1955_v15 }
0x1b9b   :  { %v1942_v22 = vmax.f32 %v1940_v11, %v1941_v18 }
0x1b9c   :  { %v1958_v60 = vrot.slane %v1957_v21, 4 }
0x1b9d   :  { %v1945_v24 = vsub.f32 %v1920_v61, %v1942_v22  ;;  %v1946_v27 = vsub.f32 %v1923_v7, %v1942_v22 }
0x1b9e   :  { %v1959_v28 = vadd.f32 %v1958_v60, %v1957_v21 }
0x1b9f   :  { %v1951_v1 = vmul.f32 1.442695, %v1945_v24  ;;  %v1953_v32 = vmul.f32 1.442695, %v1946_v27  ;;  %v2443_v24 = vld [vmem:[%s3373_s16] ss:$0 sm:$0xff] }
0x1ba0   :  { %v1960_v29 = vrot.slane %v1959_v28, 2 }
0x1ba1   :  { %2456 = vpow2.f32 %v1951_v1 }
0x1ba2   :  { %2458 = vpow2.f32 %v1953_v32  ;;  %v1961_v35 = vadd.f32 %v1960_v29, %v1959_v28  ;;  %v2081_v32 = vpop.permute.xlu2 %2080 }
0x1ba4   :  { %v1962_v30 = vrot.slane %v1961_v35, 1 }
0x1ba6   :  { %v1963_v36 = vadd.f32 %v1962_v30, %v1961_v35 }
0x1ba7   :  { %v2457_v39 = vpop.eup %2456 }
0x1ba8   :  { %v2459_v40 = vpop.eup %2458  ;;  %v1964_v42 = vsel %vm420_vm7, %v2457_v39, 0.0  ;;  %2460 = vrcp.f32 %v1963_v36 }
0x1ba9   :  { %v1965_v44 = vsel %vm420_vm7, %v2459_v40, 0.0 }
0x1baa   :  { %v1966_v45 = vadd.f32 %v1965_v44, %v1964_v42 }
0x1bac   :  { %v1967_v46 = vrot.slane %v1966_v45, 4 }
0x1bae   :  { %v2461_v14 = vpop.eup %2460  ;;  %v1968_v47 = vadd.f32 %v1967_v46, %v1966_v45  ;;  %v2109_v45 = vld [vmem:[%s3374_s17 + $0x18] sm:$0xff]  ;;  %v2108_v46 = vld [vmem:[%s3374_s17 + $0x10] sm:$0xff] }
0x1baf   :  { %v1975_v20 = vmul.f32 %v2461_v14, %v2453_v10  ;;  %v1976_v51 = vmul.f32 %v2461_v14, %v2455_v12  ;;  %2131 = vmatpush.msra.mxu0 %v2109_v45  ;;  %v2107_v14 = vld [vmem:[%s3374_s17 + $0x8] sm:$0xff] }
0x1bb0   :  { %v1969_v48 = vrot.slane %v1968_v47, 2 }
0x1bb1   :  { %1981 = vperm.xlu0 %2439, %v1975_v20   ;;  %2132 = vmatpush.msra.mxu0 %v2108_v46 }
0x1bb2   :  { %v1970_v25 = vadd.f32 %v1969_v48, %v1968_v47  ;;  %v2106_v47 = vld [vmem:[%s3374_s17] sm:$0xff] }
0x1bb3   :  { %2133 = vmatpush.msra.mxu0 %v2107_v14 }
0x1bb4   :  { %v1971_v13 = vrot.slane %v1970_v25, 1 }
0x1bb5   :  { %2134 = vmatpush.msra.mxu0 %v2106_v47 }
0x1bb6   :  { %v1972_v50 = vadd.f32 %v1971_v13, %v1970_v25 }
0x1bb8   :  { %2462 = vrcp.f32 %v1972_v50 }
0x1bb9   :  { %1986 = vperm.xlu0 %2439, %v1976_v51  }
0x1bbe   :  { %v2463_v52 = vpop.eup %2462 }
0x1bbf   :  { %v1977_v34 = vmul.f32 %v2463_v52, %v2457_v39  ;;  %v1978_v49 = vmul.f32 %v2463_v52, %v2459_v40  ;;  %v2089_v39 = vpop.permute.xlu2 %2088 }
0x1bc1   :  { %1991 = vperm.xlu1 %2440, %v1977_v34  }
0x1bc9   :  { %1996 = vperm.xlu1 %2440, %v1978_v49  }
0x1c23   :  { %v1982_v53 = vpop.permute.xlu0 %1981 }
0x1c24   :  { %v1999_v41 = vmul.f32 %v1982_v53, %v2801_v17 }
0x1c26   :  { %v2003_v63 = vsel %vm180_vm1, %v1999_v41, 0.0 }
0x1c2b   :  { %v1987_v61 = vpop.permute.xlu0 %1986 }
0x1c2c   :  { %v2000_v62 = vmul.f32 %v1987_v61, %v2817_v23 }
0x1c2e   :  { %v2004_v7 = vsel %vm180_vm1, %v2000_v62, 0.0 }
0x1c2f   :  { %v2005_v0 = vadd.f32 %v2004_v7, %v2003_v63 }
0x1c31   :  { %v2006_v5 = vrot.slane %v2005_v0, 4 }
0x1c33   :  { %v1992_v2 = vpop.permute.xlu1 %1991  ;;  %v2007_v26 = vadd.f32 %v2006_v5, %v2005_v0 }
0x1c34   :  { %v2001_v3 = vmul.f32 %v1992_v2, %v2834_v31 }
0x1c35   :  { %v2008_v9 = vrot.slane %v2007_v26, 2 }
0x1c36   :  { %v2012_v8 = vsel %vm180_vm1, %v2001_v3, 0.0 }
0x1c37   :  { %v2009_v12 = vadd.f32 %v2008_v9, %v2007_v26 }
0x1c39   :  { %v2010_v16 = vrot.slane %v2009_v12, 1 }
0x1c3b   :  { %v1997_v4 = vpop.permute.xlu1 %1996  ;;  %v2011_v22 = vadd.f32 %v2010_v16, %v2009_v12 }
0x1c3c   :  { %v2002_v6 = vmul.f32 %v1997_v4, %v2838_v37  ;;  %v2072_v37 = vpop.f32.mrf.mxu3 }
0x1c3e   :  { %v2013_v23 = vsel %vm180_vm1, %v2002_v6, 0.0 }
0x1c3f   :  { %v2014_v10 = vadd.f32 %v2013_v23, %v2012_v8 }
0x1c41   :  { %v2015_v17 = vrot.slane %v2014_v10, 4 }
0x1c43   :  { %v2016_v11 = vadd.f32 %v2015_v17, %v2014_v10 }
0x1c45   :  { %v2017_v15 = vrot.slane %v2016_v11, 2 }
0x1c47   :  { %v2018_v18 = vadd.f32 %v2017_v15, %v2016_v11 }
0x1c49   :  { %v2019_v21 = vrot.slane %v2018_v18, 1 }
0x1c4b   :  { %v2020_v60 = vadd.f32 %v2019_v21, %v2018_v18 }
0x1c4d   :  { %v2029_v31 = vsel %vm218_vm3, %v2020_v60, %v2011_v22 }
0x1c4e   :  { %2218 = vmatmul.msk.f32.vlgmr.msrb.gmra.mxu0 %vm180_vm1, %v2029_v31 }
0x1ccb   :  { %v2049_v27 = vpop.f32.mrf.mxu0 }
0x1ccc   :  { %v2073_v28 = vadd.f32 %v2072_v37, %v2049_v27 }
0x1cce   :  { %v2079_v1 = vadd.f32 %v2443_v24, %v2073_v28 }
0x1cd0   :  { %v2083_v29 = vadd.f32 %v2081_v32, %v2079_v1 }
0x1cd2   :  { %v2084_v33 = vmul.f32 0.5, %v2083_v29 }
0x1cd4   :  { %2464 = vtanh.f32 %v2084_v33 }
0x1cda   :  { %v2465_v35 = vpop.eup %2464 }
0x1cdb   :  { %v2086_v30 = vadd.f32 1.0, %v2465_v35 }
0x1cdd   :  { %v2087_v36 = vmul.f32 0.5, %v2086_v30 }
0x1cdf   :  { %v2091_v40 = vmul.f32 %v2089_v39, %v2087_v36  ;;  %v2098_v20 = vsub.f32 1.0, %v2087_v36  ;;  %v2104_v13 = vmul.f32 %v2087_v36, %v3249_v56 }
0x1ce1   :  { %2093 = vrot.lane.b32.xlu0 %v2091_v40, %s2633_s0 }
0x1ce9   :  { %2114 = vrot.lane.b32.xlu0 %v2079_v1, %s2631_s9 }
0x1d53   :  { %v2094_v42 = vpop.permute.xlu0 %2093 }
0x1d54   :  { %v2096_v43 = vadd.f32 %v2094_v42, %v2079_v1 }
0x1d56   :  { %2466 = vtanh.f32 %v2096_v43 }
0x1d5b   :  { %v2115_v52 = vpop.permute.xlu0 %2114 }
0x1d5c   :  { %v2467_v44 = vpop.eup %2466 }
0x1d5d   :  { %2100 = vrot.lane.b32.xlu1 %v2467_v44, %s2632_s21 }
0x1dcf   :  { %v2101_v48 = vpop.permute.xlu1 %2100 }
0x1dd0   :  { %v2103_v25 = vmul.f32 %v2101_v48, %v2098_v20 }
0x1dd2   :  { %v2105_v50 = vadd.f32 %v2104_v13, %v2103_v25 }
0x1dd4   :  { %2111 = vrot.lane.b32.xlu2 %v2105_v50, %s2632_s21 }
0x1e2e   :  { %v2112_v51 = vpop.permute.xlu2 %2111 }
0x1e2f   :  { %2220 = vmatmul.msk.f32.vlgmr.msra.gmra.mxu0 %vm180_vm1, %v2112_v51 }
0x1eac   :  { %v2136_v34 = vpop.f32.mrf.mxu0 }
0x1ead   :  { %v2137_v49 = vadd.f32 %v2136_v34, %v2115_v52 }
0x1eaf   :  { %v2140_v53 = vrot.slane %v2137_v49, 1  ;;  %2142 = vst.msk [vmem:[%s3375_s18 + $0x5] sm:$0x1] %vm641_vm8, %v2137_v49 }
0x1eb1   :  { %2143 = vst.msk [vmem:[%s3375_s18 + $0xd] sm:$0x1] %vm641_vm8, %v2140_v53 }
0x1eb2   :  { %2148 = vsyncpa [#allocation4], 1 }
0x1eb3   :  { %2149 = vsyncpa [#allocation8], 1 }
0x1eb4   :  { %2150 = vsyncpa [#allocation5], 1 }

</bundles_post_ra>
